<compile_context>
chip_gen: v7x
topology: tpu7x:2x2x1
jax: 0.10.0
libtpu: 0.0.40
codegen_flags: <defaults>
</compile_context>

<pallas_src>
from functools import partial

import jax
import jax.numpy as jnp
from jax.experimental import pallas as pl
from jax.experimental.pallas import tpu as pltpu


# ----------------------------------------------------------------------------
# Model config
# ----------------------------------------------------------------------------
IN_CHANS = 10
LAYERS = 3
RANK = 12
TD_CHANS = LAYERS * RANK * 3          # 108
OUT_PAD = 128                         # lane-padded decoder output channels
BOTTLENECK = 1024
EMBED_DIMS = (64, 192, 384)           # CvT-13-like DIM_EMBED
MVIT_PATCH = 16
MVIT_DIM = 128

COMPUTE_DTYPE = jnp.bfloat16          # bf16 activations/weights, f32 accumulation
VMEM_LIMIT = 32 * 1024 * 1024         # scoped-VMEM safe on v5e/v6e/v7x


# ----------------------------------------------------------------------------
# Kernel 1: M-tiled matmul + bias + optional fused ReLU
# (encoder patch-embeds, bottleneck 1x1)
# ----------------------------------------------------------------------------
def _mm_bias_kernel(a_ref, w_ref, b_ref, o_ref, *, relu):
    acc = jnp.dot(a_ref[...], w_ref[...], preferred_element_type=jnp.float32)
    acc = acc + b_ref[...]
    if relu:
        acc = jnp.maximum(acc, 0.0)
    o_ref[...] = acc.astype(o_ref.dtype)


def matmul_bias(a, w, b, *, relu=False, out_dtype=jnp.float32, tm=1024):
    """(M,K) @ (K,N) + b[N], optional fused ReLU.

    M-tiled pipelined grid ("parallel" axis -> shards across v7x's two TCs);
    weight + bias stay VMEM-resident across the grid.
    """
    M, K = a.shape
    N = w.shape[1]
    if M <= tm:
        tm_eff, m_pad = M, M
    else:
        tm_eff = tm
        m_pad = pl.cdiv(M, tm) * tm
        if m_pad != M:
            # TODO(synk): mask the last tile's store in-kernel instead of the
            # pad + slice round trip (only triggers when M % tm != 0).
            a = jnp.pad(a, ((0, m_pad - M), (0, 0)))
    grid = (m_pad // tm_eff,)

    flops = 2 * m_pad * K * N
    bytes_accessed = (m_pad * K * a.dtype.itemsize
                      + K * N * w.dtype.itemsize + N * 4
                      + m_pad * N * jnp.dtype(out_dtype).itemsize)

    out = pl.pallas_call(
        partial(_mm_bias_kernel, relu=relu),
        out_shape=jax.ShapeDtypeStruct((m_pad, N), out_dtype),
        grid=grid,
        in_specs=[
            pl.BlockSpec((tm_eff, K), lambda i: (i, 0)),
            pl.BlockSpec((K, N), lambda i: (0, 0)),
            pl.BlockSpec((1, N), lambda i: (0, 0)),
        ],
        out_specs=pl.BlockSpec((tm_eff, N), lambda i: (i, 0)),
        compiler_params=pltpu.CompilerParams(
            dimension_semantics=("parallel",),
            vmem_limit_bytes=VMEM_LIMIT),
        cost_estimate=pl.CostEstimate(flops=int(flops), transcendentals=0,
                                      bytes_accessed=int(bytes_accessed)),
    )(a, w, b.reshape(1, N))
    return out[:M] if m_pad != M else out


# ----------------------------------------------------------------------------
# Kernel 2: fully fused decoder chain
#   conv1x1(w_d3)+s3+relu -> up2 -> conv1x1(w_d2)+s2+relu -> up2
#   -> conv1x1(w_d1)+s1+relu -> conv1x1(w_out padded to 128 lanes)
# ----------------------------------------------------------------------------
def _up2(x):
    """Nearest-neighbour 2x spatial upsample: (h, w, c) -> (2h, 2w, c).

    Pure broadcast + reshape (sublane duplication) — no MXU work, no
    replication matrix in VMEM.
    """
    h, w, c = x.shape
    x = jnp.broadcast_to(x[:, :, None, :], (h, w, 2, c)).reshape(h, 2 * w, c)
    x = jnp.broadcast_to(x[:, None, :, :], (h, 2, 2 * w, c)).reshape(2 * h, 2 * w, c)
    return x


def _decoder_kernel(xn_ref, s3_ref, s2_ref, s1_ref,
                    wd3_ref, bd3_ref, wd2_ref, bd2_ref,
                    wd1_ref, bd1_ref, wo_ref, bo_ref, o_ref):
    f32 = jnp.float32
    hc, wc, bn = xn_ref.shape
    hm, wm, d2 = s2_ref.shape
    hf, wf, d1 = s1_ref.shape
    d3 = s3_ref.shape[-1]

    # stage 3: 1x1 conv + skip + relu at coarse resolution
    xn = xn_ref[...].reshape(hc * wc, bn)
    a3 = jnp.dot(xn, wd3_ref[...], preferred_element_type=f32) + bd3_ref[...]
    a3 = jnp.maximum(a3 + s3_ref[...].reshape(hc * wc, d3).astype(f32), 0.0)

    # stage 2: 1x1 conv at coarse res (commutes with NN upsample), then
    # broadcast 2x upsample, skip + relu at mid resolution
    t2 = jnp.dot(a3.astype(wd2_ref.dtype), wd2_ref[...],
                 preferred_element_type=f32) + bd2_ref[...]
    t2 = _up2(t2.reshape(hc, wc, d2)).reshape(hm * wm, d2)
    a2 = jnp.maximum(t2 + s2_ref[...].reshape(hm * wm, d2).astype(f32), 0.0)

    # stage 1
    t1 = jnp.dot(a2.astype(wd1_ref.dtype), wd1_ref[...],
                 preferred_element_type=f32) + bd1_ref[...]
    t1 = _up2(t1.reshape(hm, wm, d1)).reshape(hf * wf, d1)
    a1 = jnp.maximum(t1 + s1_ref[...].reshape(hf * wf, d1).astype(f32), 0.0)

    # output projection (N padded to 128 lanes -> unmasked stores)
    out = jnp.dot(a1.astype(wo_ref.dtype), wo_ref[...],
                  preferred_element_type=f32) + bo_ref[...]
    o_ref[...] = out.reshape(o_ref.shape).astype(o_ref.dtype)


def decoder_fused(x_new, s3, s2, s1, params, *, tile_h=None):
    """Whole decoder chain in ONE pallas_call.

    Grid over (batch, fine row tiles); decoder weights (~1 MiB bf16) resident
    in VMEM; skips streamed per tile; no HBM intermediates; bf16 writeback.
    """
    B, Hc, Wc, BN = x_new.shape
    _, Hm, Wm, D2 = s2.shape
    _, Hf, Wf, D1 = s1.shape
    D3 = s3.shape[-1]
    assert Hm == 2 * Hc and Wm == 2 * Wc and Hf == 2 * Hm and Wf == 2 * Wm

    if tile_h is None:
        tile_h = 4
        for cand in (32, 16, 8, 4):
            if Hf % cand == 0:
                tile_h = cand
                break
    assert tile_h % 4 == 0 and Hf % tile_h == 0
    n_tiles = Hf // tile_h

    # lane-pad the output projection to 128 channels (zeros)
    w_out = jnp.pad(params["w_out"], ((0, 0), (0, OUT_PAD - TD_CHANS)))
    b_out = jnp.pad(params["b_out"], ((0, OUT_PAD - TD_CHANS),))
    w_d3, b_d3 = params["w_d3"], params["b_d3"]
    w_d2, b_d2 = params["w_d2"], params["b_d2"]
    w_d1, b_d1 = params["w_d1"], params["b_d1"]

    def tile_spec(th, w, c):
        return pl.BlockSpec((None, th, w, c), lambda b, i: (b, i, 0, 0))

    def const_spec(shape):
        nd = len(shape)
        return pl.BlockSpec(tuple(shape), lambda b, i, _nd=nd: (0,) * _nd)

    flops = 2 * B * (Hc * Wc * BN * D3 + Hc * Wc * D3 * D2
                     + Hm * Wm * D2 * D1 + Hf * Wf * D1 * OUT_PAD)
    bytes_accessed = sum(int(t.size) * t.dtype.itemsize
                         for t in (x_new, s3, s2, s1,
                                   w_d3, w_d2, w_d1, w_out))
    bytes_accessed += B * Hf * Wf * OUT_PAD * 2   # bf16 writeback

    out = pl.pallas_call(
        _decoder_kernel,
        out_shape=jax.ShapeDtypeStruct((B, Hf, Wf, OUT_PAD), COMPUTE_DTYPE),
        grid=(B, n_tiles),
        in_specs=[
            tile_spec(tile_h // 4, Wc, BN),
            tile_spec(tile_h // 4, Wc, D3),
            tile_spec(tile_h // 2, Wm, D2),
            tile_spec(tile_h, Wf, D1),
            const_spec(w_d3.shape), const_spec((1, D3)),
            const_spec(w_d2.shape), const_spec((1, D2)),
            const_spec(w_d1.shape), const_spec((1, D1)),
            const_spec(w_out.shape), const_spec((1, OUT_PAD)),
        ],
        out_specs=pl.BlockSpec((None, tile_h, Wf, OUT_PAD),
                               lambda b, i: (b, i, 0, 0)),
        compiler_params=pltpu.CompilerParams(
            dimension_semantics=("parallel", "parallel"),
            vmem_limit_bytes=VMEM_LIMIT),
        cost_estimate=pl.CostEstimate(flops=int(flops), transcendentals=0,
                                      bytes_accessed=int(bytes_accessed)),
    )(x_new, s3, s2, s1,
      w_d3, b_d3.reshape(1, -1), w_d2, b_d2.reshape(1, -1),
      w_d1, b_d1.reshape(1, -1), w_out, b_out.reshape(1, -1))
    return out   # (B, Hf, Wf, 128) bf16; caller slices [..., :TD_CHANS]


# ----------------------------------------------------------------------------
# Kernel 3: fused mViT patch-embed matmul + ReLU + mean-pool over patches
# (several batch elements per grid step -> one larger MXU matmul)
# ----------------------------------------------------------------------------
def _mvit_pool_kernel(p_ref, w_ref, b_ref, o_ref):
    bt, npatch, k = p_ref.shape
    flat = p_ref[...].reshape(bt * npatch, k)
    e = jnp.dot(flat, w_ref[...], preferred_element_type=jnp.float32)
    e = jnp.maximum(e + b_ref[...], 0.0)
    pooled = jnp.sum(e.reshape(bt, npatch, -1), axis=1) * (1.0 / npatch)
    o_ref[...] = pooled.astype(o_ref.dtype)


def mvit_embed_pool(patches_bnk, w, b):
    """(B, Np, K) patches -> (B, D) pooled embedding; embedding never hits HBM."""
    B, Np, K = patches_bnk.shape
    D = w.shape[1]
    bt = 1
    for cand in (8, 4, 2, 1):
        if B % cand == 0:
            bt = cand
            break
    return pl.pallas_call(
        _mvit_pool_kernel,
        out_shape=jax.ShapeDtypeStruct((B, D), jnp.float32),
        grid=(B // bt,),
        in_specs=[
            pl.BlockSpec((bt, Np, K), lambda bi: (bi, 0, 0)),
            pl.BlockSpec((K, D), lambda bi: (0, 0)),
            pl.BlockSpec((1, D), lambda bi: (0, 0)),
        ],
        out_specs=pl.BlockSpec((bt, D), lambda bi: (bi, 0)),
        compiler_params=pltpu.CompilerParams(
            dimension_semantics=("parallel",),
            vmem_limit_bytes=VMEM_LIMIT),
        cost_estimate=pl.CostEstimate(
            flops=int(2 * B * Np * K * D), transcendentals=0,
            bytes_accessed=int(B * Np * K * patches_bnk.dtype.itemsize
                               + K * D * w.dtype.itemsize + B * D * 4)),
    )(patches_bnk, w, b.reshape(1, D))


# ----------------------------------------------------------------------------
# Glue: patch extraction / conv wrappers (compute stays in Pallas)
# ----------------------------------------------------------------------------
def _extract_patches(x_nhwc, p):
    # TODO(synk): fuse this gather into the Pallas matmul via a strided-DMA /
    # per-tap accumulation BlockSpec to avoid the XLA re-layout HBM round trip.
    B, H, W, C = x_nhwc.shape
    assert H % p == 0 and W % p == 0
    x = x_nhwc.reshape(B, H // p, p, W // p, p, C)
    x = x.transpose(0, 1, 3, 2, 4, 5)
    return x.reshape(B, (H // p) * (W // p), p * p * C), (H // p, W // p)


def patch_conv(x_nhwc, w, b, p, relu=True):
    """Conv2d(kernel=p, stride=p) == patch flatten + tiled Pallas matmul."""
    B = x_nhwc.shape[0]
    flat, (Hp, Wp) = _extract_patches(x_nhwc, p)
    y = matmul_bias(flat.reshape(B * Hp * Wp, -1), w, b, relu=relu,
                    out_dtype=COMPUTE_DTYPE)
    return y.reshape(B, Hp, Wp, w.shape[1])


def conv1x1(x_nhwc, w, b, relu=False, out_dtype=COMPUTE_DTYPE):
    B, H, W, C = x_nhwc.shape
    y = matmul_bias(x_nhwc.reshape(B * H * W, C), w, b, relu=relu,
                    out_dtype=out_dtype)
    return y.reshape(B, H, W, w.shape[1])


# ----------------------------------------------------------------------------
# Gamma model
# ----------------------------------------------------------------------------
def init_params(key):
    def dense(k, k_in, k_out, scale=0.05):
        w = scale * jax.random.normal(k, (k_in, k_out), jnp.float32)
        return w.astype(COMPUTE_DTYPE), jnp.zeros((k_out,), jnp.float32)

    ks = jax.random.split(key, 11)
    p = {}
    # encoder (CvT-like patch-embed stages + bottleneck)
    p["w1"], p["b1"] = dense(ks[0], 4 * 4 * IN_CHANS, EMBED_DIMS[0])
    p["w2"], p["b2"] = dense(ks[1], 2 * 2 * EMBED_DIMS[0], EMBED_DIMS[1])
    p["w3"], p["b3"] = dense(ks[2], 2 * 2 * EMBED_DIMS[1], EMBED_DIMS[2])
    p["w_bn"], p["b_bn"] = dense(ks[3], EMBED_DIMS[2], BOTTLENECK)
    # decoder (1x1 fusion convs + skip adds + final projection to td_chans)
    p["w_d3"], p["b_d3"] = dense(ks[4], BOTTLENECK, EMBED_DIMS[2])
    p["w_d2"], p["b_d2"] = dense(ks[5], EMBED_DIMS[2], EMBED_DIMS[1])
    p["w_d1"], p["b_d1"] = dense(ks[6], EMBED_DIMS[1], EMBED_DIMS[0])
    p["w_out"], p["b_out"] = dense(ks[7], EMBED_DIMS[0], TD_CHANS)
    # mViT adaptive-bins head
    p["w_patch"], p["b_patch"] = dense(ks[8], MVIT_PATCH * MVIT_PATCH * IN_CHANS,
                                       MVIT_DIM)
    # tiny bins head stays in plain JAX -> keep f32
    p["w_bins"] = 0.05 * jax.random.normal(ks[9], (MVIT_DIM, LAYERS), jnp.float32)
    p["b_bins"] = jnp.zeros((LAYERS,), jnp.float32)
    return p


def gamma_forward(params, x_nchw):
    # ---- input: NCHW (PyTorch) -> NHWC, bf16 compute (f32 accumulation) ----
    x = jnp.transpose(x_nchw, (0, 2, 3, 1)).astype(COMPUTE_DTYPE)
    assert x.shape[1] % 16 == 0 and x.shape[2] % 16 == 0

    # ---- encoder: x_new, all_outs = self.encoder(x) ----
    s1 = patch_conv(x, params["w1"], params["b1"], 4)           # (B, H/4,  W/4,  64)
    s2 = patch_conv(s1, params["w2"], params["b2"], 2)          # (B, H/8,  W/8,  192)
    s3 = patch_conv(s2, params["w3"], params["b3"], 2)          # (B, H/16, W/16, 384)
    x_new = conv1x1(s3, params["w_bn"], params["b_bn"], relu=True)  # bottleneck 1024

    # ---- temporal=False: no ConvLSTM ----
    # TODO(synk): ConvLSTM state model not implemented (temporal=False path).
    state = None

    # ---- decoder: single fused Pallas kernel (bf16, 128-lane padded out) ----
    d = decoder_fused(x_new, s3, s2, s1, params)                # (B, H/4, W/4, 128)

    # ---- rearrange 'b (l r c) h w -> b l r c h w' (slice fuses into transpose)
    B, h, w, _ = d.shape
    out = jnp.transpose(d[..., :TD_CHANS], (0, 3, 1, 2))
    out = out.reshape(B, LAYERS, RANK, 3, h, w).astype(jnp.float32)

    # ---- mViT adaptive bins: depth_planes = self.adaptive_bins_layer(x) ----
    patches, _ = _extract_patches(x, MVIT_PATCH)                # (B, Np, 2560)
    pooled = mvit_embed_pool(patches, params["w_patch"], params["b_patch"])  # (B,128)
    bins = pooled @ params["w_bins"] + params["b_bins"]         # (B, layers) plain JAX
    bins = jax.nn.relu(bins) + 0.1
    depth_planes = bins / jnp.sum(bins, axis=-1, keepdims=True)

    return out, depth_planes, state


# ----------------------------------------------------------------------------
# Main
# ----------------------------------------------------------------------------
if __name__ == "__main__":
    key = jax.random.PRNGKey(0)
    kx, kp = jax.random.split(key)

    B, H, W = 2, 32, 32                       # H, W multiples of 16 (mViT patch / /16 enc)
    x = jax.random.normal(kx, (B, IN_CHANS, H, W), jnp.float32)   # NCHW input
    params = init_params(kp)

    fwd = jax.jit(gamma_forward)
    out, depth_planes, state = fwd(params, x)
    jax.block_until_ready((out, depth_planes))

    assert out.shape == (B, LAYERS, RANK, 3, H // 4, W // 4), out.shape
    assert depth_planes.shape == (B, LAYERS), depth_planes.shape
    assert state is None
    assert bool(jnp.all(jnp.isfinite(out)))
    assert bool(jnp.allclose(jnp.sum(depth_planes, axis=-1), 1.0, atol=1e-5))

    print("KERNEL_OK")
</pallas_src>

<mosaic_0001>
module attributes {stable_mosaic.version = 11 : i64} {
  func.func @_mvit_pool_kernel(%arg0: i32, %arg1: memref<2x4x2560xbf16, #tpu.memory_space<vmem>>, %arg2: memref<2560x128xbf16, #tpu.memory_space<vmem>>, %arg3: memref<1x128xf32, #tpu.memory_space<vmem>>, %arg4: memref<2x128xf32, #tpu.memory_space<vmem>>) attributes {dimension_semantics = [#tpu.dimension_semantics<parallel>], iteration_bounds = array<i64: 1>, scalar_prefetch = 0 : i64, scratch_operands = 0 : i64, tpu.core_type = #tpu.core_type<tc>, window_params = [{transform_indices = @transform_0, window_bounds = array<i64: 2, 4, 2560>}, {pipeline_mode = #tpu.pipeline_mode<synchronous>, transform_indices = @transform_1, window_bounds = array<i64: 2560, 128>}, {pipeline_mode = #tpu.pipeline_mode<synchronous>, transform_indices = @transform_2, window_bounds = array<i64: 1, 128>}, {transform_indices = @transform_3, window_bounds = array<i64: 2, 128>}]} {
    %c0 = arith.constant 0 : index
    %c0_0 = arith.constant 0 : index
    %c0_1 = arith.constant 0 : index
    %0 = vector.load %arg1[%c0, %c0_0, %c0_1] : memref<2x4x2560xbf16, #tpu.memory_space<vmem>>, vector<2x4x2560xbf16>
    %1 = vector.shape_cast %0 : vector<2x4x2560xbf16> to vector<8x2560xbf16>
    %c0_2 = arith.constant 0 : index
    %c0_3 = arith.constant 0 : index
    %2 = vector.load %arg2[%c0_2, %c0_3] : memref<2560x128xbf16, #tpu.memory_space<vmem>>, vector<2560x128xbf16>
    %cst = arith.constant dense<0.000000e+00> : vector<8x128xf32>
    %3 = tpu.matmul %1, %2, %cst {dimension_numbers = #tpu.dot_dimension_numbers<[1], [0], [0], [1], [0, 0, 1, 1], [], []>} : vector<8x2560xbf16>, vector<2560x128xbf16>, vector<8x128xf32> -> vector<8x128xf32>
    %c0_4 = arith.constant 0 : index
    %c0_5 = arith.constant 0 : index
    %4 = vector.load %arg3[%c0_4, %c0_5] : memref<1x128xf32, #tpu.memory_space<vmem>>, vector<1x128xf32>
    %5 = vector.broadcast %4 : vector<1x128xf32> to vector<8x128xf32>
    %6 = arith.addf %3, %5 : vector<8x128xf32>
    %cst_6 = arith.constant 0.000000e+00 : f32
    %7 = vector.broadcast %cst_6 : f32 to vector<8x128xf32>
    %8 = arith.maximumf %6, %7 : vector<8x128xf32>
    %9 = vector.shape_cast %8 : vector<8x128xf32> to vector<2x4x128xf32>
    %cst_7 = arith.constant dense<0.000000e+00> : vector<2x128xf32>
    %10 = vector.multi_reduction <add>, %9, %cst_7 [1] : vector<2x4x128xf32> to vector<2x128xf32>
    %cst_8 = arith.constant 2.500000e-01 : f32
    %11 = vector.broadcast %cst_8 : f32 to vector<2x128xf32>
    %12 = arith.mulf %10, %11 : vector<2x128xf32>
    %c0_9 = arith.constant 0 : index
    %c0_10 = arith.constant 0 : index
    %13 = vector.load %arg4[%c0_9, %c0_10] : memref<2x128xf32, #tpu.memory_space<vmem>>, vector<2x128xf32>
    tpu.vector_store %arg4[%c0_9, %c0_10], %12 {strides = array<i32>} : memref<2x128xf32, #tpu.memory_space<vmem>>, vector<2x128xf32>,
    return
  }
  func.func @transform_0(%arg0: i32) -> (i32, i32, i32) {
    %c0_i32 = arith.constant 0 : i32
    %c0_i32_0 = arith.constant 0 : i32
    %c0_i32_1 = arith.constant 0 : i32
    return %arg0, %c0_i32, %c0_i32_0 : i32, i32, i32
  }
  func.func @transform_1(%arg0: i32) -> (i32, i32) {
    %c0_i32 = arith.constant 0 : i32
    %c0_i32_0 = arith.constant 0 : i32
    %c0_i32_1 = arith.constant 0 : i32
    return %c0_i32, %c0_i32_0 : i32, i32
  }
  func.func @transform_2(%arg0: i32) -> (i32, i32) {
    %c0_i32 = arith.constant 0 : i32
    %c0_i32_0 = arith.constant 0 : i32
    %c0_i32_1 = arith.constant 0 : i32
    return %c0_i32, %c0_i32_0 : i32, i32
  }
  func.func @transform_3(%arg0: i32) -> (i32, i32) {
    %c0_i32 = arith.constant 0 : i32
    %c0_i32_0 = arith.constant 0 : i32
    return %arg0, %c0_i32 : i32, i32
  }
}

module attributes {stable_mosaic.version = 11 : i64} {
  func.func @_mm_bias_kernel(%arg0: i32, %arg1: memref<128x160xbf16, #tpu.memory_space<vmem>>, %arg2: memref<160x64xbf16, #tpu.memory_space<vmem>>, %arg3: memref<1x64xf32, #tpu.memory_space<vmem>>, %arg4: memref<128x64xbf16, #tpu.memory_space<vmem>>) attributes {dimension_semantics = [#tpu.dimension_semantics<parallel>], iteration_bounds = array<i64: 1>, scalar_prefetch = 0 : i64, scratch_operands = 0 : i64, tpu.core_type = #tpu.core_type<tc>, window_params = [{transform_indices = @transform_0, window_bounds = array<i64: 128, 160>}, {pipeline_mode = #tpu.pipeline_mode<synchronous>, transform_indices = @transform_1, window_bounds = array<i64: 160, 64>}, {pipeline_mode = #tpu.pipeline_mode<synchronous>, transform_indices = @transform_2, window_bounds = array<i64: 1, 64>}, {transform_indices = @transform_3, window_bounds = array<i64: 128, 64>}]} {
    %c0 = arith.constant 0 : index
    %c0_0 = arith.constant 0 : index
    %0 = vector.load %arg1[%c0, %c0_0] : memref<128x160xbf16, #tpu.memory_space<vmem>>, vector<128x160xbf16>
    %c0_1 = arith.constant 0 : index
    %c0_2 = arith.constant 0 : index
    %1 = vector.load %arg2[%c0_1, %c0_2] : memref<160x64xbf16, #tpu.memory_space<vmem>>, vector<160x64xbf16>
    %cst = arith.constant dense<0.000000e+00> : vector<128x64xf32>
    %2 = tpu.matmul %0, %1, %cst {dimension_numbers = #tpu.dot_dimension_numbers<[1], [0], [0], [1], [0, 0, 1, 1], [], []>} : vector<128x160xbf16>, vector<160x64xbf16>, vector<128x64xf32> -> vector<128x64xf32>
    %c0_3 = arith.constant 0 : index
    %c0_4 = arith.constant 0 : index
    %3 = vector.load %arg3[%c0_3, %c0_4] : memref<1x64xf32, #tpu.memory_space<vmem>>, vector<1x64xf32>
    %4 = vector.broadcast %3 : vector<1x64xf32> to vector<128x64xf32>
    %5 = arith.addf %2, %4 : vector<128x64xf32>
    %cst_5 = arith.constant 0.000000e+00 : f32
    %6 = vector.broadcast %cst_5 : f32 to vector<128x64xf32>
    %7 = arith.maximumf %5, %6 : vector<128x64xf32>
    %8 = arith.truncf %7 : vector<128x64xf32> to vector<128x64xbf16>
    %c0_6 = arith.constant 0 : index
    %c0_7 = arith.constant 0 : index
    %9 = vector.load %arg4[%c0_6, %c0_7] : memref<128x64xbf16, #tpu.memory_space<vmem>>, vector<128x64xbf16>
    tpu.vector_store %arg4[%c0_6, %c0_7], %8 {strides = array<i32>} : memref<128x64xbf16, #tpu.memory_space<vmem>>, vector<128x64xbf16>,
    return
  }
  func.func @transform_0(%arg0: i32) -> (i32, i32) {
    %c0_i32 = arith.constant 0 : i32
    %c0_i32_0 = arith.constant 0 : i32
    return %arg0, %c0_i32 : i32, i32
  }
  func.func @transform_1(%arg0: i32) -> (i32, i32) {
    %c0_i32 = arith.constant 0 : i32
    %c0_i32_0 = arith.constant 0 : i32
    %c0_i32_1 = arith.constant 0 : i32
    return %c0_i32, %c0_i32_0 : i32, i32
  }
  func.func @transform_2(%arg0: i32) -> (i32, i32) {
    %c0_i32 = arith.constant 0 : i32
    %c0_i32_0 = arith.constant 0 : i32
    %c0_i32_1 = arith.constant 0 : i32
    return %c0_i32, %c0_i32_0 : i32, i32
  }
  func.func @transform_3(%arg0: i32) -> (i32, i32) {
    %c0_i32 = arith.constant 0 : i32
    %c0_i32_0 = arith.constant 0 : i32
    return %arg0, %c0_i32 : i32, i32
  }
}

module attributes {stable_mosaic.version = 11 : i64} {
  func.func @_mm_bias_kernel(%arg0: i32, %arg1: memref<32x256xbf16, #tpu.memory_space<vmem>>, %arg2: memref<256x192xbf16, #tpu.memory_space<vmem>>, %arg3: memref<1x192xf32, #tpu.memory_space<vmem>>, %arg4: memref<32x192xbf16, #tpu.memory_space<vmem>>) attributes {dimension_semantics = [#tpu.dimension_semantics<parallel>], iteration_bounds = array<i64: 1>, scalar_prefetch = 0 : i64, scratch_operands = 0 : i64, tpu.core_type = #tpu.core_type<tc>, window_params = [{transform_indices = @transform_0, window_bounds = array<i64: 32, 256>}, {pipeline_mode = #tpu.pipeline_mode<synchronous>, transform_indices = @transform_1, window_bounds = array<i64: 256, 192>}, {pipeline_mode = #tpu.pipeline_mode<synchronous>, transform_indices = @transform_2, window_bounds = array<i64: 1, 192>}, {transform_indices = @transform_3, window_bounds = array<i64: 32, 192>}]} {
    %c0 = arith.constant 0 : index
    %c0_0 = arith.constant 0 : index
    %0 = vector.load %arg1[%c0, %c0_0] : memref<32x256xbf16, #tpu.memory_space<vmem>>, vector<32x256xbf16>
    %c0_1 = arith.constant 0 : index
    %c0_2 = arith.constant 0 : index
    %1 = vector.load %arg2[%c0_1, %c0_2] : memref<256x192xbf16, #tpu.memory_space<vmem>>, vector<256x192xbf16>
    %cst = arith.constant dense<0.000000e+00> : vector<32x192xf32>
    %2 = tpu.matmul %0, %1, %cst {dimension_numbers = #tpu.dot_dimension_numbers<[1], [0], [0], [1], [0, 0, 1, 1], [], []>} : vector<32x256xbf16>, vector<256x192xbf16>, vector<32x192xf32> -> vector<32x192xf32>
    %c0_3 = arith.constant 0 : index
    %c0_4 = arith.constant 0 : index
    %3 = vector.load %arg3[%c0_3, %c0_4] : memref<1x192xf32, #tpu.memory_space<vmem>>, vector<1x192xf32>
    %4 = vector.broadcast %3 : vector<1x192xf32> to vector<32x192xf32>
    %5 = arith.addf %2, %4 : vector<32x192xf32>
    %cst_5 = arith.constant 0.000000e+00 : f32
    %6 = vector.broadcast %cst_5 : f32 to vector<32x192xf32>
    %7 = arith.maximumf %5, %6 : vector<32x192xf32>
    %8 = arith.truncf %7 : vector<32x192xf32> to vector<32x192xbf16>
    %c0_6 = arith.constant 0 : index
    %c0_7 = arith.constant 0 : index
    %9 = vector.load %arg4[%c0_6, %c0_7] : memref<32x192xbf16, #tpu.memory_space<vmem>>, vector<32x192xbf16>
    tpu.vector_store %arg4[%c0_6, %c0_7], %8 {strides = array<i32>} : memref<32x192xbf16, #tpu.memory_space<vmem>>, vector<32x192xbf16>,
    return
  }
  func.func @transform_0(%arg0: i32) -> (i32, i32) {
    %c0_i32 = arith.constant 0 : i32
    %c0_i32_0 = arith.constant 0 : i32
    return %arg0, %c0_i32 : i32, i32
  }
  func.func @transform_1(%arg0: i32) -> (i32, i32) {
    %c0_i32 = arith.constant 0 : i32
    %c0_i32_0 = arith.constant 0 : i32
    %c0_i32_1 = arith.constant 0 : i32
    return %c0_i32, %c0_i32_0 : i32, i32
  }
  func.func @transform_2(%arg0: i32) -> (i32, i32) {
    %c0_i32 = arith.constant 0 : i32
    %c0_i32_0 = arith.constant 0 : i32
    %c0_i32_1 = arith.constant 0 : i32
    return %c0_i32, %c0_i32_0 : i32, i32
  }
  func.func @transform_3(%arg0: i32) -> (i32, i32) {
    %c0_i32 = arith.constant 0 : i32
    %c0_i32_0 = arith.constant 0 : i32
    return %arg0, %c0_i32 : i32, i32
  }
}

module attributes {stable_mosaic.version = 11 : i64} {
  func.func @_mm_bias_kernel(%arg0: i32, %arg1: memref<8x768xbf16, #tpu.memory_space<vmem>>, %arg2: memref<768x384xbf16, #tpu.memory_space<vmem>>, %arg3: memref<1x384xf32, #tpu.memory_space<vmem>>, %arg4: memref<8x384xbf16, #tpu.memory_space<vmem>>) attributes {dimension_semantics = [#tpu.dimension_semantics<parallel>], iteration_bounds = array<i64: 1>, scalar_prefetch = 0 : i64, scratch_operands = 0 : i64, tpu.core_type = #tpu.core_type<tc>, window_params = [{transform_indices = @transform_0, window_bounds = array<i64: 8, 768>}, {pipeline_mode = #tpu.pipeline_mode<synchronous>, transform_indices = @transform_1, window_bounds = array<i64: 768, 384>}, {pipeline_mode = #tpu.pipeline_mode<synchronous>, transform_indices = @transform_2, window_bounds = array<i64: 1, 384>}, {transform_indices = @transform_3, window_bounds = array<i64: 8, 384>}]} {
    %c0 = arith.constant 0 : index
    %c0_0 = arith.constant 0 : index
    %0 = vector.load %arg1[%c0, %c0_0] : memref<8x768xbf16, #tpu.memory_space<vmem>>, vector<8x768xbf16>
    %c0_1 = arith.constant 0 : index
    %c0_2 = arith.constant 0 : index
    %1 = vector.load %arg2[%c0_1, %c0_2] : memref<768x384xbf16, #tpu.memory_space<vmem>>, vector<768x384xbf16>
    %cst = arith.constant dense<0.000000e+00> : vector<8x384xf32>
    %2 = tpu.matmul %0, %1, %cst {dimension_numbers = #tpu.dot_dimension_numbers<[1], [0], [0], [1], [0, 0, 1, 1], [], []>} : vector<8x768xbf16>, vector<768x384xbf16>, vector<8x384xf32> -> vector<8x384xf32>
    %c0_3 = arith.constant 0 : index
    %c0_4 = arith.constant 0 : index
    %3 = vector.load %arg3[%c0_3, %c0_4] : memref<1x384xf32, #tpu.memory_space<vmem>>, vector<1x384xf32>
    %4 = vector.broadcast %3 : vector<1x384xf32> to vector<8x384xf32>
    %5 = arith.addf %2, %4 : vector<8x384xf32>
    %cst_5 = arith.constant 0.000000e+00 : f32
    %6 = vector.broadcast %cst_5 : f32 to vector<8x384xf32>
    %7 = arith.maximumf %5, %6 : vector<8x384xf32>
    %8 = arith.truncf %7 : vector<8x384xf32> to vector<8x384xbf16>
    %c0_6 = arith.constant 0 : index
    %c0_7 = arith.constant 0 : index
    %9 = vector.load %arg4[%c0_6, %c0_7] : memref<8x384xbf16, #tpu.memory_space<vmem>>, vector<8x384xbf16>
    tpu.vector_store %arg4[%c0_6, %c0_7], %8 {strides = array<i32>} : memref<8x384xbf16, #tpu.memory_space<vmem>>, vector<8x384xbf16>,
    return
  }
  func.func @transform_0(%arg0: i32) -> (i32, i32) {
    %c0_i32 = arith.constant 0 : i32
    %c0_i32_0 = arith.constant 0 : i32
    return %arg0, %c0_i32 : i32, i32
  }
  func.func @transform_1(%arg0: i32) -> (i32, i32) {
    %c0_i32 = arith.constant 0 : i32
    %c0_i32_0 = arith.constant 0 : i32
    %c0_i32_1 = arith.constant 0 : i32
    return %c0_i32, %c0_i32_0 : i32, i32
  }
  func.func @transform_2(%arg0: i32) -> (i32, i32) {
    %c0_i32 = arith.constant 0 : i32
    %c0_i32_0 = arith.constant 0 : i32
    %c0_i32_1 = arith.constant 0 : i32
    return %c0_i32, %c0_i32_0 : i32, i32
  }
  func.func @transform_3(%arg0: i32) -> (i32, i32) {
    %c0_i32 = arith.constant 0 : i32
    %c0_i32_0 = arith.constant 0 : i32
    return %arg0, %c0_i32 : i32, i32
  }
}

module attributes {stable_mosaic.version = 11 : i64} {
  func.func @_mm_bias_kernel(%arg0: i32, %arg1: memref<8x384xbf16, #tpu.memory_space<vmem>>, %arg2: memref<384x1024xbf16, #tpu.memory_space<vmem>>, %arg3: memref<1x1024xf32, #tpu.memory_space<vmem>>, %arg4: memref<8x1024xbf16, #tpu.memory_space<vmem>>) attributes {dimension_semantics = [#tpu.dimension_semantics<parallel>], iteration_bounds = array<i64: 1>, scalar_prefetch = 0 : i64, scratch_operands = 0 : i64, tpu.core_type = #tpu.core_type<tc>, window_params = [{transform_indices = @transform_0, window_bounds = array<i64: 8, 384>}, {pipeline_mode = #tpu.pipeline_mode<synchronous>, transform_indices = @transform_1, window_bounds = array<i64: 384, 1024>}, {pipeline_mode = #tpu.pipeline_mode<synchronous>, transform_indices = @transform_2, window_bounds = array<i64: 1, 1024>}, {transform_indices = @transform_3, window_bounds = array<i64: 8, 1024>}]} {
    %c0 = arith.constant 0 : index
    %c0_0 = arith.constant 0 : index
    %0 = vector.load %arg1[%c0, %c0_0] : memref<8x384xbf16, #tpu.memory_space<vmem>>, vector<8x384xbf16>
    %c0_1 = arith.constant 0 : index
    %c0_2 = arith.constant 0 : index
    %1 = vector.load %arg2[%c0_1, %c0_2] : memref<384x1024xbf16, #tpu.memory_space<vmem>>, vector<384x1024xbf16>
    %cst = arith.constant dense<0.000000e+00> : vector<8x1024xf32>
    %2 = tpu.matmul %0, %1, %cst {dimension_numbers = #tpu.dot_dimension_numbers<[1], [0], [0], [1], [0, 0, 1, 1], [], []>} : vector<8x384xbf16>, vector<384x1024xbf16>, vector<8x1024xf32> -> vector<8x1024xf32>
    %c0_3 = arith.constant 0 : index
    %c0_4 = arith.constant 0 : index
    %3 = vector.load %arg3[%c0_3, %c0_4] : memref<1x1024xf32, #tpu.memory_space<vmem>>, vector<1x1024xf32>
    %4 = vector.broadcast %3 : vector<1x1024xf32> to vector<8x1024xf32>
    %5 = arith.addf %2, %4 : vector<8x1024xf32>
    %cst_5 = arith.constant 0.000000e+00 : f32
    %6 = vector.broadcast %cst_5 : f32 to vector<8x1024xf32>
    %7 = arith.maximumf %5, %6 : vector<8x1024xf32>
    %8 = arith.truncf %7 : vector<8x1024xf32> to vector<8x1024xbf16>
    %c0_6 = arith.constant 0 : index
    %c0_7 = arith.constant 0 : index
    %9 = vector.load %arg4[%c0_6, %c0_7] : memref<8x1024xbf16, #tpu.memory_space<vmem>>, vector<8x1024xbf16>
    tpu.vector_store %arg4[%c0_6, %c0_7], %8 {strides = array<i32>} : memref<8x1024xbf16, #tpu.memory_space<vmem>>, vector<8x1024xbf16>,
    return
  }
  func.func @transform_0(%arg0: i32) -> (i32, i32) {
    %c0_i32 = arith.constant 0 : i32
    %c0_i32_0 = arith.constant 0 : i32
    return %arg0, %c0_i32 : i32, i32
  }
  func.func @transform_1(%arg0: i32) -> (i32, i32) {
    %c0_i32 = arith.constant 0 : i32
    %c0_i32_0 = arith.constant 0 : i32
    %c0_i32_1 = arith.constant 0 : i32
    return %c0_i32, %c0_i32_0 : i32, i32
  }
  func.func @transform_2(%arg0: i32) -> (i32, i32) {
    %c0_i32 = arith.constant 0 : i32
    %c0_i32_0 = arith.constant 0 : i32
    %c0_i32_1 = arith.constant 0 : i32
    return %c0_i32, %c0_i32_0 : i32, i32
  }
  func.func @transform_3(%arg0: i32) -> (i32, i32) {
    %c0_i32 = arith.constant 0 : i32
    %c0_i32_0 = arith.constant 0 : i32
    return %arg0, %c0_i32 : i32, i32
  }
}

module attributes {stable_mosaic.version = 11 : i64} {
  func.func @_decoder_kernel(%arg0: i32, %arg1: i32, %arg2: memref<1x2x2x1024xbf16, #tpu.memory_space<vmem>>, %arg3: memref<1x2x2x384xbf16, #tpu.memory_space<vmem>>, %arg4: memref<1x4x4x192xbf16, #tpu.memory_space<vmem>>, %arg5: memref<1x8x8x64xbf16, #tpu.memory_space<vmem>>, %arg6: memref<1024x384xbf16, #tpu.memory_space<vmem>>, %arg7: memref<1x384xf32, #tpu.memory_space<vmem>>, %arg8: memref<384x192xbf16, #tpu.memory_space<vmem>>, %arg9: memref<1x192xf32, #tpu.memory_space<vmem>>, %arg10: memref<192x64xbf16, #tpu.memory_space<vmem>>, %arg11: memref<1x64xf32, #tpu.memory_space<vmem>>, %arg12: memref<64x128xbf16, #tpu.memory_space<vmem>>, %arg13: memref<1x128xf32, #tpu.memory_space<vmem>>, %arg14: memref<1x8x8x128xbf16, #tpu.memory_space<vmem>>) attributes {dimension_semantics = [#tpu.dimension_semantics<parallel>, #tpu.dimension_semantics<parallel>], iteration_bounds = array<i64: 2, 1>, scalar_prefetch = 0 : i64, scratch_operands = 0 : i64, tpu.core_type = #tpu.core_type<tc>, window_params = [{transform_indices = @transform_0, window_bounds = array<i64: 1, 2, 2, 1024>}, {transform_indices = @transform_1, window_bounds = array<i64: 1, 2, 2, 384>}, {transform_indices = @transform_2, window_bounds = array<i64: 1, 4, 4, 192>}, {transform_indices = @transform_3, window_bounds = array<i64: 1, 8, 8, 64>}, {pipeline_mode = #tpu.pipeline_mode<synchronous>, transform_indices = @transform_4, window_bounds = array<i64: 1024, 384>}, {pipeline_mode = #tpu.pipeline_mode<synchronous>, transform_indices = @transform_5, window_bounds = array<i64: 1, 384>}, {pipeline_mode = #tpu.pipeline_mode<synchronous>, transform_indices = @transform_6, window_bounds = array<i64: 384, 192>}, {pipeline_mode = #tpu.pipeline_mode<synchronous>, transform_indices = @transform_7, window_bounds = array<i64: 1, 192>}, {pipeline_mode = #tpu.pipeline_mode<synchronous>, transform_indices = @transform_8, window_bounds = array<i64: 192, 64>}, {pipeline_mode = #tpu.pipeline_mode<synchronous>, transform_indices = @transform_9, window_bounds = array<i64: 1, 64>}, {pipeline_mode = #tpu.pipeline_mode<synchronous>, transform_indices = @transform_10, window_bounds = array<i64: 64, 128>}, {pipeline_mode = #tpu.pipeline_mode<synchronous>, transform_indices = @transform_11, window_bounds = array<i64: 1, 128>}, {transform_indices = @transform_12, window_bounds = array<i64: 1, 8, 8, 128>}]} {
    %c0 = arith.constant 0 : index
    %c0_0 = arith.constant 0 : index
    %c0_1 = arith.constant 0 : index
    %c0_2 = arith.constant 0 : index
    %0 = vector.load %arg2[%c0, %c0_0, %c0_1, %c0_2] : memref<1x2x2x1024xbf16, #tpu.memory_space<vmem>>, vector<1x2x2x1024xbf16>
    %1 = vector.shape_cast %0 : vector<1x2x2x1024xbf16> to vector<2x2x1024xbf16>
    %2 = vector.shape_cast %1 : vector<2x2x1024xbf16> to vector<4x1024xbf16>
    %c0_3 = arith.constant 0 : index
    %c0_4 = arith.constant 0 : index
    %3 = vector.load %arg6[%c0_3, %c0_4] : memref<1024x384xbf16, #tpu.memory_space<vmem>>, vector<1024x384xbf16>
    %cst = arith.constant dense<0.000000e+00> : vector<4x384xf32>
    %4 = tpu.matmul %2, %3, %cst {dimension_numbers = #tpu.dot_dimension_numbers<[1], [0], [0], [1], [0, 0, 1, 1], [], []>} : vector<4x1024xbf16>, vector<1024x384xbf16>, vector<4x384xf32> -> vector<4x384xf32>
    %c0_5 = arith.constant 0 : index
    %c0_6 = arith.constant 0 : index
    %5 = vector.load %arg7[%c0_5, %c0_6] : memref<1x384xf32, #tpu.memory_space<vmem>>, vector<1x384xf32>
    %6 = vector.broadcast %5 : vector<1x384xf32> to vector<4x384xf32>
    %7 = arith.addf %4, %6 : vector<4x384xf32>
    %c0_7 = arith.constant 0 : index
    %c0_8 = arith.constant 0 : index
    %c0_9 = arith.constant 0 : index
    %c0_10 = arith.constant 0 : index
    %8 = vector.load %arg3[%c0_7, %c0_8, %c0_9, %c0_10] : memref<1x2x2x384xbf16, #tpu.memory_space<vmem>>, vector<1x2x2x384xbf16>
    %9 = vector.shape_cast %8 : vector<1x2x2x384xbf16> to vector<2x2x384xbf16>
    %10 = vector.shape_cast %9 : vector<2x2x384xbf16> to vector<4x384xbf16>
    %11 = arith.extf %10 : vector<4x384xbf16> to vector<4x384xf32>
    %12 = arith.addf %7, %11 : vector<4x384xf32>
    %cst_11 = arith.constant 0.000000e+00 : f32
    %13 = vector.broadcast %cst_11 : f32 to vector<4x384xf32>
    %14 = arith.maximumf %12, %13 : vector<4x384xf32>
    %15 = arith.truncf %14 : vector<4x384xf32> to vector<4x384xbf16>
    %c0_12 = arith.constant 0 : index
    %c0_13 = arith.constant 0 : index
    %16 = vector.load %arg8[%c0_12, %c0_13] : memref<384x192xbf16, #tpu.memory_space<vmem>>, vector<384x192xbf16>
    %cst_14 = arith.constant dense<0.000000e+00> : vector<4x192xf32>
    %17 = tpu.matmul %15, %16, %cst_14 {dimension_numbers = #tpu.dot_dimension_numbers<[1], [0], [0], [1], [0, 0, 1, 1], [], []>} : vector<4x384xbf16>, vector<384x192xbf16>, vector<4x192xf32> -> vector<4x192xf32>
    %c0_15 = arith.constant 0 : index
    %c0_16 = arith.constant 0 : index
    %18 = vector.load %arg9[%c0_15, %c0_16] : memref<1x192xf32, #tpu.memory_space<vmem>>, vector<1x192xf32>
    %19 = vector.broadcast %18 : vector<1x192xf32> to vector<4x192xf32>
    %20 = arith.addf %17, %19 : vector<4x192xf32>
    %21 = vector.shape_cast %20 : vector<4x192xf32> to vector<2x2x192xf32>
    %22 = vector.shape_cast %21 : vector<2x2x192xf32> to vector<2x2x1x192xf32>
    %23 = vector.shape_cast %22 : vector<2x2x1x192xf32> to vector<2x2x1x192xf32>
    %24 = vector.broadcast %23 : vector<2x2x1x192xf32> to vector<2x2x2x192xf32>
    %25 = vector.shape_cast %24 : vector<2x2x2x192xf32> to vector<2x4x192xf32>
    %26 = vector.shape_cast %25 : vector<2x4x192xf32> to vector<2x1x4x192xf32>
    %27 = vector.shape_cast %26 : vector<2x1x4x192xf32> to vector<2x1x4x192xf32>
    %28 = vector.broadcast %27 : vector<2x1x4x192xf32> to vector<2x2x4x192xf32>
    %29 = vector.shape_cast %28 : vector<2x2x4x192xf32> to vector<4x4x192xf32>
    %30 = vector.shape_cast %29 : vector<4x4x192xf32> to vector<16x192xf32>
    %c0_17 = arith.constant 0 : index
    %c0_18 = arith.constant 0 : index
    %c0_19 = arith.constant 0 : index
    %c0_20 = arith.constant 0 : index
    %31 = vector.load %arg4[%c0_17, %c0_18, %c0_19, %c0_20] : memref<1x4x4x192xbf16, #tpu.memory_space<vmem>>, vector<1x4x4x192xbf16>
    %32 = vector.shape_cast %31 : vector<1x4x4x192xbf16> to vector<4x4x192xbf16>
    %33 = vector.shape_cast %32 : vector<4x4x192xbf16> to vector<16x192xbf16>
    %34 = arith.extf %33 : vector<16x192xbf16> to vector<16x192xf32>
    %35 = arith.addf %30, %34 : vector<16x192xf32>
    %cst_21 = arith.constant 0.000000e+00 : f32
    %36 = vector.broadcast %cst_21 : f32 to vector<16x192xf32>
    %37 = arith.maximumf %35, %36 : vector<16x192xf32>
    %38 = arith.truncf %37 : vector<16x192xf32> to vector<16x192xbf16>
    %c0_22 = arith.constant 0 : index
    %c0_23 = arith.constant 0 : index
    %39 = vector.load %arg10[%c0_22, %c0_23] : memref<192x64xbf16, #tpu.memory_space<vmem>>, vector<192x64xbf16>
    %cst_24 = arith.constant dense<0.000000e+00> : vector<16x64xf32>
    %40 = tpu.matmul %38, %39, %cst_24 {dimension_numbers = #tpu.dot_dimension_numbers<[1], [0], [0], [1], [0, 0, 1, 1], [], []>} : vector<16x192xbf16>, vector<192x64xbf16>, vector<16x64xf32> -> vector<16x64xf32>
    %c0_25 = arith.constant 0 : index
    %c0_26 = arith.constant 0 : index
    %41 = vector.load %arg11[%c0_25, %c0_26] : memref<1x64xf32, #tpu.memory_space<vmem>>, vector<1x64xf32>
    %42 = vector.broadcast %41 : vector<1x64xf32> to vector<16x64xf32>
    %43 = arith.addf %40, %42 : vector<16x64xf32>
    %44 = vector.shape_cast %43 : vector<16x64xf32> to vector<4x4x64xf32>
    %45 = vector.shape_cast %44 : vector<4x4x64xf32> to vector<4x4x1x64xf32>
    %46 = vector.shape_cast %45 : vector<4x4x1x64xf32> to vector<4x4x1x64xf32>
    %47 = vector.broadcast %46 : vector<4x4x1x64xf32> to vector<4x4x2x64xf32>
    %48 = vector.shape_cast %47 : vector<4x4x2x64xf32> to vector<4x8x64xf32>
    %49 = vector.shape_cast %48 : vector<4x8x64xf32> to vector<4x1x8x64xf32>
    %50 = vector.shape_cast %49 : vector<4x1x8x64xf32> to vector<4x1x8x64xf32>
    %51 = vector.broadcast %50 : vector<4x1x8x64xf32> to vector<4x2x8x64xf32>
    %52 = vector.shape_cast %51 : vector<4x2x8x64xf32> to vector<8x8x64xf32>
    %53 = vector.shape_cast %52 : vector<8x8x64xf32> to vector<64x64xf32>
    %c0_27 = arith.constant 0 : index
    %c0_28 = arith.constant 0 : index
    %c0_29 = arith.constant 0 : index
    %c0_30 = arith.constant 0 : index
    %54 = vector.load %arg5[%c0_27, %c0_28, %c0_29, %c0_30] : memref<1x8x8x64xbf16, #tpu.memory_space<vmem>>, vector<1x8x8x64xbf16>
    %55 = vector.shape_cast %54 : vector<1x8x8x64xbf16> to vector<8x8x64xbf16>
    %56 = vector.shape_cast %55 : vector<8x8x64xbf16> to vector<64x64xbf16>
    %57 = arith.extf %56 : vector<64x64xbf16> to vector<64x64xf32>
    %58 = arith.addf %53, %57 : vector<64x64xf32>
    %cst_31 = arith.constant 0.000000e+00 : f32
    %59 = vector.broadcast %cst_31 : f32 to vector<64x64xf32>
    %60 = arith.maximumf %58, %59 : vector<64x64xf32>
    %61 = arith.truncf %60 : vector<64x64xf32> to vector<64x64xbf16>
    %c0_32 = arith.constant 0 : index
    %c0_33 = arith.constant 0 : index
    %62 = vector.load %arg12[%c0_32, %c0_33] : memref<64x128xbf16, #tpu.memory_space<vmem>>, vector<64x128xbf16>
    %cst_34 = arith.constant dense<0.000000e+00> : vector<64x128xf32>
    %63 = tpu.matmul %61, %62, %cst_34 {dimension_numbers = #tpu.dot_dimension_numbers<[1], [0], [0], [1], [0, 0, 1, 1], [], []>} : vector<64x64xbf16>, vector<64x128xbf16>, vector<64x128xf32> -> vector<64x128xf32>
    %c0_35 = arith.constant 0 : index
    %c0_36 = arith.constant 0 : index
    %64 = vector.load %arg13[%c0_35, %c0_36] : memref<1x128xf32, #tpu.memory_space<vmem>>, vector<1x128xf32>
    %65 = vector.broadcast %64 : vector<1x128xf32> to vector<64x128xf32>
    %66 = arith.addf %63, %65 : vector<64x128xf32>
    %67 = vector.shape_cast %66 : vector<64x128xf32> to vector<8x8x128xf32>
    %68 = arith.truncf %67 : vector<8x8x128xf32> to vector<8x8x128xbf16>
    %c0_37 = arith.constant 0 : index
    %c0_38 = arith.constant 0 : index
    %c0_39 = arith.constant 0 : index
    %c0_40 = arith.constant 0 : index
    %69 = vector.load %arg14[%c0_37, %c0_38, %c0_39, %c0_40] : memref<1x8x8x128xbf16, #tpu.memory_space<vmem>>, vector<1x8x8x128xbf16>
    %70 = vector.shape_cast %69 : vector<1x8x8x128xbf16> to vector<8x8x128xbf16>
    %71 = vector.shape_cast %68 : vector<8x8x128xbf16> to vector<1x8x8x128xbf16>
    tpu.vector_store %arg14[%c0_37, %c0_38, %c0_39, %c0_40], %71 {strides = array<i32>} : memref<1x8x8x128xbf16, #tpu.memory_space<vmem>>, vector<1x8x8x128xbf16>,
    return
  }
  func.func @transform_0(%arg0: i32, %arg1: i32) -> (i32, i32, i32, i32) {
    %c0_i32 = arith.constant 0 : i32
    %c0_i32_0 = arith.constant 0 : i32
    %c0_i32_1 = arith.constant 0 : i32
    return %arg0, %arg1, %c0_i32, %c0_i32_0 : i32, i32, i32, i32
  }
  func.func @transform_1(%arg0: i32, %arg1: i32) -> (i32, i32, i32, i32) {
    %c0_i32 = arith.constant 0 : i32
    %c0_i32_0 = arith.constant 0 : i32
    %c0_i32_1 = arith.constant 0 : i32
    return %arg0, %arg1, %c0_i32, %c0_i32_0 : i32, i32, i32, i32
  }
  func.func @transform_2(%arg0: i32, %arg1: i32) -> (i32, i32, i32, i32) {
    %c0_i32 = arith.constant 0 : i32
    %c0_i32_0 = arith.constant 0 : i32
    %c0_i32_1 = arith.constant 0 : i32
    return %arg0, %arg1, %c0_i32, %c0_i32_0 : i32, i32, i32, i32
  }
  func.func @transform_3(%arg0: i32, %arg1: i32) -> (i32, i32, i32, i32) {
    %c0_i32 = arith.constant 0 : i32
    %c0_i32_0 = arith.constant 0 : i32
    %c0_i32_1 = arith.constant 0 : i32
    return %arg0, %arg1, %c0_i32, %c0_i32_0 : i32, i32, i32, i32
  }
  func.func @transform_4(%arg0: i32, %arg1: i32) -> (i32, i32) {
    %c0_i32 = arith.constant 0 : i32
    %c0_i32_0 = arith.constant 0 : i32
    %c0_i32_1 = arith.constant 0 : i32
    return %c0_i32, %c0_i32_0 : i32, i32
  }
  func.func @transform_5(%arg0: i32, %arg1: i32) -> (i32, i32) {
    %c0_i32 = arith.constant 0 : i32
    %c0_i32_0 = arith.constant 0 : i32
    %c0_i32_1 = arith.constant 0 : i32
    return %c0_i32, %c0_i32_0 : i32, i32
  }
  func.func @transform_6(%arg0: i32, %arg1: i32) -> (i32, i32) {
    %c0_i32 = arith.constant 0 : i32
    %c0_i32_0 = arith.constant 0 : i32
    %c0_i32_1 = arith.constant 0 : i32
    return %c0_i32, %c0_i32_0 : i32, i32
  }
  func.func @transform_7(%arg0: i32, %arg1: i32) -> (i32, i32) {
    %c0_i32 = arith.constant 0 : i32
    %c0_i32_0 = arith.constant 0 : i32
    %c0_i32_1 = arith.constant 0 : i32
    return %c0_i32, %c0_i32_0 : i32, i32
  }
  func.func @transform_8(%arg0: i32, %arg1: i32) -> (i32, i32) {
    %c0_i32 = arith.constant 0 : i32
    %c0_i32_0 = arith.constant 0 : i32
    %c0_i32_1 = arith.constant 0 : i32
    return %c0_i32, %c0_i32_0 : i32, i32
  }
  func.func @transform_9(%arg0: i32, %arg1: i32) -> (i32, i32) {
    %c0_i32 = arith.constant 0 : i32
    %c0_i32_0 = arith.constant 0 : i32
    %c0_i32_1 = arith.constant 0 : i32
    return %c0_i32, %c0_i32_0 : i32, i32
  }
  func.func @transform_10(%arg0: i32, %arg1: i32) -> (i32, i32) {
    %c0_i32 = arith.constant 0 : i32
    %c0_i32_0 = arith.constant 0 : i32
    %c0_i32_1 = arith.constant 0 : i32
    return %c0_i32, %c0_i32_0 : i32, i32
  }
  func.func @transform_11(%arg0: i32, %arg1: i32) -> (i32, i32) {
    %c0_i32 = arith.constant 0 : i32
    %c0_i32_0 = arith.constant 0 : i32
    %c0_i32_1 = arith.constant 0 : i32
    return %c0_i32, %c0_i32_0 : i32, i32
  }
  func.func @transform_12(%arg0: i32, %arg1: i32) -> (i32, i32, i32, i32) {
    %c0_i32 = arith.constant 0 : i32
    %c0_i32_0 = arith.constant 0 : i32
    %c0_i32_1 = arith.constant 0 : i32
    return %arg0, %arg1, %c0_i32, %c0_i32_0 : i32, i32, i32, i32
  }
}

</mosaic_0001>

<bundles_post_ra>
// kernel: gamma_forward.11
= control target key start
LH: loop header
LB: loop body
LE: loop exit
PB: predicated region body
PF: predicated region fallthrough
CT: control target
= control target key end

     0   :  { %v2420_v23 = vmov 1983009808   ;;  %v367_v25 = vlaneseq  ;;  %vm1836_vm0 = vcmask 1043456   ;;  %vm1855_vm1 = vcmask 1041409   ;;  %s2969_s1 = inlined_call_operand.vmem [shape: bf16[2560,128], index: 1, kind: input, shape index: {}]   ;;  %s2970_s0 = inlined_call_operand.vmem [shape: bf16[2,4,2560], index: 0, kind: input, shape index: {}]   ;;  %s2971_s2 = inlined_call_operand.vmem [shape: f32[1,128], index: 2, kind: input, shape index: {}]   ;;  %s2972_s3 = inlined_call_operand.vmem [shape: f32[2,128], index: 3, kind: output, shape index: {}]  }
   0x1   :  { %v2245_v0 = vld [vmem:[%s2969_s1 + $0x40] sm:$0xff]   ;;  %v2249_v4 = vld [vmem:[%s2969_s1 + $0x48] sm:$0xff]   ;;  %v2253_v8 = vld [vmem:[%s2969_s1 + $0x50] sm:$0xff]   ;;  %v365_v24 = vunpack.c.l.s4 %v2420_v23 }
   0x2   :  { %v2246_v1 = vld [vmem:[%s2969_s1 + $0xc0] sm:$0xff]   ;;  %2024 = vmatprep.subr.bf16.mxu0 %v2245_v0  ;;  %v2250_v5 = vld [vmem:[%s2969_s1 + $0xc8] sm:$0xff]   ;;  %v2254_v9 = vld [vmem:[%s2969_s1 + $0xd0] sm:$0xff]   ;;  %v368_v31 = vshrl.u32 %v367_v25, 7 }
   0x3   :  { %v2247_v2 = vld [vmem:[%s2969_s1] sm:$0xff]   ;;  %2046 = vmatprep.subr.bf16.mxu1 %v2246_v1  ;;  %v2251_v6 = vld [vmem:[%s2969_s1 + $0x8] sm:$0xff]   ;;  %v2255_v10 = vld [vmem:[%s2969_s1 + $0x10] sm:$0xff]   ;;  %v366_v30 = vunpack.c.0.s8 %v365_v24 }
   0x4   :  { %v2248_v3 = vld [vmem:[%s2969_s1 + $0x80] sm:$0xff]   ;;  %2025 = vmatpush3.bf16.msra.mxu0 %v2247_v2  ;;  %v2252_v7 = vld [vmem:[%s2969_s1 + $0x88] sm:$0xff]   ;;  %v2256_v11 = vld [vmem:[%s2969_s1 + $0x90] sm:$0xff]  }
   0x5   :  { %2047 = vmatpush3.bf16.msra.mxu1 %v2248_v3  ;;  %2026 = vmatprep.subr.bf16.mxu0 %v2249_v4  ;;  %v2257_v12 = vld [vmem:[%s2969_s1 + $0x58] sm:$0xff]   ;;  %v2261_v16 = vld [vmem:[%s2969_s1 + $0x60] sm:$0xff]   ;;  %v2265_v20 = vld [vmem:[%s2969_s1 + $0x68] sm:$0xff]   ;;  %v2534_v36 = vsub.s32 %v366_v30, %v368_v31 }
   0x6   :  { %2048 = vmatprep.subr.bf16.mxu1 %v2250_v5  ;;  %v2258_v13 = vld [vmem:[%s2969_s1 + $0xd8] sm:$0xff]   ;;  %v2262_v17 = vld [vmem:[%s2969_s1 + $0xe0] sm:$0xff]   ;;  %v2266_v21 = vld [vmem:[%s2969_s1 + $0xe8] sm:$0xff]  }
   0x7   :  { %v2259_v14 = vld [vmem:[%s2969_s1 + $0x18] sm:$0xff]   ;;  %v2263_v18 = vld [vmem:[%s2969_s1 + $0x20] sm:$0xff]   ;;  %v2267_v22 = vld [vmem:[%s2969_s1 + $0x28] sm:$0xff]  }
   0x8   :  { %2027 = vmatpush3.bf16.msra.mxu0 %v2251_v6  ;;  %v2260_v15 = vld [vmem:[%s2969_s1 + $0x98] sm:$0xff]   ;;  %v2264_v19 = vld [vmem:[%s2969_s1 + $0xa0] sm:$0xff]   ;;  %v2268_v26 = vld [vmem:[%s2969_s1 + $0xa8] sm:$0xff]  }
   0x9   :  { %2049 = vmatpush3.bf16.msra.mxu1 %v2252_v7  ;;  %2028 = vmatprep.subr.bf16.mxu0 %v2253_v8  ;;  %v2269_v27 = vld [vmem:[%s2969_s1 + $0x70] sm:$0xff]   ;;  %v2273_v33 = vld [vmem:[%s2969_s1 + $0x78] sm:$0xff]   ;;  %v2277_v38 = vld [vmem:[%s2970_s0] ss:$40 sps:$4 sm:$0xff]  }
   0xa   :  { %2050 = vmatprep.subr.bf16.mxu1 %v2254_v9  ;;  %v2270_v28 = vld [vmem:[%s2969_s1 + $0xf0] sm:$0xff]   ;;  %v2274_v34 = vld [vmem:[%s2969_s1 + $0xf8] sm:$0xff]   ;;  %v2279_v39 = vld [vmem:[%s2970_s0 + $0x4] ss:$40 sps:$4 sm:$0xff]   ;;  %v370_v40 = vrot.slane %v2277_v38, %v2534_v36 }
   0xb   :  { %v2271_v29 = vld [vmem:[%s2969_s1 + $0x30] sm:$0xff]   ;;  %v2275_v35 = vld [vmem:[%s2969_s1 + $0x38] sm:$0xff]   ;;  %v2280_v41 = vld [vmem:[%s2969_s1 + $0x140] sm:$0xff]   ;;  %v377_v42 = vrot.slane %v2279_v39, %v2534_v36 }
   0xc   :  { %2029 = vmatpush3.bf16.msra.mxu0 %v2255_v10  ;;  %v2272_v32 = vld [vmem:[%s2969_s1 + $0xb0] sm:$0xff]   ;;  %v2276_v37 = vld [vmem:[%s2969_s1 + $0xb8] sm:$0xff]   ;;  %v2281_v43 = vld [vmem:[%s2969_s1 + $0x1c0] sm:$0xff]   ;;  %v378_v44 = vcombine.high %v370_v40, %v370_v40 }
   0xd   :  { %2051 = vmatpush3.bf16.msra.mxu1 %v2256_v11  ;;  %2030 = vmatprep.subr.bf16.mxu0 %v2257_v12  ;;  %v2282_v45 = vld [vmem:[%s2969_s1 + $0x100] sm:$0xff]   ;;  %v379_v46 = vcombine.high %v377_v42, %v377_v42  ;;  %v2284_v48 = vld [vmem:[%s2969_s1 + $0x148] sm:$0xff]   ;;  %v2288_v52 = vld [vmem:[%s2969_s1 + $0x150] sm:$0xff]  }
   0xe   :  { %2052 = vmatprep.subr.bf16.mxu1 %v2258_v13  ;;  %v2283_v47 = vld [vmem:[%s2969_s1 + $0x180] sm:$0xff]   ;;  %1464 = vmatprep.mubr.bf16.mxu0 %v378_v44  ;;  %v2285_v49 = vld [vmem:[%s2969_s1 + $0x1c8] sm:$0xff]   ;;  %v2289_v53 = vld [vmem:[%s2969_s1 + $0x1d0] sm:$0xff]  }
   0xf   :  { %1504 = vmatprep.mubr.bf16.mxu1 %v379_v46  ;;  %v2286_v50 = vld [vmem:[%s2969_s1 + $0x108] sm:$0xff]   ;;  %v2290_v54 = vld [vmem:[%s2969_s1 + $0x110] sm:$0xff]   ;;  %v2292_v56 = vld [vmem:[%s2969_s1 + $0x158] sm:$0xff]  }
  0x10   :  { %2031 = vmatpush3.bf16.msra.mxu0 %v2259_v14  ;;  %v2287_v51 = vld [vmem:[%s2969_s1 + $0x188] sm:$0xff]   ;;  %v2291_v55 = vld [vmem:[%s2969_s1 + $0x190] sm:$0xff]   ;;  %v2293_v57 = vld [vmem:[%s2969_s1 + $0x1d8] sm:$0xff]  }
  0x11   :  { %2053 = vmatpush3.bf16.msra.mxu1 %v2260_v15  ;;  %2032 = vmatprep.subr.bf16.mxu0 %v2261_v16  ;;  %v2294_v58 = vld [vmem:[%s2969_s1 + $0x118] sm:$0xff]   ;;  %v2296_v60 = vld [vmem:[%s2969_s1 + $0x160] sm:$0xff]   ;;  %v2300_v0 = vld [vmem:[%s2969_s1 + $0x168] sm:$0xff]  }
  0x12   :  { %2054 = vmatprep.subr.bf16.mxu1 %v2262_v17  ;;  %v2295_v59 = vld [vmem:[%s2969_s1 + $0x198] sm:$0xff]   ;;  %v2297_v61 = vld [vmem:[%s2969_s1 + $0x1e0] sm:$0xff]   ;;  %v2301_v1 = vld [vmem:[%s2969_s1 + $0x1e8] sm:$0xff]  }
  0x13   :  { %v2298_v62 = vld [vmem:[%s2969_s1 + $0x120] sm:$0xff]   ;;  %v2302_v2 = vld [vmem:[%s2969_s1 + $0x128] sm:$0xff]   ;;  %v2304_v4 = vld [vmem:[%s2969_s1 + $0x170] sm:$0xff]  }
  0x14   :  { %2033 = vmatpush3.bf16.msra.mxu0 %v2263_v18  ;;  %v2299_v63 = vld [vmem:[%s2969_s1 + $0x1a0] sm:$0xff]   ;;  %v2303_v3 = vld [vmem:[%s2969_s1 + $0x1a8] sm:$0xff]   ;;  %v2305_v5 = vld [vmem:[%s2969_s1 + $0x1f0] sm:$0xff]  }
  0x15   :  { %2055 = vmatpush3.bf16.msra.mxu1 %v2264_v19  ;;  %2034 = vmatprep.subr.bf16.mxu0 %v2265_v20  ;;  %v2306_v6 = vld [vmem:[%s2969_s1 + $0x130] sm:$0xff]   ;;  %v2308_v8 = vld [vmem:[%s2969_s1 + $0x178] sm:$0xff]   ;;  %v2315_v14 = vld [vmem:[%s2969_s1 + $0x240] sm:$0xff]  }
  0x16   :  { %2056 = vmatprep.subr.bf16.mxu1 %v2266_v21  ;;  %v2307_v7 = vld [vmem:[%s2969_s1 + $0x1b0] sm:$0xff]   ;;  %v2309_v9 = vld [vmem:[%s2969_s1 + $0x1f8] sm:$0xff]   ;;  %v2316_v17 = vld [vmem:[%s2969_s1 + $0x2c0] sm:$0xff]  }
  0x17   :  { %v2310_v10 = vld [vmem:[%s2969_s1 + $0x138] sm:$0xff]   ;;  %v2312_v12 = vld [vmem:[%s2970_s0 + $0x8] ss:$40 sps:$4 sm:$0xff]   ;;  %v2314_v13 = vld [vmem:[%s2970_s0 + $0xc] ss:$40 sps:$4 sm:$0xff]  }
  0x18   :  { %2035 = vmatpush3.bf16.msra.mxu0 %v2267_v22  ;;  %v2311_v11 = vld [vmem:[%s2969_s1 + $0x1b8] sm:$0xff]   ;;  %v388_v15 = vrot.slane %v2312_v12, %v2534_v36  ;;  %v395_v16 = vrot.slane %v2314_v13, %v2534_v36  ;;  %v2317_v18 = vld [vmem:[%s2969_s1 + $0x200] sm:$0xff]   ;;  %v2319_v22 = vld [vmem:[%s2969_s1 + $0x248] sm:$0xff]  }
  0x19   :  { %2057 = vmatpush3.bf16.msra.mxu1 %v2268_v26  ;;  %2036 = vmatprep.subr.bf16.mxu0 %v2269_v27  ;;  %v2318_v21 = vld [vmem:[%s2969_s1 + $0x280] sm:$0xff]   ;;  %v2320_v23 = vld [vmem:[%s2969_s1 + $0x2c8] sm:$0xff]   ;;  %v2323_v26 = vld [vmem:[%s2969_s1 + $0x250] sm:$0xff]  }
  0x1a   :  { %2058 = vmatprep.subr.bf16.mxu1 %v2270_v28  ;;  %v396_v19 = vcombine.high %v388_v15, %v388_v15  ;;  %v397_v20 = vcombine.high %v395_v16, %v395_v16  ;;  %v2321_v24 = vld [vmem:[%s2969_s1 + $0x208] sm:$0xff]   ;;  %v2324_v27 = vld [vmem:[%s2969_s1 + $0x2d0] sm:$0xff]   ;;  %v2327_v30 = vld [vmem:[%s2969_s1 + $0x258] sm:$0xff]  }
  0x1b   :  { %v2322_v25 = vld [vmem:[%s2969_s1 + $0x288] sm:$0xff]   ;;  %v2325_v28 = vld [vmem:[%s2969_s1 + $0x210] sm:$0xff]   ;;  %v2328_v31 = vld [vmem:[%s2969_s1 + $0x2d8] sm:$0xff]  }
  0x1c   :  { %2037 = vmatpush3.bf16.msra.mxu0 %v2271_v29  ;;  %v2326_v29 = vld [vmem:[%s2969_s1 + $0x290] sm:$0xff]   ;;  %v2334_v38 = vld [vmem:[%s2969_s1 + $0x2a0] sm:$0xff]   ;;  %v2335_v39 = vld [vmem:[%s2969_s1 + $0x268] sm:$0xff]  }
  0x1d   :  { %2059 = vmatpush3.bf16.msra.mxu1 %v2272_v32  ;;  %2038 = vmatprep.subr.bf16.mxu0 %v2273_v33  ;;  %v2329_v32 = vld [vmem:[%s2969_s1 + $0x218] sm:$0xff]   ;;  %v2340_v44 = vld [vmem:[%s2969_s1 + $0x2f0] sm:$0xff]   ;;  %v2369_v12 = vld [vmem:[%s2969_s1 + $0x3a0] sm:$0xff]  }
  0x1e   :  { %2060 = vmatprep.subr.bf16.mxu1 %v2274_v34  ;;  %v2330_v33 = vld [vmem:[%s2969_s1 + $0x298] sm:$0xff]   ;;  %v2331_v34 = vld [vmem:[%s2969_s1 + $0x260] sm:$0xff]   ;;  %v2342_v46 = vld [vmem:[%s2969_s1 + $0x2b0] sm:$0xff]  }
  0x1f   :  { %v2370_v13 = vld [vmem:[%s2969_s1 + $0x368] sm:$0xff]  }
  0x20   :  { %2039 = vmatpush3.bf16.msra.mxu0 %v2275_v35  ;;  %v2332_v35 = vld [vmem:[%s2969_s1 + $0x2e0] sm:$0xff]  }
  0x21   :  { %2061 = vmatpush3.bf16.msra.mxu1 %v2276_v37  ;;  %2068 = vmatprep.subr.bf16.mxu0 %v2280_v41  ;;  %v2333_v37 = vld [vmem:[%s2969_s1 + $0x220] sm:$0xff]   ;;  %v2337_v41 = vld [vmem:[%s2969_s1 + $0x228] sm:$0xff]  }
  0x22   :  { %2090 = vmatprep.subr.bf16.mxu1 %v2281_v43  ;;  %v2339_v43 = vld [vmem:[%s2969_s1 + $0x270] sm:$0xff]  }
  0x23   :  { %1465 = vmatmul.mubr.bf16.vlgmr.msra.gmra.mrb[0].mxu0 %v370_v40  ;;  %v2336_v40 = vld [vmem:[%s2969_s1 + $0x2e8] sm:$0xff]  }
  0x24   :  { %1505 = vmatmul.mubr.bf16.vlgmr.msra.gmra.mrb[0].mxu1 %v377_v42  ;;  %2069 = vmatpush3.bf16.msra.mxu0 %v2282_v45  ;;  %v2338_v42 = vld [vmem:[%s2969_s1 + $0x2a8] sm:$0xff]   ;;  %v2341_v45 = vld [vmem:[%s2969_s1 + $0x230] sm:$0xff]  }
  0x25   :  { %2091 = vmatpush3.bf16.msra.mxu1 %v2283_v47  ;;  %2070 = vmatprep.subr.bf16.mxu0 %v2284_v48  ;;  %v2343_v47 = vld [vmem:[%s2969_s1 + $0x278] sm:$0xff]  }
  0x26   :  { %2092 = vmatprep.subr.bf16.mxu1 %v2285_v49  ;;  %1544 = vmatprep.mubr.bf16.mxu0 %v396_v19  ;;  %v2344_v48 = vld [vmem:[%s2969_s1 + $0x2f8] sm:$0xff]   ;;  %v2376_v19 = vld [vmem:[%s2969_s1 + $0x330] sm:$0xff]  }
  0x27   :  { %1584 = vmatprep.mubr.bf16.mxu1 %v397_v20  ;;  %v2345_v49 = vld [vmem:[%s2969_s1 + $0x238] sm:$0xff]   ;;  %v2377_v20 = vld [vmem:[%s2969_s1 + $0x3b0] sm:$0xff]  }
  0x28   :  { %2071 = vmatpush3.bf16.msra.mxu0 %v2286_v50  ;;  %v2346_v50 = vld [vmem:[%s2969_s1 + $0x2b8] sm:$0xff]  }
  0x29   :  { %2093 = vmatpush3.bf16.msra.mxu1 %v2287_v51  ;;  %2072 = vmatprep.subr.bf16.mxu0 %v2288_v52  ;;  %v2347_v51 = vld [vmem:[%s2970_s0 + $0x10] ss:$40 sps:$4 sm:$0xff]   ;;  %v2349_v52 = vld [vmem:[%s2970_s0 + $0x14] ss:$40 sps:$4 sm:$0xff]  }
  0x2a   :  { %2094 = vmatprep.subr.bf16.mxu1 %v2289_v53  ;;  %v2350_v53 = vld [vmem:[%s2969_s1 + $0x340] sm:$0xff]  }
  0x2c   :  { %2073 = vmatpush3.bf16.msra.mxu0 %v2290_v54  ;;  %v406_v54 = vrot.slane %v2347_v51, %v2534_v36  ;;  %v2404_v51 = vld [vmem:[%s2969_s1 + $0x4a0] sm:$0xff]  }
  0x2d   :  { %2095 = vmatpush3.bf16.msra.mxu1 %v2291_v55  ;;  %2074 = vmatprep.subr.bf16.mxu0 %v2292_v56  ;;  %v413_v55 = vrot.slane %v2349_v52, %v2534_v36  ;;  %v2351_v56 = vld [vmem:[%s2969_s1 + $0x3c0] sm:$0xff]   ;;  %v2405_v52 = vld [vmem:[%s2969_s1 + $0x468] sm:$0xff]  }
  0x2e   :  { %2096 = vmatprep.subr.bf16.mxu1 %v2293_v57  ;;  %v2352_v57 = vld [vmem:[%s2969_s1 + $0x300] sm:$0xff]  }
  0x30   :  { %2075 = vmatpush3.bf16.msra.mxu0 %v2294_v58  ;;  %v414_v58 = vcombine.high %v406_v54, %v406_v54 }
  0x31   :  { %2097 = vmatpush3.bf16.msra.mxu1 %v2295_v59  ;;  %2076 = vmatprep.subr.bf16.mxu0 %v2296_v60  ;;  %v415_v59 = vcombine.high %v413_v55, %v413_v55  ;;  %v2353_v60 = vld [vmem:[%s2969_s1 + $0x380] sm:$0xff]  }
  0x32   :  { %2098 = vmatprep.subr.bf16.mxu1 %v2297_v61  ;;  %v2354_v61 = vld [vmem:[%s2969_s1 + $0x348] sm:$0xff]  }
  0x34   :  { %2077 = vmatpush3.bf16.msra.mxu0 %v2298_v62  ;;  %v2355_v62 = vld [vmem:[%s2969_s1 + $0x3c8] sm:$0xff]  }
  0x35   :  { %2099 = vmatpush3.bf16.msra.mxu1 %v2299_v63  ;;  %2078 = vmatprep.subr.bf16.mxu0 %v2300_v0  ;;  %v2356_v63 = vld [vmem:[%s2969_s1 + $0x308] sm:$0xff]  }
  0x36   :  { %2100 = vmatprep.subr.bf16.mxu1 %v2301_v1  ;;  %v2357_v0 = vld [vmem:[%s2969_s1 + $0x388] sm:$0xff]   ;;  %v2358_v1 = vld [vmem:[%s2969_s1 + $0x350] sm:$0xff]  }
  0x38   :  { %2079 = vmatpush3.bf16.msra.mxu0 %v2302_v2  ;;  %v2359_v2 = vld [vmem:[%s2969_s1 + $0x3d0] sm:$0xff]  }
  0x39   :  { %2101 = vmatpush3.bf16.msra.mxu1 %v2303_v3  ;;  %2080 = vmatprep.subr.bf16.mxu0 %v2304_v4  ;;  %v2360_v3 = vld [vmem:[%s2969_s1 + $0x310] sm:$0xff]  }
  0x3a   :  { %2102 = vmatprep.subr.bf16.mxu1 %v2305_v5  ;;  %v2361_v4 = vld [vmem:[%s2969_s1 + $0x390] sm:$0xff]   ;;  %v2362_v5 = vld [vmem:[%s2969_s1 + $0x358] sm:$0xff]  }
  0x3c   :  { %2081 = vmatpush3.bf16.msra.mxu0 %v2306_v6  ;;  %v2363_v6 = vld [vmem:[%s2969_s1 + $0x3d8] sm:$0xff]  }
  0x3d   :  { %2103 = vmatpush3.bf16.msra.mxu1 %v2307_v7  ;;  %2082 = vmatprep.subr.bf16.mxu0 %v2308_v8  ;;  %v2364_v7 = vld [vmem:[%s2969_s1 + $0x318] sm:$0xff]  }
  0x3e   :  { %2104 = vmatprep.subr.bf16.mxu1 %v2309_v9  ;;  %v2365_v8 = vld [vmem:[%s2969_s1 + $0x398] sm:$0xff]   ;;  %v2366_v9 = vld [vmem:[%s2969_s1 + $0x360] sm:$0xff]  }
  0x40   :  { %2083 = vmatpush3.bf16.msra.mxu0 %v2310_v10  ;;  %v2367_v10 = vld [vmem:[%s2969_s1 + $0x3e0] sm:$0xff]  }
  0x41   :  { %2105 = vmatpush3.bf16.msra.mxu1 %v2311_v11  ;;  %2112 = vmatprep.subr.bf16.mxu0 %v2315_v14  ;;  %v2368_v11 = vld [vmem:[%s2969_s1 + $0x320] sm:$0xff]   ;;  %v2371_v14 = vld [vmem:[%s2969_s1 + $0x3e8] sm:$0xff]  }
  0x42   :  { %2134 = vmatprep.subr.bf16.mxu1 %v2316_v17  ;;  %v2374_v17 = vld [vmem:[%s2969_s1 + $0x370] sm:$0xff]  }
  0x43   :  { %1545 = vmatmul.mubr.bf16.vlgmr.msra.gmra.mrb[4].mxu0 %v388_v15  ;;  %v2372_v15 = vld [vmem:[%s2969_s1 + $0x328] sm:$0xff]  }
  0x44   :  { %1585 = vmatmul.mubr.bf16.vlgmr.msra.gmra.mrb[4].mxu1 %v395_v16  ;;  %2113 = vmatpush3.bf16.msra.mxu0 %v2317_v18  ;;  %v2373_v16 = vld [vmem:[%s2969_s1 + $0x3a8] sm:$0xff]   ;;  %v2375_v18 = vld [vmem:[%s2969_s1 + $0x3f0] sm:$0xff]  }
  0x45   :  { %2135 = vmatpush3.bf16.msra.mxu1 %v2318_v21  ;;  %2114 = vmatprep.subr.bf16.mxu0 %v2319_v22  ;;  %v2378_v21 = vld [vmem:[%s2969_s1 + $0x378] sm:$0xff]  }
  0x46   :  { %2136 = vmatprep.subr.bf16.mxu1 %v2320_v23  ;;  %1624 = vmatprep.mubr.bf16.mxu0 %v414_v58  ;;  %v2379_v22 = vld [vmem:[%s2969_s1 + $0x3f8] sm:$0xff]   ;;  %v2411_v58 = vld [vmem:[%s2969_s1 + $0x430] sm:$0xff]  }
  0x47   :  { %1664 = vmatprep.mubr.bf16.mxu1 %v415_v59  ;;  %v2380_v23 = vld [vmem:[%s2969_s1 + $0x338] sm:$0xff]   ;;  %v2412_v59 = vld [vmem:[%s2969_s1 + $0x4b0] sm:$0xff]  }
  0x48   :  { %2115 = vmatpush3.bf16.msra.mxu0 %v2321_v24  ;;  %v2381_v24 = vld [vmem:[%s2969_s1 + $0x3b8] sm:$0xff]  }
  0x49   :  { %2137 = vmatpush3.bf16.msra.mxu1 %v2322_v25  ;;  %2116 = vmatprep.subr.bf16.mxu0 %v2323_v26  ;;  %v2382_v25 = vld [vmem:[%s2970_s0 + $0x18] ss:$40 sps:$4 sm:$0xff]   ;;  %v2384_v26 = vld [vmem:[%s2970_s0 + $0x1c] ss:$40 sps:$4 sm:$0xff]  }
  0x4a   :  { %2138 = vmatprep.subr.bf16.mxu1 %v2324_v27  ;;  %v424_v27 = vrot.slane %v2382_v25, %v2534_v36 }
  0x4c   :  { %2117 = vmatpush3.bf16.msra.mxu0 %v2325_v28  ;;  %v2385_v28 = vld [vmem:[%s2969_s1 + $0x440] sm:$0xff]  }
  0x4d   :  { %2139 = vmatpush3.bf16.msra.mxu1 %v2326_v29  ;;  %2118 = vmatprep.subr.bf16.mxu0 %v2327_v30  ;;  %v431_v29 = vrot.slane %v2384_v26, %v2534_v36  ;;  %v2386_v30 = vld [vmem:[%s2969_s1 + $0x4c0] sm:$0xff]  }
  0x4e   :  { %2140 = vmatprep.subr.bf16.mxu1 %v2328_v31  ;;  %v432_v31 = vcombine.high %v424_v27, %v424_v27 }
  0x50   :  { %2119 = vmatpush3.bf16.msra.mxu0 %v2329_v32  ;;  %v2387_v32 = vld [vmem:[%s2969_s1 + $0x400] sm:$0xff]  }
  0x51   :  { %2141 = vmatpush3.bf16.msra.mxu1 %v2330_v33  ;;  %2120 = vmatprep.subr.bf16.mxu0 %v2331_v34  ;;  %v433_v33 = vcombine.high %v431_v29, %v431_v29  ;;  %v2388_v34 = vld [vmem:[%s2969_s1 + $0x480] sm:$0xff]  }
  0x52   :  { %2142 = vmatprep.subr.bf16.mxu1 %v2332_v35  ;;  %v2389_v35 = vld [vmem:[%s2969_s1 + $0x448] sm:$0xff]  }
  0x54   :  { %2121 = vmatpush3.bf16.msra.mxu0 %v2333_v37  ;;  %v2390_v37 = vld [vmem:[%s2969_s1 + $0x4c8] sm:$0xff]  }
  0x55   :  { %2143 = vmatpush3.bf16.msra.mxu1 %v2334_v38  ;;  %2122 = vmatprep.subr.bf16.mxu0 %v2335_v39  ;;  %v2391_v38 = vld [vmem:[%s2969_s1 + $0x408] sm:$0xff]  }
  0x56   :  { %2144 = vmatprep.subr.bf16.mxu1 %v2336_v40  ;;  %v2392_v39 = vld [vmem:[%s2969_s1 + $0x488] sm:$0xff]   ;;  %v2393_v40 = vld [vmem:[%s2969_s1 + $0x450] sm:$0xff]  }
  0x58   :  { %2123 = vmatpush3.bf16.msra.mxu0 %v2337_v41  ;;  %v2394_v41 = vld [vmem:[%s2969_s1 + $0x4d0] sm:$0xff]  }
  0x59   :  { %2145 = vmatpush3.bf16.msra.mxu1 %v2338_v42  ;;  %2124 = vmatprep.subr.bf16.mxu0 %v2339_v43  ;;  %v2395_v42 = vld [vmem:[%s2969_s1 + $0x410] sm:$0xff]  }
  0x5a   :  { %2146 = vmatprep.subr.bf16.mxu1 %v2340_v44  ;;  %v2396_v43 = vld [vmem:[%s2969_s1 + $0x490] sm:$0xff]   ;;  %v2397_v44 = vld [vmem:[%s2969_s1 + $0x458] sm:$0xff]  }
  0x5c   :  { %2125 = vmatpush3.bf16.msra.mxu0 %v2341_v45  ;;  %v2398_v45 = vld [vmem:[%s2969_s1 + $0x4d8] sm:$0xff]  }
  0x5d   :  { %2147 = vmatpush3.bf16.msra.mxu1 %v2342_v46  ;;  %2126 = vmatprep.subr.bf16.mxu0 %v2343_v47  ;;  %v2399_v46 = vld [vmem:[%s2969_s1 + $0x418] sm:$0xff]  }
  0x5e   :  { %2148 = vmatprep.subr.bf16.mxu1 %v2344_v48  ;;  %v2400_v47 = vld [vmem:[%s2969_s1 + $0x498] sm:$0xff]   ;;  %v2401_v48 = vld [vmem:[%s2969_s1 + $0x460] sm:$0xff]  }
  0x60   :  { %2127 = vmatpush3.bf16.msra.mxu0 %v2345_v49  ;;  %v2402_v49 = vld [vmem:[%s2969_s1 + $0x4e0] sm:$0xff]  }
  0x61   :  { %2149 = vmatpush3.bf16.msra.mxu1 %v2346_v50  ;;  %2156 = vmatprep.subr.bf16.mxu0 %v2350_v53  ;;  %v2403_v50 = vld [vmem:[%s2969_s1 + $0x420] sm:$0xff]   ;;  %v2406_v53 = vld [vmem:[%s2969_s1 + $0x4e8] sm:$0xff]  }
  0x62   :  { %2178 = vmatprep.subr.bf16.mxu1 %v2351_v56  ;;  %v2409_v56 = vld [vmem:[%s2969_s1 + $0x470] sm:$0xff]  }
  0x63   :  { %1625 = vmatmul.mubr.bf16.vlgmr.msra.gmra.mrb[8].mxu0 %v406_v54  ;;  %v2407_v54 = vld [vmem:[%s2969_s1 + $0x428] sm:$0xff]  }
  0x64   :  { %1665 = vmatmul.mubr.bf16.vlgmr.msra.gmra.mrb[8].mxu1 %v413_v55  ;;  %2157 = vmatpush3.bf16.msra.mxu0 %v2352_v57  ;;  %v2408_v55 = vld [vmem:[%s2969_s1 + $0x4a8] sm:$0xff]   ;;  %v2410_v57 = vld [vmem:[%s2969_s1 + $0x4f0] sm:$0xff]  }
  0x65   :  { %2179 = vmatpush3.bf16.msra.mxu1 %v2353_v60  ;;  %2158 = vmatprep.subr.bf16.mxu0 %v2354_v61  ;;  %v2413_v60 = vld [vmem:[%s2969_s1 + $0x478] sm:$0xff]  }
  0x66   :  { %2180 = vmatprep.subr.bf16.mxu1 %v2355_v62  ;;  %1704 = vmatprep.mubr.bf16.mxu0 %v432_v31  ;;  %v2414_v61 = vld [vmem:[%s2969_s1 + $0x4f8] sm:$0xff]  }
  0x67   :  { %1744 = vmatprep.mubr.bf16.mxu1 %v433_v33  ;;  %v2415_v62 = vld [vmem:[%s2969_s1 + $0x438] sm:$0xff]  }
  0x68   :  { %2159 = vmatpush3.bf16.msra.mxu0 %v2356_v63  ;;  %v2416_v63 = vld [vmem:[%s2969_s1 + $0x4b8] sm:$0xff]  }
  0x69   :  { %2181 = vmatpush3.bf16.msra.mxu1 %v2357_v0  ;;  %2160 = vmatprep.subr.bf16.mxu0 %v2358_v1  ;;  %v2417_v0 = vld [vmem:[%s2970_s0 + $0x20] ss:$40 sps:$4 sm:$0xff]   ;;  %v2419_v1 = vld [vmem:[%s2970_s0 + $0x24] ss:$40 sps:$4 sm:$0xff]  }
  0x6a   :  { %2182 = vmatprep.subr.bf16.mxu1 %v2359_v2  ;;  %v442_v2 = vrot.slane %v2417_v0, %v2534_v36 }
  0x6c   :  { %2161 = vmatpush3.bf16.msra.mxu0 %v2360_v3  ;;  %v449_v3 = vrot.slane %v2419_v1, %v2534_v36 }
  0x6d   :  { %2183 = vmatpush3.bf16.msra.mxu1 %v2361_v4  ;;  %2162 = vmatprep.subr.bf16.mxu0 %v2362_v5  ;;  %v450_v4 = vcombine.high %v442_v2, %v442_v2 }
  0x6e   :  { %2184 = vmatprep.subr.bf16.mxu1 %v2363_v6  ;;  %v451_v5 = vcombine.high %v449_v3, %v449_v3 }
  0x70   :  { %2163 = vmatpush3.bf16.msra.mxu0 %v2364_v7 }
  0x71   :  { %2185 = vmatpush3.bf16.msra.mxu1 %v2365_v8  ;;  %2164 = vmatprep.subr.bf16.mxu0 %v2366_v9  ;;  %v1863_v8 = vld [vmem:[%s2971_s2] ss:$0 sm:$0xff] }
  0x72   :  { %2186 = vmatprep.subr.bf16.mxu1 %v2367_v10 }
  0x74   :  { %2165 = vmatpush3.bf16.msra.mxu0 %v2368_v11 }
  0x75   :  { %2187 = vmatpush3.bf16.msra.mxu1 %v2369_v12  ;;  %2166 = vmatprep.subr.bf16.mxu0 %v2370_v13 }
  0x76   :  { %2188 = vmatprep.subr.bf16.mxu1 %v2371_v14 }
  0x78   :  { %2167 = vmatpush3.bf16.msra.mxu0 %v2372_v15 }
  0x79   :  { %2189 = vmatpush3.bf16.msra.mxu1 %v2373_v16  ;;  %2168 = vmatprep.subr.bf16.mxu0 %v2374_v17 }
  0x7a   :  { %2190 = vmatprep.subr.bf16.mxu1 %v2375_v18 }
  0x7c   :  { %2169 = vmatpush3.bf16.msra.mxu0 %v2376_v19 }
  0x7d   :  { %2191 = vmatpush3.bf16.msra.mxu1 %v2377_v20  ;;  %2170 = vmatprep.subr.bf16.mxu0 %v2378_v21 }
  0x7e   :  { %2192 = vmatprep.subr.bf16.mxu1 %v2379_v22 }
  0x80   :  { %2171 = vmatpush3.bf16.msra.mxu0 %v2380_v23 }
  0x81   :  { %2193 = vmatpush3.bf16.msra.mxu1 %v2381_v24  ;;  %2200 = vmatprep.subr.bf16.mxu0 %v2385_v28 }
  0x82   :  { %2222 = vmatprep.subr.bf16.mxu1 %v2386_v30 }
  0x83   :  { %1705 = vmatmul.mubr.bf16.vlgmr.msra.gmra.mrb[12].mxu0 %v424_v27 }
  0x84   :  { %1745 = vmatmul.mubr.bf16.vlgmr.msra.gmra.mrb[12].mxu1 %v431_v29  ;;  %2201 = vmatpush3.bf16.msra.mxu0 %v2387_v32 }
  0x85   :  { %2223 = vmatpush3.bf16.msra.mxu1 %v2388_v34  ;;  %2202 = vmatprep.subr.bf16.mxu0 %v2389_v35 }
  0x86   :  { %2224 = vmatprep.subr.bf16.mxu1 %v2390_v37  ;;  %1784 = vmatprep.mubr.bf16.mxu0 %v450_v4 }
  0x87   :  { %1824 = vmatprep.mubr.bf16.mxu1 %v451_v5 }
  0x88   :  { %2203 = vmatpush3.bf16.msra.mxu0 %v2391_v38 }
  0x89   :  { %2225 = vmatpush3.bf16.msra.mxu1 %v2392_v39  ;;  %2204 = vmatprep.subr.bf16.mxu0 %v2393_v40 }
  0x8a   :  { %2226 = vmatprep.subr.bf16.mxu1 %v2394_v41 }
  0x8c   :  { %2205 = vmatpush3.bf16.msra.mxu0 %v2395_v42 }
  0x8d   :  { %2227 = vmatpush3.bf16.msra.mxu1 %v2396_v43  ;;  %2206 = vmatprep.subr.bf16.mxu0 %v2397_v44 }
  0x8e   :  { %2228 = vmatprep.subr.bf16.mxu1 %v2398_v45 }
  0x90   :  { %2207 = vmatpush3.bf16.msra.mxu0 %v2399_v46 }
  0x91   :  { %2229 = vmatpush3.bf16.msra.mxu1 %v2400_v47  ;;  %2208 = vmatprep.subr.bf16.mxu0 %v2401_v48 }
  0x92   :  { %2230 = vmatprep.subr.bf16.mxu1 %v2402_v49 }
  0x94   :  { %2209 = vmatpush3.bf16.msra.mxu0 %v2403_v50 }
  0x95   :  { %2231 = vmatpush3.bf16.msra.mxu1 %v2404_v51  ;;  %2210 = vmatprep.subr.bf16.mxu0 %v2405_v52 }
  0x96   :  { %2232 = vmatprep.subr.bf16.mxu1 %v2406_v53 }
  0x98   :  { %2211 = vmatpush3.bf16.msra.mxu0 %v2407_v54 }
  0x99   :  { %2233 = vmatpush3.bf16.msra.mxu1 %v2408_v55  ;;  %2212 = vmatprep.subr.bf16.mxu0 %v2409_v56 }
  0x9a   :  { %2234 = vmatprep.subr.bf16.mxu1 %v2410_v57 }
  0x9c   :  { %2213 = vmatpush3.bf16.msra.mxu0 %v2411_v58 }
  0x9d   :  { %2235 = vmatpush3.bf16.msra.mxu1 %v2412_v59  ;;  %2214 = vmatprep.subr.bf16.mxu0 %v2413_v60 }
  0x9e   :  { %2236 = vmatprep.subr.bf16.mxu1 %v2414_v61 }
  0xa0   :  { %2215 = vmatpush3.bf16.msra.mxu0 %v2415_v62 }
  0xa1   :  { %2237 = vmatpush3.bf16.msra.mxu1 %v2416_v63 }
  0xa3   :  { %1785 = vmatmul.mubr.bf16.vlgmr.msra.gmra.mrb[16].mxu0 %v442_v2 }
  0xa4   :  { %1825 = vmatmul.mubr.bf16.vlgmr.msra.gmra.mrb[16].mxu1 %v449_v3 }
  0xf6   :  { %v2040_v6 = vpop.f32.mrb[0].mxu0 }
  0xf7   :  { %v2062_v7 = vpop.f32.mrb[0].mxu1  ;;  %v2041_v9 = vpop.f32.mrb[1].mxu0 }
  0xf8   :  { %v2042_v10 = vadd.f32 %v2041_v9, %v2040_v6  ;;  %v2063_v11 = vpop.f32.mrb[1].mxu1  ;;  %v2043_v12 = vpop.f32.mrb[2].mxu0 }
  0xf9   :  { %v2064_v13 = vadd.f32 %v2063_v11, %v2062_v7  ;;  %v2065_v14 = vpop.f32.mrb[2].mxu1  ;;  %v2044_v36 = vpop.f32.mrb[3].mxu0 }
  0xfa   :  { %v1467_v15 = vadd.f32 %v2042_v10, %v1863_v8  ;;  %v2066_v16 = vpop.f32.mrb[3].mxu1 }
  0xfc   :  { %v1507_v17 = vadd.f32 %v2064_v13, %v1467_v15 }
 0x116   :  { %v2084_v18 = vpop.f32.mrb[4].mxu0 }
 0x117   :  { %v2106_v19 = vpop.f32.mrb[4].mxu1  ;;  %v2085_v20 = vpop.f32.mrb[5].mxu0 }
 0x118   :  { %v2107_v21 = vpop.f32.mrb[5].mxu1  ;;  %v2086_v22 = vadd.f32 %v2085_v20, %v2084_v18  ;;  %v2087_v24 = vpop.f32.mrb[6].mxu0 }
 0x119   :  { %v2108_v23 = vadd.f32 %v2107_v21, %v2106_v19  ;;  %v2109_v25 = vpop.f32.mrb[6].mxu1  ;;  %v2088_v26 = vpop.f32.mrb[7].mxu0 }
 0x11a   :  { %v2110_v27 = vpop.f32.mrb[7].mxu1  ;;  %v1547_v28 = vadd.f32 %v2086_v22, %v1507_v17 }
 0x11c   :  { %v1587_v29 = vadd.f32 %v2108_v23, %v1547_v28 }
 0x136   :  { %v2128_v30 = vpop.f32.mrb[8].mxu0 }
 0x137   :  { %v2150_v31 = vpop.f32.mrb[8].mxu1  ;;  %v2129_v32 = vpop.f32.mrb[9].mxu0 }
 0x138   :  { %v2151_v33 = vpop.f32.mrb[9].mxu1  ;;  %v2130_v34 = vadd.f32 %v2129_v32, %v2128_v30  ;;  %v2131_v37 = vpop.f32.mrb[10].mxu0 }
 0x139   :  { %v2152_v35 = vadd.f32 %v2151_v33, %v2150_v31  ;;  %v2153_v38 = vpop.f32.mrb[10].mxu1  ;;  %v2132_v39 = vpop.f32.mrb[11].mxu0 }
 0x13a   :  { %v2154_v40 = vpop.f32.mrb[11].mxu1  ;;  %v1627_v41 = vadd.f32 %v2130_v34, %v1587_v29 }
 0x13c   :  { %v1667_v42 = vadd.f32 %v2152_v35, %v1627_v41 }
 0x156   :  { %v2172_v43 = vpop.f32.mrb[12].mxu0 }
 0x157   :  { %v2194_v44 = vpop.f32.mrb[12].mxu1  ;;  %v2173_v45 = vpop.f32.mrb[13].mxu0 }
 0x158   :  { %v2174_v46 = vadd.f32 %v2173_v45, %v2172_v43  ;;  %v2195_v47 = vpop.f32.mrb[13].mxu1  ;;  %v2175_v48 = vpop.f32.mrb[14].mxu0 }
 0x159   :  { %v2196_v49 = vadd.f32 %v2195_v47, %v2194_v44  ;;  %v2197_v50 = vpop.f32.mrb[14].mxu1  ;;  %v2176_v51 = vpop.f32.mrb[15].mxu0 }
 0x15a   :  { %v1707_v52 = vadd.f32 %v2174_v46, %v1667_v42  ;;  %v2198_v53 = vpop.f32.mrb[15].mxu1 }
 0x15c   :  { %v1747_v54 = vadd.f32 %v2196_v49, %v1707_v52 }
 0x176   :  { %v2216_v55 = vpop.f32.mrb[16].mxu0 }
 0x177   :  { %v2238_v56 = vpop.f32.mrb[16].mxu1  ;;  %v2217_v57 = vpop.f32.mrb[17].mxu0 }
 0x178   :  { %v2239_v58 = vpop.f32.mrb[17].mxu1  ;;  %v2218_v59 = vadd.f32 %v2217_v57, %v2216_v55  ;;  %v2219_v61 = vpop.f32.mrb[18].mxu0 }
 0x179   :  { %v2240_v60 = vadd.f32 %v2239_v58, %v2238_v56  ;;  %v2241_v62 = vpop.f32.mrb[18].mxu1  ;;  %v2220_v63 = vpop.f32.mrb[19].mxu0 }
 0x17a   :  { %v2242_v0 = vpop.f32.mrb[19].mxu1  ;;  %v1787_v1 = vadd.f32 %v2218_v59, %v1747_v54 }
 0x17c   :  { %v1827_v2 = vadd.f32 %v2240_v60, %v1787_v1 }
 0x17e   :  { %v1832_v3 = vmax.f32 %v1827_v2, 0.0 }
 0x180   :  { %v1834_v4 = vcombine.high %v1832_v3, %v1832_v3  ;;  %v1837_v5 = vsel %vm1836_vm0, %v1832_v3, 0.0 }
 0x181   :  { %v1838_v6 = vrot.slane %v1837_v5, 4 }
 0x182   :  { %v1844_v7 = vsel %vm1836_vm0, %v1834_v4, 0.0 }
 0x183   :  { %v1839_v8 = vadd.f32 %v1838_v6, %v1837_v5  ;;  %v1845_v9 = vrot.slane %v1844_v7, 4 }
 0x185   :  { %v1840_v10 = vrot.slane %v1839_v8, 2  ;;  %v1846_v11 = vadd.f32 %v1845_v9, %v1844_v7 }
 0x187   :  { %v1841_v12 = vadd.f32 %v1840_v10, %v1839_v8  ;;  %v1847_v13 = vrot.slane %v1846_v11, 2 }
 0x189   :  { %v1842_v14 = vrot.slane %v1841_v12, 1  ;;  %v1848_v36 = vadd.f32 %v1847_v13, %v1846_v11 }
 0x18b   :  { %v1843_v15 = vadd.f32 %v1842_v14, %v1841_v12  ;;  %v1849_v16 = vrot.slane %v1848_v36, 1 }
 0x18d   :  { %v1850_v17 = vadd.f32 %v1849_v16, %v1848_v36  ;;  %v1851_v18 = vmul.f32 0.25, %v1843_v15 }
 0x18f   :  { %v1852_v19 = vmul.f32 0.25, %v1850_v17 }
 0x191   :  { %v1856_v20 = vsel %vm1855_vm1, %v1852_v19, %v1851_v18 }
 0x192   :  { %1858 = vst [vmem:[%s2972_s3] sm:$0x3] %v1856_v20 }

// kernel: gamma_forward.6
= control target key start
LH: loop header
LB: loop body
LE: loop exit
PB: predicated region body
PF: predicated region fallthrough
CT: control target
= control target key end

     0   :  { %v535_v0 = vmov 0   ;;  %vm190_vm0 = vcmask 261120   ;;  %vm392_vm1 = vcmask 519168   ;;  %s727_s1 = inlined_call_operand.vmem [shape: bf16[160,64], index: 1, kind: input, shape index: {}]   ;;  %s728_s0 = inlined_call_operand.vmem [shape: bf16[128,160], index: 0, kind: input, shape index: {}]   ;;  %s729_s2 = inlined_call_operand.vmem [shape: f32[1,64], index: 2, kind: input, shape index: {}]   ;;  %s730_s3 = inlined_call_operand.vmem [shape: bf16[128,64], index: 3, kind: output, shape index: {}]  }
   0x1   :  { %215 = vmatprep.subr.bf16.mxu0 %v535_v0  ;;  %480 = vmatprep.subr.bf16.mxu1 %v535_v0  ;;  %v501_v1 = vld [vmem:[%s727_s1] sm:$0xff]   ;;  %v502_v2 = vld [vmem:[%s727_s1 + $0x8] sm:$0xff]   ;;  %v503_v3 = vld [vmem:[%s727_s1 + $0x10] sm:$0xff]  }
   0x2   :  { %216 = vmatpush1.bf16.msra.mxu0 %v501_v1  ;;  %490 = vmatpush1.bf16.msra.mxu1 %v501_v1  ;;  %v504_v4 = vld [vmem:[%s727_s1 + $0x18] sm:$0xff]   ;;  %v513_v5 = vld [vmem:[%s728_s0 + $0x4] ss:$8 sps:$4 sm:$0xff]   ;;  %v507_v9 = vld [vmem:[%s727_s1 + $0x30] sm:$0xff]  }
   0x3   :  { %217 = vmatprep.subr.bf16.mxu0 %v535_v0  ;;  %481 = vmatprep.subr.bf16.mxu1 %v535_v0  ;;  %v516_v6 = vld [vmem:[%s728_s0 + $0x44] ss:$8 sps:$4 sm:$0xff]   ;;  %v508_v10 = vld [vmem:[%s727_s1 + $0x38] sm:$0xff]   ;;  %v511_v13 = vld [vmem:[%s728_s0] ss:$8 sps:$4 sm:$0xff]  }
   0x4   :  { %440 = vmatprep.mubr.msk.bf16.mxu0 %vm190_vm0, %v513_v5  ;;  %v505_v7 = vld [vmem:[%s727_s1 + $0x20] sm:$0xff]   ;;  %444 = vmatprep.mubr.msk.bf16.mxu1 %vm190_vm0, %v516_v6  ;;  %v506_v8 = vld [vmem:[%s727_s1 + $0x28] sm:$0xff]   ;;  %v517_v15 = vld [vmem:[%s728_s0 + $0x14] ss:$8 sps:$4 sm:$0xff]  }
   0x5   :  { %v509_v11 = vld [vmem:[%s727_s1 + $0x40] sm:$0xff]   ;;  %v510_v12 = vld [vmem:[%s727_s1 + $0x48] sm:$0xff]   ;;  %v519_v16 = vld [vmem:[%s728_s0 + $0x54] ss:$8 sps:$4 sm:$0xff]  }
   0x6   :  { %218 = vmatpush1.bf16.msra.mxu0 %v502_v2  ;;  %491 = vmatpush1.bf16.msra.mxu1 %v502_v2  ;;  %v514_v14 = vld [vmem:[%s728_s0 + $0x40] ss:$8 sps:$4 sm:$0xff]   ;;  %v521_v17 = vld [vmem:[%s728_s0 + $0x10] ss:$8 sps:$4 sm:$0xff]   ;;  %v523_v19 = vld [vmem:[%s728_s0 + $0x24] ss:$8 sps:$4 sm:$0xff]  }
   0x7   :  { %219 = vmatprep.subr.bf16.mxu0 %v535_v0  ;;  %482 = vmatprep.subr.bf16.mxu1 %v535_v0  ;;  %v522_v18 = vld [vmem:[%s728_s0 + $0x50] ss:$8 sps:$4 sm:$0xff]   ;;  %v525_v20 = vld [vmem:[%s728_s0 + $0x64] ss:$8 sps:$4 sm:$0xff]   ;;  %v527_v21 = vld [vmem:[%s728_s0 + $0x20] ss:$8 sps:$4 sm:$0xff]  }
   0x8   :  { %v528_v22 = vld [vmem:[%s728_s0 + $0x60] ss:$8 sps:$4 sm:$0xff]   ;;  %v529_v23 = vld [vmem:[%s728_s0 + $0x34] ss:$8 sps:$4 sm:$0xff]   ;;  %v533_v25 = vld [vmem:[%s728_s0 + $0x30] ss:$8 sps:$4 sm:$0xff]  }
   0x9   :  { %v531_v24 = vld [vmem:[%s728_s0 + $0x74] ss:$8 sps:$4 sm:$0xff]   ;;  %v534_v26 = vld [vmem:[%s728_s0 + $0x70] ss:$8 sps:$4 sm:$0xff]   ;;  %v645_v27 = vld [vmem:[%s729_s2] ss:$0 sm:$0xff] }
   0xa   :  { %220 = vmatpush1.bf16.msra.mxu0 %v503_v3  ;;  %492 = vmatpush1.bf16.msra.mxu1 %v503_v3 }
   0xb   :  { %221 = vmatprep.subr.bf16.mxu0 %v535_v0  ;;  %483 = vmatprep.subr.bf16.mxu1 %v535_v0 }
   0xe   :  { %222 = vmatpush1.bf16.msra.mxu0 %v504_v4  ;;  %493 = vmatpush1.bf16.msra.mxu1 %v504_v4 }
   0xf   :  { %223 = vmatprep.subr.bf16.mxu0 %v535_v0  ;;  %484 = vmatprep.subr.bf16.mxu1 %v535_v0 }
  0x12   :  { %224 = vmatpush1.bf16.msra.mxu0 %v505_v7  ;;  %494 = vmatpush1.bf16.msra.mxu1 %v505_v7 }
  0x13   :  { %225 = vmatprep.subr.bf16.mxu0 %v535_v0  ;;  %485 = vmatprep.subr.bf16.mxu1 %v535_v0 }
  0x16   :  { %226 = vmatpush1.bf16.msra.mxu0 %v506_v8  ;;  %495 = vmatpush1.bf16.msra.mxu1 %v506_v8 }
  0x17   :  { %227 = vmatprep.subr.bf16.mxu0 %v535_v0  ;;  %486 = vmatprep.subr.bf16.mxu1 %v535_v0 }
  0x1a   :  { %228 = vmatpush1.bf16.msra.mxu0 %v507_v9  ;;  %496 = vmatpush1.bf16.msra.mxu1 %v507_v9 }
  0x1b   :  { %229 = vmatprep.subr.bf16.mxu0 %v535_v0  ;;  %487 = vmatprep.subr.bf16.mxu1 %v535_v0 }
  0x1e   :  { %230 = vmatpush1.bf16.msra.mxu0 %v508_v10  ;;  %497 = vmatpush1.bf16.msra.mxu1 %v508_v10 }
  0x1f   :  { %231 = vmatprep.subr.bf16.mxu0 %v535_v0  ;;  %488 = vmatprep.subr.bf16.mxu1 %v535_v0 }
  0x22   :  { %232 = vmatpush1.bf16.msra.mxu0 %v509_v11  ;;  %498 = vmatpush1.bf16.msra.mxu1 %v509_v11 }
  0x23   :  { %233 = vmatprep.subr.bf16.mxu0 %v535_v0  ;;  %489 = vmatprep.subr.bf16.mxu1 %v535_v0 }
  0x26   :  { %234 = vmatpush1.bf16.msra.mxu0 %v510_v12  ;;  %499 = vmatpush1.bf16.msra.mxu1 %v510_v12 }
  0x29   :  { %248 = vmatmul.mubr.bf16.vlgmr.msra.gmra.mrb[0].mxu0 %v511_v13  ;;  %280 = vmatmul.mubr.bf16.vlgmr.msra.gmra.mrb[0].mxu1 %v514_v14 }
  0x2a   :  { %441 = vmatprep.mubr.msk.bf16.mxu0 %vm190_vm0, %v517_v15  ;;  %445 = vmatprep.mubr.msk.bf16.mxu1 %vm190_vm0, %v519_v16 }
  0x31   :  { %256 = vmatmul.mubr.bf16.gmra.mrb[4].mxu0 %v521_v17  ;;  %288 = vmatmul.mubr.bf16.gmra.mrb[4].mxu1 %v522_v18 }
  0x32   :  { %442 = vmatprep.mubr.msk.bf16.mxu0 %vm190_vm0, %v523_v19  ;;  %446 = vmatprep.mubr.msk.bf16.mxu1 %vm190_vm0, %v525_v20 }
  0x39   :  { %264 = vmatmul.mubr.bf16.gmra.mrb[8].mxu0 %v527_v21  ;;  %296 = vmatmul.mubr.bf16.gmra.mrb[8].mxu1 %v528_v22 }
  0x3a   :  { %443 = vmatprep.mubr.msk.bf16.mxu0 %vm190_vm0, %v529_v23  ;;  %447 = vmatprep.mubr.msk.bf16.mxu1 %vm190_vm0, %v531_v24 }
  0x41   :  { %272 = vmatmul.mubr.bf16.gmra.mrb[12].mxu0 %v533_v25  ;;  %304 = vmatmul.mubr.bf16.gmra.mrb[12].mxu1 %v534_v26 }
  0xfc   :  { %v249_v28 = vpop.f32.mrb[0].mxu0  ;;  %v281_v29 = vpop.f32.mrb[0].mxu1 }
  0xfd   :  { %v250_v30 = vadd.f32 %v645_v27, %v249_v28  ;;  %v282_v31 = vadd.f32 %v645_v27, %v281_v29  ;;  %v251_v32 = vpop.f32.mrb[1].mxu0  ;;  %v283_v33 = vpop.f32.mrb[1].mxu1 }
  0xfe   :  { %v252_v34 = vpop.f32.mrb[2].mxu0  ;;  %v284_v35 = vpop.f32.mrb[2].mxu1 }
  0xff   :  { %v312_v36 = vmax.f32 %v250_v30, 0.0  ;;  %v320_v37 = vmax.f32 %v282_v31, 0.0  ;;  %v253_v38 = vadd.f32 %v645_v27, %v252_v34  ;;  %v285_v39 = vadd.f32 %v645_v27, %v284_v35  ;;  %v254_v40 = vpop.f32.mrb[3].mxu0  ;;  %v286_v41 = vpop.f32.mrb[3].mxu1 }
 0x101   :  { %v464_v42 = vpack.c.bf16 %v312_v36, %v312_v36  ;;  %v472_v43 = vpack.c.bf16 %v320_v37, %v320_v37  ;;  %v313_v44 = vmax.f32 %v253_v38, 0.0  ;;  %v321_v45 = vmax.f32 %v285_v39, 0.0 }
 0x103   :  { %393 = vst.msk [vmem:[%s730_s3] sm:$0xf] %vm392_vm1, %v464_v42  ;;  %401 = vst.msk [vmem:[%s730_s3 + $0x20] sm:$0xf] %vm392_vm1, %v472_v43  ;;  %v465_v46 = vpack.c.bf16 %v313_v44, %v313_v44  ;;  %v473_v47 = vpack.c.bf16 %v321_v45, %v321_v45 }
 0x104   :  { %v257_v48 = vpop.f32.mrb[4].mxu0  ;;  %v289_v49 = vpop.f32.mrb[4].mxu1 }
 0x105   :  { %394 = vst.msk [vmem:[%s730_s3 + $0x4] sm:$0xf] %vm392_vm1, %v465_v46  ;;  %402 = vst.msk [vmem:[%s730_s3 + $0x24] sm:$0xf] %vm392_vm1, %v473_v47  ;;  %v258_v50 = vadd.f32 %v645_v27, %v257_v48  ;;  %v290_v51 = vadd.f32 %v645_v27, %v289_v49  ;;  %v259_v52 = vpop.f32.mrb[5].mxu0  ;;  %v291_v53 = vpop.f32.mrb[5].mxu1 }
 0x106   :  { %v260_v54 = vpop.f32.mrb[6].mxu0  ;;  %v292_v55 = vpop.f32.mrb[6].mxu1 }
 0x107   :  { %v314_v56 = vmax.f32 %v258_v50, 0.0  ;;  %v322_v57 = vmax.f32 %v290_v51, 0.0  ;;  %v261_v58 = vadd.f32 %v645_v27, %v260_v54  ;;  %v293_v59 = vadd.f32 %v645_v27, %v292_v55  ;;  %v262_v60 = vpop.f32.mrb[7].mxu0  ;;  %v294_v61 = vpop.f32.mrb[7].mxu1 }
 0x109   :  { %v466_v62 = vpack.c.bf16 %v314_v56, %v314_v56  ;;  %v474_v63 = vpack.c.bf16 %v322_v57, %v322_v57  ;;  %v315_v0 = vmax.f32 %v261_v58, 0.0  ;;  %v323_v1 = vmax.f32 %v293_v59, 0.0 }
 0x10b   :  { %395 = vst.msk [vmem:[%s730_s3 + $0x8] sm:$0xf] %vm392_vm1, %v466_v62  ;;  %403 = vst.msk [vmem:[%s730_s3 + $0x28] sm:$0xf] %vm392_vm1, %v474_v63  ;;  %v467_v2 = vpack.c.bf16 %v315_v0, %v315_v0  ;;  %v475_v3 = vpack.c.bf16 %v323_v1, %v323_v1 }
 0x10c   :  { %v265_v4 = vpop.f32.mrb[8].mxu0  ;;  %v297_v5 = vpop.f32.mrb[8].mxu1 }
 0x10d   :  { %396 = vst.msk [vmem:[%s730_s3 + $0xc] sm:$0xf] %vm392_vm1, %v467_v2  ;;  %404 = vst.msk [vmem:[%s730_s3 + $0x2c] sm:$0xf] %vm392_vm1, %v475_v3  ;;  %v266_v6 = vadd.f32 %v645_v27, %v265_v4  ;;  %v298_v7 = vadd.f32 %v645_v27, %v297_v5  ;;  %v267_v8 = vpop.f32.mrb[9].mxu0  ;;  %v299_v9 = vpop.f32.mrb[9].mxu1 }
 0x10e   :  { %v268_v10 = vpop.f32.mrb[10].mxu0  ;;  %v300_v11 = vpop.f32.mrb[10].mxu1 }
 0x10f   :  { %v316_v12 = vmax.f32 %v266_v6, 0.0  ;;  %v324_v13 = vmax.f32 %v298_v7, 0.0  ;;  %v269_v14 = vadd.f32 %v645_v27, %v268_v10  ;;  %v301_v15 = vadd.f32 %v645_v27, %v300_v11  ;;  %v270_v16 = vpop.f32.mrb[11].mxu0  ;;  %v302_v17 = vpop.f32.mrb[11].mxu1 }
 0x111   :  { %v468_v18 = vpack.c.bf16 %v316_v12, %v316_v12  ;;  %v476_v19 = vpack.c.bf16 %v324_v13, %v324_v13  ;;  %v317_v20 = vmax.f32 %v269_v14, 0.0  ;;  %v325_v21 = vmax.f32 %v301_v15, 0.0 }
 0x113   :  { %397 = vst.msk [vmem:[%s730_s3 + $0x10] sm:$0xf] %vm392_vm1, %v468_v18  ;;  %405 = vst.msk [vmem:[%s730_s3 + $0x30] sm:$0xf] %vm392_vm1, %v476_v19  ;;  %v469_v22 = vpack.c.bf16 %v317_v20, %v317_v20  ;;  %v477_v23 = vpack.c.bf16 %v325_v21, %v325_v21 }
 0x114   :  { %v273_v24 = vpop.f32.mrb[12].mxu0  ;;  %v305_v25 = vpop.f32.mrb[12].mxu1 }
 0x115   :  { %398 = vst.msk [vmem:[%s730_s3 + $0x14] sm:$0xf] %vm392_vm1, %v469_v22  ;;  %406 = vst.msk [vmem:[%s730_s3 + $0x34] sm:$0xf] %vm392_vm1, %v477_v23  ;;  %v274_v26 = vadd.f32 %v645_v27, %v273_v24  ;;  %v306_v28 = vadd.f32 %v645_v27, %v305_v25  ;;  %v275_v29 = vpop.f32.mrb[13].mxu0  ;;  %v307_v30 = vpop.f32.mrb[13].mxu1 }
 0x116   :  { %v276_v31 = vpop.f32.mrb[14].mxu0  ;;  %v308_v32 = vpop.f32.mrb[14].mxu1 }
 0x117   :  { %v318_v33 = vmax.f32 %v274_v26, 0.0  ;;  %v326_v34 = vmax.f32 %v306_v28, 0.0  ;;  %v277_v35 = vadd.f32 %v645_v27, %v276_v31  ;;  %v309_v36 = vadd.f32 %v645_v27, %v308_v32  ;;  %v278_v37 = vpop.f32.mrb[15].mxu0  ;;  %v310_v38 = vpop.f32.mrb[15].mxu1 }
 0x119   :  { %v470_v39 = vpack.c.bf16 %v318_v33, %v318_v33  ;;  %v478_v40 = vpack.c.bf16 %v326_v34, %v326_v34  ;;  %v319_v41 = vmax.f32 %v277_v35, 0.0  ;;  %v327_v42 = vmax.f32 %v309_v36, 0.0 }
 0x11b   :  { %399 = vst.msk [vmem:[%s730_s3 + $0x18] sm:$0xf] %vm392_vm1, %v470_v39  ;;  %407 = vst.msk [vmem:[%s730_s3 + $0x38] sm:$0xf] %vm392_vm1, %v478_v40  ;;  %v471_v43 = vpack.c.bf16 %v319_v41, %v319_v41  ;;  %v479_v44 = vpack.c.bf16 %v327_v42, %v327_v42 }
 0x11d   :  { %400 = vst.msk [vmem:[%s730_s3 + $0x1c] sm:$0xf] %vm392_vm1, %v471_v43  ;;  %408 = vst.msk [vmem:[%s730_s3 + $0x3c] sm:$0xf] %vm392_vm1, %v479_v44 }

// kernel: gamma_forward.7
= control target key start
LH: loop header
LB: loop body
LE: loop exit
PB: predicated region body
PF: predicated region fallthrough
CT: control target
= control target key end

     0   :  { %v52_v36 = vlaneseq  ;;  %vm327_vm0 = vcmask 1043456   ;;  %vm328_vm1 = vcmask 523268   ;;  %s613_s1 = inlined_call_operand.vmem [shape: bf16[256,192], index: 1, kind: input, shape index: {}]   ;;  %s614_s0 = inlined_call_operand.vmem [shape: bf16[32,256], index: 0, kind: input, shape index: {}]   ;;  %s615_s2 = inlined_call_operand.vmem [shape: f32[1,192], index: 2, kind: input, shape index: {}]   ;;  %s616_s3 = inlined_call_operand.vmem [shape: bf16[32,192], index: 3, kind: output, shape index: {}]  }
   0x1   :  { %v414_v0 = vld [vmem:[%s613_s1 + $0x4] ss:$8 sps:$4 sm:$0xff]   ;;  %v416_v1 = vld [vmem:[%s613_s1] ss:$8 sps:$4 sm:$0xff]   ;;  %v417_v2 = vld [vmem:[%s613_s1 + $0x14] ss:$8 sps:$4 sm:$0xff]  }
   0x2   :  { %242 = vmatprep.subr.bf16.mxu0 %v414_v0  ;;  %382 = vmatprep.subr.bf16.mxu1 %v414_v0  ;;  %v419_v3 = vld [vmem:[%s613_s1 + $0x10] ss:$8 sps:$4 sm:$0xff]   ;;  %v420_v4 = vld [vmem:[%s613_s1 + $0x24] ss:$8 sps:$4 sm:$0xff]   ;;  %v422_v5 = vld [vmem:[%s613_s1 + $0x20] ss:$8 sps:$4 sm:$0xff]  }
   0x3   :  { %243 = vmatpush1.bf16.msra.mxu0 %v416_v1  ;;  %398 = vmatpush1.bf16.msra.mxu1 %v416_v1  ;;  %v423_v6 = vld [vmem:[%s613_s1 + $0x34] ss:$8 sps:$4 sm:$0xff]   ;;  %v425_v7 = vld [vmem:[%s613_s1 + $0x30] ss:$8 sps:$4 sm:$0xff]   ;;  %v426_v8 = vld [vmem:[%s613_s1 + $0x44] ss:$8 sps:$4 sm:$0xff]  }
   0x4   :  { %244 = vmatprep.subr.bf16.mxu0 %v417_v2  ;;  %383 = vmatprep.subr.bf16.mxu1 %v417_v2  ;;  %v428_v9 = vld [vmem:[%s613_s1 + $0x40] ss:$8 sps:$4 sm:$0xff]   ;;  %v429_v10 = vld [vmem:[%s613_s1 + $0x54] ss:$8 sps:$4 sm:$0xff]   ;;  %v431_v11 = vld [vmem:[%s613_s1 + $0x50] ss:$8 sps:$4 sm:$0xff]  }
   0x5   :  { %v432_v12 = vld [vmem:[%s613_s1 + $0x64] ss:$8 sps:$4 sm:$0xff]   ;;  %v434_v14 = vld [vmem:[%s613_s1 + $0x60] ss:$8 sps:$4 sm:$0xff]   ;;  %v467_v15 = vld [vmem:[%s614_s0 + $0x14] ss:$8 sps:$4 sm:$0xff]  }
   0x6   :  { %v464_v13 = vld [vmem:[%s614_s0 + $0x4] ss:$8 sps:$4 sm:$0xff]   ;;  %v435_v16 = vld [vmem:[%s613_s1 + $0x74] ss:$8 sps:$4 sm:$0xff]   ;;  %284 = vmatprep.mubr.bf16.mxu1 %v467_v15  ;;  %v437_v17 = vld [vmem:[%s613_s1 + $0x70] ss:$8 sps:$4 sm:$0xff]  }
   0x7   :  { %245 = vmatpush1.bf16.msra.mxu0 %v419_v3  ;;  %399 = vmatpush1.bf16.msra.mxu1 %v419_v3  ;;  %v438_v18 = vld [vmem:[%s613_s1 + $0x84] ss:$8 sps:$4 sm:$0xff]   ;;  %v440_v19 = vld [vmem:[%s613_s1 + $0x80] ss:$8 sps:$4 sm:$0xff]   ;;  %v441_v20 = vld [vmem:[%s613_s1 + $0x94] ss:$8 sps:$4 sm:$0xff]  }
   0x8   :  { %246 = vmatprep.subr.bf16.mxu0 %v420_v4  ;;  %384 = vmatprep.subr.bf16.mxu1 %v420_v4  ;;  %v443_v21 = vld [vmem:[%s613_s1 + $0x90] ss:$8 sps:$4 sm:$0xff]   ;;  %v444_v22 = vld [vmem:[%s613_s1 + $0xa4] ss:$8 sps:$4 sm:$0xff]   ;;  %v446_v23 = vld [vmem:[%s613_s1 + $0xa0] ss:$8 sps:$4 sm:$0xff]  }
   0x9   :  { %274 = vmatprep.mubr.bf16.mxu0 %v464_v13  ;;  %v447_v24 = vld [vmem:[%s613_s1 + $0xb4] ss:$8 sps:$4 sm:$0xff]   ;;  %v449_v25 = vld [vmem:[%s613_s1 + $0xb0] ss:$8 sps:$4 sm:$0xff]   ;;  %v450_v26 = vld [vmem:[%s613_s1 + $0xc4] ss:$8 sps:$4 sm:$0xff]  }
   0xa   :  { %v452_v27 = vld [vmem:[%s613_s1 + $0xc0] ss:$8 sps:$4 sm:$0xff]   ;;  %v453_v28 = vld [vmem:[%s613_s1 + $0xd4] ss:$8 sps:$4 sm:$0xff]   ;;  %v455_v29 = vld [vmem:[%s613_s1 + $0xd0] ss:$8 sps:$4 sm:$0xff]  }
   0xb   :  { %247 = vmatpush1.bf16.msra.mxu0 %v422_v5  ;;  %400 = vmatpush1.bf16.msra.mxu1 %v422_v5  ;;  %v456_v30 = vld [vmem:[%s613_s1 + $0xe4] ss:$8 sps:$4 sm:$0xff]   ;;  %v458_v31 = vld [vmem:[%s613_s1 + $0xe0] ss:$8 sps:$4 sm:$0xff]   ;;  %v459_v32 = vld [vmem:[%s613_s1 + $0xf4] ss:$8 sps:$4 sm:$0xff]  }
   0xc   :  { %248 = vmatprep.subr.bf16.mxu0 %v423_v6  ;;  %385 = vmatprep.subr.bf16.mxu1 %v423_v6  ;;  %v461_v33 = vld [vmem:[%s613_s1 + $0xf0] ss:$8 sps:$4 sm:$0xff]   ;;  %v462_v34 = vld [vmem:[%s614_s0] ss:$8 sps:$4 sm:$0xff]   ;;  %v53_v37 = vshrl.u32 %v52_v36, 7  ;;  %vm329_vm2 = vmor %vm328_vm1, %vm327_vm0 }
   0xd   :  { %v465_v35 = vld [vmem:[%s614_s0 + $0x10] ss:$8 sps:$4 sm:$0xff]   ;;  %v50_v39 = vld [vmem:[%s615_s2] sm:$0x3] }
   0xe   :  { %v54_v38 = vsub.s32 0, %v53_v37  ;;  %v58_v40 = vsub.s32 1, %v53_v37 }
   0xf   :  { %249 = vmatpush1.bf16.msra.mxu0 %v425_v7  ;;  %401 = vmatpush1.bf16.msra.mxu1 %v425_v7 }
  0x10   :  { %250 = vmatprep.subr.bf16.mxu0 %v426_v8  ;;  %386 = vmatprep.subr.bf16.mxu1 %v426_v8  ;;  %v55_v41 = vrot.slane %v50_v39, %v54_v38  ;;  %v59_v42 = vrot.slane %v50_v39, %v58_v40 }
  0x13   :  { %251 = vmatpush1.bf16.msra.mxu0 %v428_v9  ;;  %402 = vmatpush1.bf16.msra.mxu1 %v428_v9 }
  0x14   :  { %252 = vmatprep.subr.bf16.mxu0 %v429_v10  ;;  %387 = vmatprep.subr.bf16.mxu1 %v429_v10 }
  0x17   :  { %253 = vmatpush1.bf16.msra.mxu0 %v431_v11  ;;  %403 = vmatpush1.bf16.msra.mxu1 %v431_v11 }
  0x18   :  { %254 = vmatprep.subr.bf16.mxu0 %v432_v12  ;;  %388 = vmatprep.subr.bf16.mxu1 %v432_v12 }
  0x1b   :  { %255 = vmatpush1.bf16.msra.mxu0 %v434_v14  ;;  %404 = vmatpush1.bf16.msra.mxu1 %v434_v14 }
  0x1c   :  { %256 = vmatprep.subr.bf16.mxu0 %v435_v16  ;;  %389 = vmatprep.subr.bf16.mxu1 %v435_v16 }
  0x1f   :  { %257 = vmatpush1.bf16.msra.mxu0 %v437_v17  ;;  %405 = vmatpush1.bf16.msra.mxu1 %v437_v17 }
  0x20   :  { %258 = vmatprep.subr.bf16.mxu0 %v438_v18  ;;  %390 = vmatprep.subr.bf16.mxu1 %v438_v18 }
  0x23   :  { %259 = vmatpush1.bf16.msra.mxu0 %v440_v19  ;;  %406 = vmatpush1.bf16.msra.mxu1 %v440_v19 }
  0x24   :  { %260 = vmatprep.subr.bf16.mxu0 %v441_v20  ;;  %391 = vmatprep.subr.bf16.mxu1 %v441_v20 }
  0x27   :  { %261 = vmatpush1.bf16.msra.mxu0 %v443_v21  ;;  %407 = vmatpush1.bf16.msra.mxu1 %v443_v21 }
  0x28   :  { %262 = vmatprep.subr.bf16.mxu0 %v444_v22  ;;  %392 = vmatprep.subr.bf16.mxu1 %v444_v22 }
  0x2b   :  { %263 = vmatpush1.bf16.msra.mxu0 %v446_v23  ;;  %408 = vmatpush1.bf16.msra.mxu1 %v446_v23 }
  0x2c   :  { %264 = vmatprep.subr.bf16.mxu0 %v447_v24  ;;  %393 = vmatprep.subr.bf16.mxu1 %v447_v24 }
  0x2f   :  { %265 = vmatpush1.bf16.msra.mxu0 %v449_v25  ;;  %409 = vmatpush1.bf16.msra.mxu1 %v449_v25 }
  0x30   :  { %266 = vmatprep.subr.bf16.mxu0 %v450_v26  ;;  %394 = vmatprep.subr.bf16.mxu1 %v450_v26 }
  0x33   :  { %267 = vmatpush1.bf16.msra.mxu0 %v452_v27  ;;  %410 = vmatpush1.bf16.msra.mxu1 %v452_v27 }
  0x34   :  { %268 = vmatprep.subr.bf16.mxu0 %v453_v28  ;;  %395 = vmatprep.subr.bf16.mxu1 %v453_v28 }
  0x37   :  { %269 = vmatpush1.bf16.msra.mxu0 %v455_v29  ;;  %411 = vmatpush1.bf16.msra.mxu1 %v455_v29 }
  0x38   :  { %270 = vmatprep.subr.bf16.mxu0 %v456_v30  ;;  %396 = vmatprep.subr.bf16.mxu1 %v456_v30 }
  0x3b   :  { %271 = vmatpush1.bf16.msra.mxu0 %v458_v31  ;;  %412 = vmatpush1.bf16.msra.mxu1 %v458_v31 }
  0x3c   :  { %272 = vmatprep.subr.bf16.mxu0 %v459_v32  ;;  %397 = vmatprep.subr.bf16.mxu1 %v459_v32 }
  0x3f   :  { %273 = vmatpush1.bf16.msra.mxu0 %v461_v33  ;;  %413 = vmatpush1.bf16.msra.mxu1 %v461_v33 }
  0x42   :  { %275 = vmatmul.mubr.bf16.vlgmr.msra.gmra.mrb[0].mxu0 %v462_v34  ;;  %285 = vmatmul.mubr.bf16.vlgmr.msra.gmra.mrb[0].mxu1 %v465_v35 }
 0x115   :  { %v276_v43 = vpop.f32.mrb[0].mxu0  ;;  %v286_v44 = vpop.f32.mrb[0].mxu1 }
 0x116   :  { %v277_v45 = vadd.f32 %v276_v43, %v55_v41  ;;  %v287_v46 = vadd.f32 %v286_v44, %v55_v41  ;;  %v278_v47 = vpop.f32.mrb[1].mxu0  ;;  %v288_v48 = vpop.f32.mrb[1].mxu1 }
 0x117   :  { %v279_v49 = vadd.f32 %v278_v47, %v59_v42  ;;  %v289_v50 = vadd.f32 %v288_v48, %v59_v42  ;;  %v280_v51 = vpop.f32.mrb[2].mxu0  ;;  %v290_v52 = vpop.f32.mrb[2].mxu1 }
 0x118   :  { %v295_v53 = vmax.f32 %v277_v45, 0.0  ;;  %v299_v54 = vmax.f32 %v287_v46, 0.0  ;;  %v281_v55 = vadd.f32 %v280_v51, %v55_v41  ;;  %v291_v56 = vadd.f32 %v290_v52, %v55_v41  ;;  %v282_v57 = vpop.f32.mrb[3].mxu0  ;;  %v292_v58 = vpop.f32.mrb[3].mxu1 }
 0x119   :  { %v296_v59 = vmax.f32 %v279_v49, 0.0  ;;  %v300_v60 = vmax.f32 %v289_v50, 0.0  ;;  %v283_v61 = vadd.f32 %v282_v57, %v59_v42  ;;  %v293_v62 = vadd.f32 %v292_v58, %v59_v42 }
 0x11a   :  { %v297_v63 = vmax.f32 %v281_v55, 0.0  ;;  %v301_v0 = vmax.f32 %v291_v56, 0.0 }
 0x11b   :  { %v378_v1 = vpack.c.bf16 %v296_v59, %v295_v53  ;;  %v380_v2 = vpack.c.bf16 %v300_v60, %v299_v54  ;;  %v298_v3 = vmax.f32 %v283_v61, 0.0  ;;  %v302_v4 = vmax.f32 %v293_v62, 0.0 }
 0x11d   :  { %330 = vst.msk [vmem:[%s616_s3] sm:$0xff] %vm329_vm2, %v378_v1  ;;  %332 = vst.msk [vmem:[%s616_s3 + $0x10] sm:$0xff] %vm329_vm2, %v380_v2  ;;  %v379_v5 = vpack.c.bf16 %v298_v3, %v297_v63  ;;  %v381_v6 = vpack.c.bf16 %v302_v4, %v301_v0 }
 0x11f   :  { %331 = vst.msk [vmem:[%s616_s3 + $0x8] sm:$0xff] %vm329_vm2, %v379_v5  ;;  %333 = vst.msk [vmem:[%s616_s3 + $0x18] sm:$0xff] %vm329_vm2, %v381_v6 }

// kernel: gamma_forward.8
= control target key start
LH: loop header
LB: loop body
LE: loop exit
PB: predicated region body
PF: predicated region fallthrough
CT: control target
= control target key end

     0   :  { %s2197_s1 = inlined_call_operand.vmem [shape: bf16[768,384], index: 1, kind: input, shape index: {}]   ;;  %s2198_s0 = inlined_call_operand.vmem [shape: bf16[8,768], index: 0, kind: input, shape index: {}]   ;;  %s2199_s2 = inlined_call_operand.vmem [shape: f32[1,384], index: 2, kind: input, shape index: {}]   ;;  %s2200_s3 = inlined_call_operand.vmem [shape: bf16[8,384], index: 3, kind: output, shape index: {}]  }
   0x1   :  { %v1509_v0 = vld [vmem:[%s2197_s1 + $0x4] ss:$12 sps:$4 sm:$0xff]   ;;  %v1513_v2 = vld [vmem:[%s2197_s1] ss:$12 sps:$4 sm:$0xff]   ;;  %v1515_v4 = vld [vmem:[%s2197_s1 + $0x1c] ss:$12 sps:$4 sm:$0xff]  }
   0x2   :  { %v1511_v1 = vld [vmem:[%s2197_s1 + $0x184] ss:$12 sps:$4 sm:$0xff]   ;;  %1016 = vmatprep.subr.bf16.mxu1 %v1509_v0  ;;  %v1514_v3 = vld [vmem:[%s2197_s1 + $0x180] ss:$12 sps:$4 sm:$0xff]   ;;  %v1517_v5 = vld [vmem:[%s2197_s1 + $0x19c] ss:$12 sps:$4 sm:$0xff]  }
   0x3   :  { %1057 = vmatprep.subr.bf16.mxu0 %v1511_v1  ;;  %1017 = vmatpush1.bf16.msra.mxu1 %v1513_v2  ;;  %v1519_v6 = vld [vmem:[%s2197_s1 + $0x18] ss:$12 sps:$4 sm:$0xff]   ;;  %v1521_v8 = vld [vmem:[%s2197_s1 + $0x34] ss:$12 sps:$4 sm:$0xff]   ;;  %v1525_v10 = vld [vmem:[%s2197_s1 + $0x30] ss:$12 sps:$4 sm:$0xff]  }
   0x4   :  { %1058 = vmatpush1.bf16.msra.mxu0 %v1514_v3  ;;  %1018 = vmatprep.subr.bf16.mxu1 %v1515_v4  ;;  %v1520_v7 = vld [vmem:[%s2197_s1 + $0x198] ss:$12 sps:$4 sm:$0xff]   ;;  %v1523_v9 = vld [vmem:[%s2197_s1 + $0x1b4] ss:$12 sps:$4 sm:$0xff]   ;;  %v1526_v11 = vld [vmem:[%s2197_s1 + $0x1b0] ss:$12 sps:$4 sm:$0xff]  }
   0x5   :  { %1059 = vmatprep.subr.bf16.mxu0 %v1517_v5  ;;  %v1527_v12 = vld [vmem:[%s2197_s1 + $0x4c] ss:$12 sps:$4 sm:$0xff]   ;;  %v1531_v14 = vld [vmem:[%s2197_s1 + $0x48] ss:$12 sps:$4 sm:$0xff]   ;;  %v1533_v16 = vld [vmem:[%s2197_s1 + $0x64] ss:$12 sps:$4 sm:$0xff]  }
   0x6   :  { %v1529_v13 = vld [vmem:[%s2197_s1 + $0x1cc] ss:$12 sps:$4 sm:$0xff]   ;;  %v1532_v15 = vld [vmem:[%s2197_s1 + $0x1c8] ss:$12 sps:$4 sm:$0xff]   ;;  %v1535_v17 = vld [vmem:[%s2197_s1 + $0x1e4] ss:$12 sps:$4 sm:$0xff]  }
   0x7   :  { %1019 = vmatpush1.bf16.msra.mxu1 %v1519_v6  ;;  %v1537_v18 = vld [vmem:[%s2197_s1 + $0x60] ss:$12 sps:$4 sm:$0xff]   ;;  %v1539_v20 = vld [vmem:[%s2197_s1 + $0x7c] ss:$12 sps:$4 sm:$0xff]   ;;  %v1543_v22 = vld [vmem:[%s2197_s1 + $0x78] ss:$12 sps:$4 sm:$0xff]  }
   0x8   :  { %1060 = vmatpush1.bf16.msra.mxu0 %v1520_v7  ;;  %1020 = vmatprep.subr.bf16.mxu1 %v1521_v8  ;;  %v1538_v19 = vld [vmem:[%s2197_s1 + $0x1e0] ss:$12 sps:$4 sm:$0xff]   ;;  %v1541_v21 = vld [vmem:[%s2197_s1 + $0x1fc] ss:$12 sps:$4 sm:$0xff]   ;;  %v1544_v23 = vld [vmem:[%s2197_s1 + $0x1f8] ss:$12 sps:$4 sm:$0xff]  }
   0x9   :  { %1061 = vmatprep.subr.bf16.mxu0 %v1523_v9  ;;  %v1545_v24 = vld [vmem:[%s2197_s1 + $0x94] ss:$12 sps:$4 sm:$0xff]   ;;  %v1549_v26 = vld [vmem:[%s2197_s1 + $0x90] ss:$12 sps:$4 sm:$0xff]   ;;  %v1551_v28 = vld [vmem:[%s2197_s1 + $0xac] ss:$12 sps:$4 sm:$0xff]  }
   0xa   :  { %v1547_v25 = vld [vmem:[%s2197_s1 + $0x214] ss:$12 sps:$4 sm:$0xff]   ;;  %v1550_v27 = vld [vmem:[%s2197_s1 + $0x210] ss:$12 sps:$4 sm:$0xff]   ;;  %v1553_v29 = vld [vmem:[%s2197_s1 + $0x22c] ss:$12 sps:$4 sm:$0xff]  }
   0xb   :  { %1021 = vmatpush1.bf16.msra.mxu1 %v1525_v10  ;;  %v1555_v30 = vld [vmem:[%s2197_s1 + $0xa8] ss:$12 sps:$4 sm:$0xff]   ;;  %v1557_v32 = vld [vmem:[%s2197_s1 + $0xc4] ss:$12 sps:$4 sm:$0xff]   ;;  %v1561_v34 = vld [vmem:[%s2197_s1 + $0xc0] ss:$12 sps:$4 sm:$0xff]  }
   0xc   :  { %1062 = vmatpush1.bf16.msra.mxu0 %v1526_v11  ;;  %1022 = vmatprep.subr.bf16.mxu1 %v1527_v12  ;;  %v1556_v31 = vld [vmem:[%s2197_s1 + $0x228] ss:$12 sps:$4 sm:$0xff]   ;;  %v1559_v33 = vld [vmem:[%s2197_s1 + $0x244] ss:$12 sps:$4 sm:$0xff]   ;;  %v1562_v35 = vld [vmem:[%s2197_s1 + $0x240] ss:$12 sps:$4 sm:$0xff]  }
   0xd   :  { %1063 = vmatprep.subr.bf16.mxu0 %v1529_v13  ;;  %v1563_v36 = vld [vmem:[%s2197_s1 + $0xdc] ss:$12 sps:$4 sm:$0xff]   ;;  %v1567_v38 = vld [vmem:[%s2197_s1 + $0xd8] ss:$12 sps:$4 sm:$0xff]   ;;  %v1569_v40 = vld [vmem:[%s2197_s1 + $0xf4] ss:$12 sps:$4 sm:$0xff]  }
   0xe   :  { %v1565_v37 = vld [vmem:[%s2197_s1 + $0x25c] ss:$12 sps:$4 sm:$0xff]   ;;  %v1568_v39 = vld [vmem:[%s2197_s1 + $0x258] ss:$12 sps:$4 sm:$0xff]   ;;  %v1571_v41 = vld [vmem:[%s2197_s1 + $0x274] ss:$12 sps:$4 sm:$0xff]  }
   0xf   :  { %1023 = vmatpush1.bf16.msra.mxu1 %v1531_v14  ;;  %v1573_v42 = vld [vmem:[%s2197_s1 + $0xf0] ss:$12 sps:$4 sm:$0xff]   ;;  %v1575_v44 = vld [vmem:[%s2197_s1 + $0x10c] ss:$12 sps:$4 sm:$0xff]   ;;  %v1579_v46 = vld [vmem:[%s2197_s1 + $0x108] ss:$12 sps:$4 sm:$0xff]  }
  0x10   :  { %1064 = vmatpush1.bf16.msra.mxu0 %v1532_v15  ;;  %1024 = vmatprep.subr.bf16.mxu1 %v1533_v16  ;;  %v1574_v43 = vld [vmem:[%s2197_s1 + $0x270] ss:$12 sps:$4 sm:$0xff]   ;;  %v1577_v45 = vld [vmem:[%s2197_s1 + $0x28c] ss:$12 sps:$4 sm:$0xff]   ;;  %v15_v47 = vld [vmem:[%s2198_s0] sm:$0xff] }
  0x11   :  { %1065 = vmatprep.subr.bf16.mxu0 %v1535_v17  ;;  %v1871_v48 = vcombine.high %v15_v47, %v15_v47  ;;  %v16_v49 = vld [vmem:[%s2198_s0 + $0x8] sm:$0xff]  ;;  %v1581_v51 = vld [vmem:[%s2197_s1 + $0x124] ss:$12 sps:$4 sm:$0xff]   ;;  %v1593_v60 = vld [vmem:[%s2197_s1 + $0x154] ss:$12 sps:$4 sm:$0xff]   ;;  %v1937_v6 = vcombine.low %v15_v47, %v15_v47 }
  0x12   :  { %v1580_v50 = vld [vmem:[%s2197_s1 + $0x288] ss:$12 sps:$4 sm:$0xff]   ;;  %v1882_v52 = vcombine.high %v16_v49, %v16_v49  ;;  %v1583_v53 = vld [vmem:[%s2197_s1 + $0x2a4] ss:$12 sps:$4 sm:$0xff]   ;;  %v1585_v54 = vld [vmem:[%s2197_s1 + $0x120] ss:$12 sps:$4 sm:$0xff]   ;;  %v1939_v7 = vcombine.low %v16_v49, %v16_v49 }
  0x13   :  { %1025 = vmatpush1.bf16.msra.mxu1 %v1537_v18  ;;  %1048 = vmatprep.mubr.bf16.mxu1 %v1871_v48  ;;  %v1586_v55 = vld [vmem:[%s2197_s1 + $0x2a0] ss:$12 sps:$4 sm:$0xff]   ;;  %v1587_v56 = vld [vmem:[%s2197_s1 + $0x13c] ss:$12 sps:$4 sm:$0xff]   ;;  %v1591_v58 = vld [vmem:[%s2197_s1 + $0x138] ss:$12 sps:$4 sm:$0xff]  }
  0x14   :  { %1066 = vmatpush1.bf16.msra.mxu0 %v1538_v19  ;;  %1026 = vmatprep.subr.bf16.mxu1 %v1539_v20  ;;  %v1589_v57 = vld [vmem:[%s2197_s1 + $0x2bc] ss:$12 sps:$4 sm:$0xff]   ;;  %v1592_v59 = vld [vmem:[%s2197_s1 + $0x2b8] ss:$12 sps:$4 sm:$0xff]   ;;  %v1595_v61 = vld [vmem:[%s2197_s1 + $0x2d4] ss:$12 sps:$4 sm:$0xff]  }
  0x15   :  { %1067 = vmatprep.subr.bf16.mxu0 %v1541_v21  ;;  %1089 = vmatprep.mubr.bf16.mxu0 %v1882_v52  ;;  %v1597_v62 = vld [vmem:[%s2197_s1 + $0x150] ss:$12 sps:$4 sm:$0xff]   ;;  %v1599_v0 = vld [vmem:[%s2197_s1 + $0x16c] ss:$12 sps:$4 sm:$0xff]   ;;  %v1603_v2 = vld [vmem:[%s2197_s1 + $0x168] ss:$12 sps:$4 sm:$0xff]  }
  0x16   :  { %v1598_v63 = vld [vmem:[%s2197_s1 + $0x2d0] ss:$12 sps:$4 sm:$0xff]   ;;  %v1601_v1 = vld [vmem:[%s2197_s1 + $0x2ec] ss:$12 sps:$4 sm:$0xff]   ;;  %v1604_v3 = vld [vmem:[%s2197_s1 + $0x2e8] ss:$12 sps:$4 sm:$0xff]  }
  0x17   :  { %1027 = vmatpush1.bf16.msra.mxu1 %v1543_v22  ;;  %v1611_v4 = vld [vmem:[%s2197_s1 + $0x304] ss:$12 sps:$4 sm:$0xff]   ;;  %v1612_v5 = vld [vmem:[%s2197_s1 + $0xc8] ss:$12 sps:$4 sm:$0xff]   ;;  %v1609_v8 = vld [vmem:[%s2197_s1 + $0x300] ss:$12 sps:$4 sm:$0xff]  }
  0x18   :  { %1068 = vmatpush1.bf16.msra.mxu0 %v1544_v23  ;;  %1028 = vmatprep.subr.bf16.mxu1 %v1545_v24  ;;  %v1613_v9 = vld [vmem:[%s2197_s1 + $0x8] ss:$12 sps:$4 sm:$0xff]   ;;  %v1617_v11 = vld [vmem:[%s2197_s1 + $0xe0] ss:$12 sps:$4 sm:$0xff]   ;;  %v1614_v12 = vld [vmem:[%s2197_s1 + $0x318] ss:$12 sps:$4 sm:$0xff]  }
  0x19   :  { %1069 = vmatprep.subr.bf16.mxu0 %v1547_v25  ;;  %v1616_v10 = vld [vmem:[%s2197_s1 + $0x31c] ss:$12 sps:$4 sm:$0xff]   ;;  %v1618_v13 = vld [vmem:[%s2197_s1 + $0x20] ss:$12 sps:$4 sm:$0xff]   ;;  %v1622_v15 = vld [vmem:[%s2197_s1 + $0xf8] ss:$12 sps:$4 sm:$0xff]  }
  0x1a   :  { %v1621_v14 = vld [vmem:[%s2197_s1 + $0x334] ss:$12 sps:$4 sm:$0xff]   ;;  %v1619_v16 = vld [vmem:[%s2197_s1 + $0x330] ss:$12 sps:$4 sm:$0xff]   ;;  %v1623_v17 = vld [vmem:[%s2197_s1 + $0x38] ss:$12 sps:$4 sm:$0xff]  }
  0x1b   :  { %1029 = vmatpush1.bf16.msra.mxu1 %v1549_v26  ;;  %v1626_v18 = vld [vmem:[%s2197_s1 + $0x34c] ss:$12 sps:$4 sm:$0xff]   ;;  %v1627_v19 = vld [vmem:[%s2197_s1 + $0x110] ss:$12 sps:$4 sm:$0xff]   ;;  %v1624_v20 = vld [vmem:[%s2197_s1 + $0x348] ss:$12 sps:$4 sm:$0xff]  }
  0x1c   :  { %1070 = vmatpush1.bf16.msra.mxu0 %v1550_v27  ;;  %1030 = vmatprep.subr.bf16.mxu1 %v1551_v28  ;;  %v1628_v21 = vld [vmem:[%s2197_s1 + $0x50] ss:$12 sps:$4 sm:$0xff]   ;;  %v1632_v23 = vld [vmem:[%s2197_s1 + $0x128] ss:$12 sps:$4 sm:$0xff]   ;;  %v1629_v24 = vld [vmem:[%s2197_s1 + $0x360] ss:$12 sps:$4 sm:$0xff]  }
  0x1d   :  { %1071 = vmatprep.subr.bf16.mxu0 %v1553_v29  ;;  %v1631_v22 = vld [vmem:[%s2197_s1 + $0x364] ss:$12 sps:$4 sm:$0xff]   ;;  %v1633_v25 = vld [vmem:[%s2197_s1 + $0x68] ss:$12 sps:$4 sm:$0xff]   ;;  %v1637_v27 = vld [vmem:[%s2197_s1 + $0x140] ss:$12 sps:$4 sm:$0xff]  }
  0x1e   :  { %v1636_v26 = vld [vmem:[%s2197_s1 + $0x37c] ss:$12 sps:$4 sm:$0xff]   ;;  %v1634_v28 = vld [vmem:[%s2197_s1 + $0x378] ss:$12 sps:$4 sm:$0xff]   ;;  %v1638_v29 = vld [vmem:[%s2197_s1 + $0x80] ss:$12 sps:$4 sm:$0xff]  }
  0x1f   :  { %1031 = vmatpush1.bf16.msra.mxu1 %v1555_v30  ;;  %v1641_v30 = vld [vmem:[%s2197_s1 + $0x394] ss:$12 sps:$4 sm:$0xff]   ;;  %v1662_v49 = vld [vmem:[%s2197_s1 + $0x278] ss:$12 sps:$4 sm:$0xff]  }
  0x20   :  { %1072 = vmatpush1.bf16.msra.mxu0 %v1556_v31  ;;  %1032 = vmatprep.subr.bf16.mxu1 %v1557_v32  ;;  %v1642_v31 = vld [vmem:[%s2197_s1 + $0x158] ss:$12 sps:$4 sm:$0xff]   ;;  %v1639_v32 = vld [vmem:[%s2197_s1 + $0x390] ss:$12 sps:$4 sm:$0xff]   ;;  %v1658_v47 = vld [vmem:[%s2197_s1 + $0x1a0] ss:$12 sps:$4 sm:$0xff]  }
  0x21   :  { %1073 = vmatprep.subr.bf16.mxu0 %v1559_v33  ;;  %v1643_v33 = vld [vmem:[%s2197_s1 + $0x98] ss:$12 sps:$4 sm:$0xff]  }
  0x23   :  { %1033 = vmatpush1.bf16.msra.mxu1 %v1561_v34  ;;  %v1646_v34 = vld [vmem:[%s2197_s1 + $0x3ac] ss:$12 sps:$4 sm:$0xff]  }
  0x24   :  { %1074 = vmatpush1.bf16.msra.mxu0 %v1562_v35  ;;  %1034 = vmatprep.subr.bf16.mxu1 %v1563_v36  ;;  %v1647_v35 = vld [vmem:[%s2197_s1 + $0x170] ss:$12 sps:$4 sm:$0xff]   ;;  %v1644_v36 = vld [vmem:[%s2197_s1 + $0x3a8] ss:$12 sps:$4 sm:$0xff]  }
  0x25   :  { %1075 = vmatprep.subr.bf16.mxu0 %v1565_v37  ;;  %v1648_v37 = vld [vmem:[%s2197_s1 + $0xb0] ss:$12 sps:$4 sm:$0xff]  }
  0x27   :  { %1035 = vmatpush1.bf16.msra.mxu1 %v1567_v38  ;;  %v1651_v38 = vld [vmem:[%s2197_s1 + $0x3c4] ss:$12 sps:$4 sm:$0xff]  }
  0x28   :  { %1076 = vmatpush1.bf16.msra.mxu0 %v1568_v39  ;;  %1036 = vmatprep.subr.bf16.mxu1 %v1569_v40  ;;  %v1652_v39 = vld [vmem:[%s2197_s1 + $0x248] ss:$12 sps:$4 sm:$0xff]   ;;  %v1649_v40 = vld [vmem:[%s2197_s1 + $0x3c0] ss:$12 sps:$4 sm:$0xff]  }
  0x29   :  { %1077 = vmatprep.subr.bf16.mxu0 %v1571_v41  ;;  %v1653_v41 = vld [vmem:[%s2197_s1 + $0x188] ss:$12 sps:$4 sm:$0xff]  }
  0x2b   :  { %1037 = vmatpush1.bf16.msra.mxu1 %v1573_v42  ;;  %v1656_v42 = vld [vmem:[%s2197_s1 + $0x3dc] ss:$12 sps:$4 sm:$0xff]  }
  0x2c   :  { %1078 = vmatpush1.bf16.msra.mxu0 %v1574_v43  ;;  %1038 = vmatprep.subr.bf16.mxu1 %v1575_v44  ;;  %v17_v43 = vld [vmem:[%s2198_s0 + $0x10] sm:$0xff]  ;;  %v1657_v44 = vld [vmem:[%s2197_s1 + $0x260] ss:$12 sps:$4 sm:$0xff]  }
  0x2d   :  { %1079 = vmatprep.subr.bf16.mxu0 %v1577_v45  ;;  %v2055_v45 = vcombine.high %v17_v43, %v17_v43 }
  0x2f   :  { %1039 = vmatpush1.bf16.msra.mxu1 %v1579_v46  ;;  %v1654_v46 = vld [vmem:[%s2197_s1 + $0x3d8] ss:$12 sps:$4 sm:$0xff]  }
  0x30   :  { %1080 = vmatpush1.bf16.msra.mxu0 %v1580_v50  ;;  %1040 = vmatprep.subr.bf16.mxu1 %v1581_v51  ;;  %v1659_v50 = vld [vmem:[%s2197_s1 + $0x3f0] ss:$12 sps:$4 sm:$0xff]   ;;  %v1663_v51 = vld [vmem:[%s2197_s1 + $0x1b8] ss:$12 sps:$4 sm:$0xff]  }
  0x31   :  { %1081 = vmatprep.subr.bf16.mxu0 %v1583_v53  ;;  %v1666_v53 = vld [vmem:[%s2197_s1 + $0x40c] ss:$12 sps:$4 sm:$0xff]  }
  0x33   :  { %1041 = vmatpush1.bf16.msra.mxu1 %v1585_v54  ;;  %v1667_v54 = vld [vmem:[%s2197_s1 + $0x290] ss:$12 sps:$4 sm:$0xff]  }
  0x34   :  { %1082 = vmatpush1.bf16.msra.mxu0 %v1586_v55  ;;  %1042 = vmatprep.subr.bf16.mxu1 %v1587_v56  ;;  %v1668_v55 = vld [vmem:[%s2197_s1 + $0x1d0] ss:$12 sps:$4 sm:$0xff]  }
  0x35   :  { %1083 = vmatprep.subr.bf16.mxu0 %v1589_v57  ;;  %v1671_v56 = vld [vmem:[%s2197_s1 + $0x424] ss:$12 sps:$4 sm:$0xff]   ;;  %v1672_v57 = vld [vmem:[%s2197_s1 + $0x2a8] ss:$12 sps:$4 sm:$0xff]  }
  0x37   :  { %1043 = vmatpush1.bf16.msra.mxu1 %v1591_v58  ;;  %v1669_v58 = vld [vmem:[%s2197_s1 + $0x420] ss:$12 sps:$4 sm:$0xff]  }
  0x38   :  { %1084 = vmatpush1.bf16.msra.mxu0 %v1592_v59  ;;  %1044 = vmatprep.subr.bf16.mxu1 %v1593_v60  ;;  %v1673_v59 = vld [vmem:[%s2197_s1 + $0x1e8] ss:$12 sps:$4 sm:$0xff]  }
  0x39   :  { %1085 = vmatprep.subr.bf16.mxu0 %v1595_v61  ;;  %v1676_v60 = vld [vmem:[%s2197_s1 + $0x43c] ss:$12 sps:$4 sm:$0xff]   ;;  %v1677_v61 = vld [vmem:[%s2197_s1 + $0x2c0] ss:$12 sps:$4 sm:$0xff]  }
  0x3b   :  { %1045 = vmatpush1.bf16.msra.mxu1 %v1597_v62  ;;  %v1674_v62 = vld [vmem:[%s2197_s1 + $0x438] ss:$12 sps:$4 sm:$0xff]  }
  0x3c   :  { %1086 = vmatpush1.bf16.msra.mxu0 %v1598_v63  ;;  %1046 = vmatprep.subr.bf16.mxu1 %v1599_v0  ;;  %v1678_v63 = vld [vmem:[%s2197_s1 + $0x200] ss:$12 sps:$4 sm:$0xff]  }
  0x3d   :  { %1087 = vmatprep.subr.bf16.mxu0 %v1601_v1  ;;  %v1681_v0 = vld [vmem:[%s2197_s1 + $0x454] ss:$12 sps:$4 sm:$0xff]   ;;  %v1682_v1 = vld [vmem:[%s2197_s1 + $0x2d8] ss:$12 sps:$4 sm:$0xff]  }
  0x3f   :  { %1047 = vmatpush1.bf16.msra.mxu1 %v1603_v2  ;;  %v1679_v2 = vld [vmem:[%s2197_s1 + $0x450] ss:$12 sps:$4 sm:$0xff]  }
  0x40   :  { %1088 = vmatpush1.bf16.msra.mxu0 %v1604_v3  ;;  %1435 = vmatprep.subr.bf16.mxu1 %v1612_v5  ;;  %v1683_v3 = vld [vmem:[%s2197_s1 + $0x218] ss:$12 sps:$4 sm:$0xff]   ;;  %v1687_v5 = vld [vmem:[%s2197_s1 + $0x2f0] ss:$12 sps:$4 sm:$0xff]  }
  0x41   :  { %1098 = vmatprep.subr.bf16.mxu0 %v1611_v4  ;;  %v1686_v4 = vld [vmem:[%s2197_s1 + $0x46c] ss:$12 sps:$4 sm:$0xff]  }
  0x42   :  { %1049 = vmatmul.mubr.bf16.vlgmr.msra.gmra.mrb[0].mxu1 %v1937_v6 }
  0x43   :  { %1090 = vmatmul.mubr.bf16.vlgmr.msra.gmra.mrb[0].mxu0 %v1939_v7  ;;  %1436 = vmatpush3.bf16.msra.mxu1 %v1613_v9  ;;  %v1691_v9 = vld [vmem:[%s2197_s1 + $0x3c8] ss:$12 sps:$4 sm:$0xff]  }
  0x44   :  { %1099 = vmatpush1.bf16.msra.mxu0 %v1609_v8  ;;  %1437 = vmatprep.subr.bf16.mxu1 %v1617_v11  ;;  %v1688_v8 = vld [vmem:[%s2197_s1 + $0x230] ss:$12 sps:$4 sm:$0xff]   ;;  %v1692_v11 = vld [vmem:[%s2197_s1 + $0x308] ss:$12 sps:$4 sm:$0xff]  }
  0x45   :  { %1100 = vmatprep.subr.bf16.mxu0 %v1616_v10  ;;  %1171 = vmatprep.mubr.bf16.mxu1 %v1871_v48  ;;  %v1661_v48 = vld [vmem:[%s2197_s1 + $0x3f4] ss:$12 sps:$4 sm:$0xff]   ;;  %v1285_v10 = vcombine.low %v17_v43, %v17_v43 }
  0x46   :  { %1130 = vmatprep.mubr.bf16.mxu0 %v2055_v45 }
  0x47   :  { %1438 = vmatpush3.bf16.msra.mxu1 %v1618_v13  ;;  %v1694_v13 = vld [vmem:[%s2197_s1 + $0x320] ss:$12 sps:$4 sm:$0xff]  }
  0x48   :  { %1101 = vmatpush1.bf16.msra.mxu0 %v1614_v12  ;;  %1439 = vmatprep.subr.bf16.mxu1 %v1622_v15  ;;  %v1693_v12 = vld [vmem:[%s2197_s1 + $0x3e0] ss:$12 sps:$4 sm:$0xff]   ;;  %v1696_v15 = vld [vmem:[%s2197_s1 + $0x338] ss:$12 sps:$4 sm:$0xff]  }
  0x49   :  { %1102 = vmatprep.subr.bf16.mxu0 %v1621_v14  ;;  %v1695_v14 = vld [vmem:[%s2197_s1 + $0x3f8] ss:$12 sps:$4 sm:$0xff]  }
  0x4b   :  { %1440 = vmatpush3.bf16.msra.mxu1 %v1623_v17  ;;  %v1699_v17 = vld [vmem:[%s2197_s1 + $0x428] ss:$12 sps:$4 sm:$0xff]  }
  0x4c   :  { %1103 = vmatpush1.bf16.msra.mxu0 %v1619_v16  ;;  %1441 = vmatprep.subr.bf16.mxu1 %v1627_v19  ;;  %v1698_v16 = vld [vmem:[%s2197_s1 + $0x350] ss:$12 sps:$4 sm:$0xff]   ;;  %v1701_v19 = vld [vmem:[%s2197_s1 + $0x440] ss:$12 sps:$4 sm:$0xff]  }
  0x4d   :  { %1104 = vmatprep.subr.bf16.mxu0 %v1626_v18  ;;  %v1700_v18 = vld [vmem:[%s2197_s1 + $0x368] ss:$12 sps:$4 sm:$0xff]  }
  0x4f   :  { %1442 = vmatpush3.bf16.msra.mxu1 %v1628_v21  ;;  %v1703_v21 = vld [vmem:[%s2197_s1 + $0x458] ss:$12 sps:$4 sm:$0xff]  }
  0x50   :  { %1105 = vmatpush1.bf16.msra.mxu0 %v1624_v20  ;;  %1443 = vmatprep.subr.bf16.mxu1 %v1632_v23  ;;  %v1702_v20 = vld [vmem:[%s2197_s1 + $0x380] ss:$12 sps:$4 sm:$0xff]   ;;  %v1705_v23 = vld [vmem:[%s2197_s1 + $0x470] ss:$12 sps:$4 sm:$0xff]  }
  0x51   :  { %1106 = vmatprep.subr.bf16.mxu0 %v1631_v22  ;;  %v1704_v22 = vld [vmem:[%s2197_s1 + $0x398] ss:$12 sps:$4 sm:$0xff]  }
  0x53   :  { %1444 = vmatpush3.bf16.msra.mxu1 %v1633_v25 }
  0x54   :  { %1107 = vmatpush1.bf16.msra.mxu0 %v1629_v24  ;;  %1445 = vmatprep.subr.bf16.mxu1 %v1637_v27  ;;  %v1706_v24 = vld [vmem:[%s2197_s1 + $0x3b0] ss:$12 sps:$4 sm:$0xff]  }
  0x55   :  { %1108 = vmatprep.subr.bf16.mxu0 %v1636_v26 }
  0x57   :  { %1446 = vmatpush3.bf16.msra.mxu1 %v1638_v29 }
  0x58   :  { %1109 = vmatpush1.bf16.msra.mxu0 %v1634_v28  ;;  %1447 = vmatprep.subr.bf16.mxu1 %v1642_v31 }
  0x59   :  { %1110 = vmatprep.subr.bf16.mxu0 %v1641_v30 }
  0x5b   :  { %1448 = vmatpush3.bf16.msra.mxu1 %v1643_v33 }
  0x5c   :  { %1111 = vmatpush1.bf16.msra.mxu0 %v1639_v32  ;;  %1449 = vmatprep.subr.bf16.mxu1 %v1647_v35 }
  0x5d   :  { %1112 = vmatprep.subr.bf16.mxu0 %v1646_v34  ;;  %v212_v34 = vlaneseq }
  0x5f   :  { %1450 = vmatpush3.bf16.msra.mxu1 %v1648_v37  ;;  %v213_v35 = vshrl.u32 %v212_v34, 7  ;;  %v210_v37 = vld [vmem:[%s2199_s2] sm:$0x7] }
  0x60   :  { %1113 = vmatpush1.bf16.msra.mxu0 %v1644_v36  ;;  %1457 = vmatprep.subr.bf16.mxu1 %v1652_v39 }
  0x61   :  { %1114 = vmatprep.subr.bf16.mxu0 %v1651_v38  ;;  %v214_v36 = vsub.s32 0, %v213_v35  ;;  %v218_v38 = vsub.s32 1, %v213_v35  ;;  %v222_v39 = vsub.s32 2, %v213_v35 }
  0x62   :  { %1172 = vmatmul.mubr.bf16.vlgmr.msra.gmra.mrb[4].mxu1 %v1937_v6  ;;  %v1684_v6 = vld [vmem:[%s2197_s1 + $0x468] ss:$12 sps:$4 sm:$0xff]  }
  0x63   :  { %1458 = vmatpush3.bf16.msra.mxu1 %v1653_v41  ;;  %1211 = vmatprep.mubr.bf16.mxu1 %v1882_v52  ;;  %v1664_v52 = vld [vmem:[%s2197_s1 + $0x408] ss:$12 sps:$4 sm:$0xff]   ;;  %v219_v41 = vrot.slane %v210_v37, %v218_v38 }
  0x64   :  { %1115 = vmatpush1.bf16.msra.mxu0 %v1649_v40  ;;  %1459 = vmatprep.subr.bf16.mxu1 %v1657_v44  ;;  %v215_v40 = vrot.slane %v210_v37, %v214_v36 }
  0x65   :  { %1116 = vmatprep.subr.bf16.mxu0 %v1656_v42  ;;  %v223_v42 = vrot.slane %v210_v37, %v222_v39 }
  0x67   :  { %1460 = vmatpush3.bf16.msra.mxu1 %v1658_v47 }
  0x68   :  { %1117 = vmatpush1.bf16.msra.mxu0 %v1654_v46  ;;  %1461 = vmatprep.subr.bf16.mxu1 %v1662_v49 }
  0x69   :  { %1118 = vmatprep.subr.bf16.mxu0 %v1661_v48 }
  0x6b   :  { %1462 = vmatpush3.bf16.msra.mxu1 %v1663_v51 }
  0x6c   :  { %1119 = vmatpush1.bf16.msra.mxu0 %v1659_v50  ;;  %1463 = vmatprep.subr.bf16.mxu1 %v1667_v54 }
  0x6d   :  { %1120 = vmatprep.subr.bf16.mxu0 %v1666_v53 }
  0x6f   :  { %1464 = vmatpush3.bf16.msra.mxu1 %v1668_v55 }
  0x70   :  { %1121 = vmatpush1.bf16.msra.mxu0 %v1664_v52  ;;  %1465 = vmatprep.subr.bf16.mxu1 %v1672_v57 }
  0x71   :  { %1122 = vmatprep.subr.bf16.mxu0 %v1671_v56 }
  0x73   :  { %1466 = vmatpush3.bf16.msra.mxu1 %v1673_v59 }
  0x74   :  { %1123 = vmatpush1.bf16.msra.mxu0 %v1669_v58  ;;  %1467 = vmatprep.subr.bf16.mxu1 %v1677_v61 }
  0x75   :  { %1124 = vmatprep.subr.bf16.mxu0 %v1676_v60 }
  0x77   :  { %1468 = vmatpush3.bf16.msra.mxu1 %v1678_v63 }
  0x78   :  { %1125 = vmatpush1.bf16.msra.mxu0 %v1674_v62  ;;  %1469 = vmatprep.subr.bf16.mxu1 %v1682_v1 }
  0x79   :  { %1126 = vmatprep.subr.bf16.mxu0 %v1681_v0 }
  0x7b   :  { %1470 = vmatpush3.bf16.msra.mxu1 %v1683_v3 }
  0x7c   :  { %1127 = vmatpush1.bf16.msra.mxu0 %v1679_v2  ;;  %1471 = vmatprep.subr.bf16.mxu1 %v1687_v5 }
  0x7d   :  { %1128 = vmatprep.subr.bf16.mxu0 %v1686_v4 }
  0x7f   :  { %1472 = vmatpush3.bf16.msra.mxu1 %v1688_v8 }
  0x80   :  { %1129 = vmatpush1.bf16.msra.mxu0 %v1684_v6  ;;  %1479 = vmatprep.subr.bf16.mxu1 %v1691_v9 }
  0x82   :  { %1212 = vmatmul.mubr.bf16.vlgmr.msra.gmra.mrb[8].mxu1 %v1939_v7  ;;  %v1697_v7 = vld [vmem:[%s2197_s1 + $0x410] ss:$12 sps:$4 sm:$0xff]  }
  0x83   :  { %1131 = vmatmul.mubr.bf16.vlgmr.msra.gmra.mrb[0].mxu0 %v1285_v10  ;;  %1480 = vmatpush3.bf16.msra.mxu1 %v1692_v11 }
  0x84   :  { %1251 = vmatprep.mubr.bf16.mxu1 %v2055_v45  ;;  %1481 = vmatprep.subr.bf16.mxu1 %v1693_v12 }
  0x87   :  { %1482 = vmatpush3.bf16.msra.mxu1 %v1694_v13 }
  0x88   :  { %1483 = vmatprep.subr.bf16.mxu1 %v1695_v14 }
  0x8b   :  { %1484 = vmatpush3.bf16.msra.mxu1 %v1696_v15 }
  0x8c   :  { %1485 = vmatprep.subr.bf16.mxu1 %v1697_v7 }
  0x8f   :  { %1486 = vmatpush3.bf16.msra.mxu1 %v1698_v16 }
  0x90   :  { %1487 = vmatprep.subr.bf16.mxu1 %v1699_v17 }
  0x93   :  { %1488 = vmatpush3.bf16.msra.mxu1 %v1700_v18 }
  0x94   :  { %1489 = vmatprep.subr.bf16.mxu1 %v1701_v19 }
  0x97   :  { %1490 = vmatpush3.bf16.msra.mxu1 %v1702_v20 }
  0x98   :  { %1491 = vmatprep.subr.bf16.mxu1 %v1703_v21 }
  0x9b   :  { %1492 = vmatpush3.bf16.msra.mxu1 %v1704_v22 }
  0x9c   :  { %1493 = vmatprep.subr.bf16.mxu1 %v1705_v23 }
  0x9f   :  { %1494 = vmatpush3.bf16.msra.mxu1 %v1706_v24 }
  0xa2   :  { %1252 = vmatmul.mubr.bf16.vlgmr.msra.gmra.mrb[12].mxu1 %v1285_v10 }
 0x115   :  { %v1050_v25 = vpop.f32.mrb[0].mxu1 }
 0x116   :  { %v1052_v26 = vpop.f32.mrb[1].mxu1  ;;  %v1051_v43 = vadd.f32 %v1050_v25, %v215_v40 }
 0x117   :  { %v1054_v27 = vpop.f32.mrb[2].mxu1  ;;  %v1053_v44 = vadd.f32 %v1052_v26, %v219_v41 }
 0x118   :  { %v1055_v28 = vpop.f32.mrb[3].mxu1 }
 0x135   :  { %v1451_v29 = vpop.f32.mrb[4].mxu1 }
 0x136   :  { %v1452_v30 = vpop.f32.mrb[5].mxu1 }
 0x137   :  { %v1453_v31 = vadd.f32 %v1452_v30, %v1451_v29  ;;  %v1454_v32 = vpop.f32.mrb[6].mxu1 }
 0x138   :  { %v1455_v33 = vpop.f32.mrb[7].mxu1 }
 0x139   :  { %v1174_v50 = vadd.f32 %v1453_v31, %v223_v42 }
 0x155   :  { %v1473_v46 = vpop.f32.mrb[8].mxu1 }
 0x156   :  { %v1132_v45 = vpop.f32.mrb[0].mxu0  ;;  %v1474_v49 = vpop.f32.mrb[9].mxu1 }
 0x157   :  { %v1502_v47 = vadd.f32 %v1132_v45, %v1051_v43  ;;  %v1134_v48 = vpop.f32.mrb[1].mxu0  ;;  %v1475_v53 = vadd.f32 %v1474_v49, %v1473_v46  ;;  %v1476_v52 = vpop.f32.mrb[10].mxu1 }
 0x158   :  { %v1504_v51 = vadd.f32 %v1134_v48, %v1053_v44  ;;  %v1136_v54 = vpop.f32.mrb[2].mxu0  ;;  %v1477_v57 = vpop.f32.mrb[11].mxu1 }
 0x159   :  { %v1259_v55 = vmax.f32 %v1502_v47, 0.0  ;;  %v1137_v56 = vpop.f32.mrb[3].mxu0  ;;  %v1214_v59 = vadd.f32 %v1475_v53, %v1174_v50 }
 0x15a   :  { %v1260_v58 = vmax.f32 %v1504_v51, 0.0 }
 0x15c   :  { %v1433_v60 = vpack.c.bf16 %v1260_v58, %v1259_v55 }
 0x15e   :  { %1275 = vst [vmem:[%s2200_s3] sm:$0xff] %v1433_v60 }
 0x175   :  { %v1495_v61 = vpop.f32.mrb[12].mxu1 }
 0x176   :  { %v1496_v62 = vpop.f32.mrb[13].mxu1 }
 0x177   :  { %v1497_v63 = vadd.f32 %v1496_v62, %v1495_v61  ;;  %v1498_v0 = vpop.f32.mrb[14].mxu1 }
 0x178   :  { %v1499_v1 = vpop.f32.mrb[15].mxu1 }
 0x179   :  { %v1254_v2 = vadd.f32 %v1497_v63, %v1214_v59 }
 0x17b   :  { %v1261_v3 = vmax.f32 %v1254_v2, 0.0 }
 0x17d   :  { %v1434_v4 = vpack.c.bf16 %v1261_v3, %v1261_v3 }
 0x17f   :  { %1276 = vst [vmem:[%s2200_s3 + $0x8] sm:$0xf] %v1434_v4 }

// kernel: gamma_forward.9
= control target key start
LH: loop header
LB: loop body
LE: loop exit
PB: predicated region body
PF: predicated region fallthrough
CT: control target
= control target key end

     0   :  { %s2475_s1 = inlined_call_operand.vmem [shape: bf16[384,1024], index: 1, kind: input, shape index: {}]   ;;  %s2476_s0 = inlined_call_operand.vmem [shape: bf16[8,384], index: 0, kind: input, shape index: {}]   ;;  %s2477_s2 = inlined_call_operand.vmem [shape: f32[1,1024], index: 2, kind: input, shape index: {}]   ;;  %s2478_s3 = inlined_call_operand.vmem [shape: bf16[8,1024], index: 3, kind: output, shape index: {}]  }
   0x1   :  { %v17_v0 = vld [vmem:[%s2475_s1] sm:$0xff]  ;;  %v18_v2 = vld [vmem:[%s2475_s1 + $0x8] sm:$0xff] }
   0x2   :  { %v21_v1 = vld [vmem:[%s2475_s1 + $0x20] sm:$0xff]  ;;  %v22_v4 = vld [vmem:[%s2475_s1 + $0x28] sm:$0xff] }
   0x3   :  { %v1602_v3 = vcombine.high %v17_v0, %v21_v1  ;;  %v1601_v5 = vcombine.low %v17_v0, %v21_v1  ;;  %v25_v6 = vld [vmem:[%s2475_s1 + $0x40] sm:$0xff]  ;;  %v1604_v8 = vcombine.high %v18_v2, %v22_v4  ;;  %v1603_v9 = vcombine.low %v18_v2, %v22_v4  ;;  %v26_v11 = vld [vmem:[%s2475_s1 + $0x48] sm:$0xff] }
   0x4   :  { %v29_v7 = vld [vmem:[%s2475_s1 + $0x60] sm:$0xff]  ;;  %v30_v12 = vld [vmem:[%s2475_s1 + $0x68] sm:$0xff] }
   0x5   :  { %v1610_v10 = vcombine.high %v25_v6, %v29_v7  ;;  %v33_v13 = vld [vmem:[%s2475_s1 + $0x80] sm:$0xff]  ;;  %1222 = vmatprep.subr.bf16.mxu0 %v1602_v3  ;;  %v1612_v14 = vcombine.high %v26_v11, %v30_v12  ;;  %v34_v16 = vld [vmem:[%s2475_s1 + $0x88] sm:$0xff]  ;;  %1304 = vmatprep.subr.bf16.mxu1 %v1604_v8  ;;  %v1609_v18 = vcombine.low %v25_v6, %v29_v7 }
   0x6   :  { %v37_v15 = vld [vmem:[%s2475_s1 + $0xa0] sm:$0xff]  ;;  %v38_v17 = vld [vmem:[%s2475_s1 + $0xa8] sm:$0xff]  ;;  %1223 = vmatpush1.bf16.msra.mxu0 %v1601_v5  ;;  %1305 = vmatpush1.bf16.msra.mxu1 %v1603_v9  ;;  %v1611_v19 = vcombine.low %v26_v11, %v30_v12 }
   0x7   :  { %1224 = vmatprep.subr.bf16.mxu0 %v1610_v10  ;;  %v1618_v20 = vcombine.high %v33_v13, %v37_v15  ;;  %1306 = vmatprep.subr.bf16.mxu1 %v1612_v14  ;;  %v1620_v21 = vcombine.high %v34_v16, %v38_v17  ;;  %v41_v22 = vld [vmem:[%s2475_s1 + $0xc0] sm:$0xff]  ;;  %v42_v24 = vld [vmem:[%s2475_s1 + $0xc8] sm:$0xff]  ;;  %v1617_v26 = vcombine.low %v33_v13, %v37_v15 }
   0x8   :  { %v45_v23 = vld [vmem:[%s2475_s1 + $0xe0] sm:$0xff]  ;;  %v46_v25 = vld [vmem:[%s2475_s1 + $0xe8] sm:$0xff]  ;;  %v1619_v27 = vcombine.low %v34_v16, %v38_v17 }
   0x9   :  { %v1626_v28 = vcombine.high %v41_v22, %v45_v23  ;;  %v1628_v29 = vcombine.high %v42_v24, %v46_v25  ;;  %v49_v30 = vld [vmem:[%s2475_s1 + $0x100] sm:$0xff]  ;;  %v50_v32 = vld [vmem:[%s2475_s1 + $0x108] sm:$0xff]  ;;  %v1625_v34 = vcombine.low %v41_v22, %v45_v23  ;;  %v1627_v35 = vcombine.low %v42_v24, %v46_v25 }
   0xa   :  { %1225 = vmatpush1.bf16.msra.mxu0 %v1609_v18  ;;  %1307 = vmatpush1.bf16.msra.mxu1 %v1611_v19  ;;  %v53_v31 = vld [vmem:[%s2475_s1 + $0x120] sm:$0xff]  ;;  %v54_v33 = vld [vmem:[%s2475_s1 + $0x128] sm:$0xff] }
   0xb   :  { %1226 = vmatprep.subr.bf16.mxu0 %v1618_v20  ;;  %1308 = vmatprep.subr.bf16.mxu1 %v1620_v21  ;;  %v1634_v36 = vcombine.high %v49_v30, %v53_v31  ;;  %v1636_v37 = vcombine.high %v50_v32, %v54_v33  ;;  %v57_v38 = vld [vmem:[%s2475_s1 + $0x140] sm:$0xff]  ;;  %v58_v40 = vld [vmem:[%s2475_s1 + $0x148] sm:$0xff]  ;;  %v1633_v42 = vcombine.low %v49_v30, %v53_v31 }
   0xc   :  { %v61_v39 = vld [vmem:[%s2475_s1 + $0x160] sm:$0xff]  ;;  %v62_v41 = vld [vmem:[%s2475_s1 + $0x168] sm:$0xff]  ;;  %v1635_v43 = vcombine.low %v50_v32, %v54_v33 }
   0xd   :  { %v1642_v44 = vcombine.high %v57_v38, %v61_v39  ;;  %v1644_v45 = vcombine.high %v58_v40, %v62_v41  ;;  %v65_v46 = vld [vmem:[%s2475_s1 + $0x180] sm:$0xff]  ;;  %v66_v48 = vld [vmem:[%s2475_s1 + $0x188] sm:$0xff]  ;;  %v1641_v50 = vcombine.low %v57_v38, %v61_v39  ;;  %v1643_v51 = vcombine.low %v58_v40, %v62_v41 }
   0xe   :  { %1227 = vmatpush1.bf16.msra.mxu0 %v1617_v26  ;;  %1309 = vmatpush1.bf16.msra.mxu1 %v1619_v27  ;;  %v69_v47 = vld [vmem:[%s2475_s1 + $0x1a0] sm:$0xff]  ;;  %v70_v49 = vld [vmem:[%s2475_s1 + $0x1a8] sm:$0xff] }
   0xf   :  { %1228 = vmatprep.subr.bf16.mxu0 %v1626_v28  ;;  %1310 = vmatprep.subr.bf16.mxu1 %v1628_v29  ;;  %v1650_v52 = vcombine.high %v65_v46, %v69_v47  ;;  %v1937_v53 = vld [vmem:[%s2476_s0] sm:$0xff]  ;;  %v1652_v54 = vcombine.high %v66_v48, %v70_v49  ;;  %v74_v58 = vld [vmem:[%s2475_s1 + $0x1c8] sm:$0xff]  ;;  %v1649_v60 = vcombine.low %v65_v46, %v69_v47 }
  0x10   :  { %v73_v55 = vld [vmem:[%s2475_s1 + $0x1c0] sm:$0xff]  ;;  %v1947_v57 = vcombine.high %v1937_v53, %v1937_v53  ;;  %v78_v59 = vld [vmem:[%s2475_s1 + $0x1e8] sm:$0xff]  ;;  %v1651_v61 = vcombine.low %v66_v48, %v70_v49 }
  0x11   :  { %v77_v56 = vld [vmem:[%s2475_s1 + $0x1e0] sm:$0xff]  ;;  %v1660_v63 = vcombine.high %v74_v58, %v78_v59  ;;  %v82_v2 = vld [vmem:[%s2475_s1 + $0x208] sm:$0xff]  ;;  %v1659_v5 = vcombine.low %v74_v58, %v78_v59 }
  0x12   :  { %1229 = vmatpush1.bf16.msra.mxu0 %v1625_v34  ;;  %1311 = vmatpush1.bf16.msra.mxu1 %v1627_v35  ;;  %v1658_v62 = vcombine.high %v73_v55, %v77_v56  ;;  %v81_v0 = vld [vmem:[%s2475_s1 + $0x200] sm:$0xff]  ;;  %v86_v3 = vld [vmem:[%s2475_s1 + $0x228] sm:$0xff]  ;;  %v1657_v4 = vcombine.low %v73_v55, %v77_v56 }
  0x13   :  { %1230 = vmatprep.subr.bf16.mxu0 %v1634_v36  ;;  %1312 = vmatprep.subr.bf16.mxu1 %v1636_v37  ;;  %v85_v1 = vld [vmem:[%s2475_s1 + $0x220] sm:$0xff]  ;;  %v1668_v7 = vcombine.high %v82_v2, %v86_v3  ;;  %v90_v10 = vld [vmem:[%s2475_s1 + $0x248] sm:$0xff]  ;;  %v1667_v13 = vcombine.low %v82_v2, %v86_v3 }
  0x14   :  { %1254 = vmatprep.mubr.bf16.mxu0 %v1947_v57  ;;  %1336 = vmatprep.mubr.bf16.mxu1 %v1947_v57  ;;  %v1666_v6 = vcombine.high %v81_v0, %v85_v1  ;;  %v89_v8 = vld [vmem:[%s2475_s1 + $0x240] sm:$0xff]  ;;  %v94_v11 = vld [vmem:[%s2475_s1 + $0x268] sm:$0xff]  ;;  %v1665_v12 = vcombine.low %v81_v0, %v85_v1 }
  0x15   :  { %v93_v9 = vld [vmem:[%s2475_s1 + $0x260] sm:$0xff]  ;;  %v1676_v15 = vcombine.high %v90_v10, %v94_v11  ;;  %v98_v18 = vld [vmem:[%s2475_s1 + $0x288] sm:$0xff]  ;;  %v1675_v21 = vcombine.low %v90_v10, %v94_v11 }
  0x16   :  { %1231 = vmatpush1.bf16.msra.mxu0 %v1633_v42  ;;  %1313 = vmatpush1.bf16.msra.mxu1 %v1635_v43  ;;  %v1674_v14 = vcombine.high %v89_v8, %v93_v9  ;;  %v97_v16 = vld [vmem:[%s2475_s1 + $0x280] sm:$0xff]  ;;  %v102_v19 = vld [vmem:[%s2475_s1 + $0x2a8] sm:$0xff]  ;;  %v1673_v20 = vcombine.low %v89_v8, %v93_v9 }
  0x17   :  { %1232 = vmatprep.subr.bf16.mxu0 %v1642_v44  ;;  %1314 = vmatprep.subr.bf16.mxu1 %v1644_v45  ;;  %v101_v17 = vld [vmem:[%s2475_s1 + $0x2a0] sm:$0xff]  ;;  %v1684_v23 = vcombine.high %v98_v18, %v102_v19  ;;  %v106_v26 = vld [vmem:[%s2475_s1 + $0x2c8] sm:$0xff]  ;;  %v1683_v29 = vcombine.low %v98_v18, %v102_v19 }
  0x18   :  { %v1682_v22 = vcombine.high %v97_v16, %v101_v17  ;;  %v105_v24 = vld [vmem:[%s2475_s1 + $0x2c0] sm:$0xff]  ;;  %v110_v27 = vld [vmem:[%s2475_s1 + $0x2e8] sm:$0xff]  ;;  %v1681_v28 = vcombine.low %v97_v16, %v101_v17 }
  0x19   :  { %v109_v25 = vld [vmem:[%s2475_s1 + $0x2e0] sm:$0xff]  ;;  %v1692_v31 = vcombine.high %v106_v26, %v110_v27  ;;  %v114_v34 = vld [vmem:[%s2475_s1 + $0x308] sm:$0xff]  ;;  %v1691_v37 = vcombine.low %v106_v26, %v110_v27 }
  0x1a   :  { %1233 = vmatpush1.bf16.msra.mxu0 %v1641_v50  ;;  %1315 = vmatpush1.bf16.msra.mxu1 %v1643_v51  ;;  %v1690_v30 = vcombine.high %v105_v24, %v109_v25  ;;  %v113_v32 = vld [vmem:[%s2475_s1 + $0x300] sm:$0xff]  ;;  %v118_v35 = vld [vmem:[%s2475_s1 + $0x328] sm:$0xff]  ;;  %v1689_v36 = vcombine.low %v105_v24, %v109_v25 }
  0x1b   :  { %1234 = vmatprep.subr.bf16.mxu0 %v1650_v52  ;;  %1316 = vmatprep.subr.bf16.mxu1 %v1652_v54  ;;  %v117_v33 = vld [vmem:[%s2475_s1 + $0x320] sm:$0xff]  ;;  %v1700_v39 = vcombine.high %v114_v34, %v118_v35  ;;  %v122_v42 = vld [vmem:[%s2475_s1 + $0x348] sm:$0xff]  ;;  %v1699_v45 = vcombine.low %v114_v34, %v118_v35 }
  0x1c   :  { %v1698_v38 = vcombine.high %v113_v32, %v117_v33  ;;  %v121_v40 = vld [vmem:[%s2475_s1 + $0x340] sm:$0xff]  ;;  %v126_v43 = vld [vmem:[%s2475_s1 + $0x368] sm:$0xff]  ;;  %v1697_v44 = vcombine.low %v113_v32, %v117_v33 }
  0x1d   :  { %v125_v41 = vld [vmem:[%s2475_s1 + $0x360] sm:$0xff]  ;;  %v1708_v47 = vcombine.high %v122_v42, %v126_v43  ;;  %v130_v50 = vld [vmem:[%s2475_s1 + $0x388] sm:$0xff]  ;;  %v1707_v54 = vcombine.low %v122_v42, %v126_v43 }
  0x1e   :  { %1235 = vmatpush1.bf16.msra.mxu0 %v1649_v60  ;;  %1317 = vmatpush1.bf16.msra.mxu1 %v1651_v61  ;;  %v1706_v46 = vcombine.high %v121_v40, %v125_v41  ;;  %v129_v48 = vld [vmem:[%s2475_s1 + $0x380] sm:$0xff]  ;;  %v134_v51 = vld [vmem:[%s2475_s1 + $0x3a8] sm:$0xff]  ;;  %v1705_v52 = vcombine.low %v121_v40, %v125_v41 }
  0x1f   :  { %1236 = vmatprep.subr.bf16.mxu0 %v1658_v62  ;;  %1318 = vmatprep.subr.bf16.mxu1 %v1660_v63  ;;  %v133_v49 = vld [vmem:[%s2475_s1 + $0x3a0] sm:$0xff]  ;;  %v1716_v56 = vcombine.high %v130_v50, %v134_v51  ;;  %v138_v60 = vld [vmem:[%s2475_s1 + $0x3c8] sm:$0xff]  ;;  %v1715_v63 = vcombine.low %v130_v50, %v134_v51 }
  0x20   :  { %v1714_v55 = vcombine.high %v129_v48, %v133_v49  ;;  %v137_v58 = vld [vmem:[%s2475_s1 + $0x3c0] sm:$0xff]  ;;  %v142_v61 = vld [vmem:[%s2475_s1 + $0x3e8] sm:$0xff]  ;;  %v1713_v62 = vcombine.low %v129_v48, %v133_v49 }
  0x21   :  { %v141_v59 = vld [vmem:[%s2475_s1 + $0x3e0] sm:$0xff]  ;;  %v1724_v1 = vcombine.high %v138_v60, %v142_v61 }
  0x22   :  { %1237 = vmatpush1.bf16.msra.mxu0 %v1657_v4  ;;  %1319 = vmatpush1.bf16.msra.mxu1 %v1659_v5  ;;  %v1722_v0 = vcombine.high %v137_v58, %v141_v59  ;;  %v145_v2 = vld [vmem:[%s2475_s1 + $0x400] sm:$0xff]  ;;  %v146_v4 = vld [vmem:[%s2475_s1 + $0x408] sm:$0xff] }
  0x23   :  { %1238 = vmatprep.subr.bf16.mxu0 %v1666_v6  ;;  %1320 = vmatprep.subr.bf16.mxu1 %v1668_v7  ;;  %v149_v3 = vld [vmem:[%s2475_s1 + $0x420] sm:$0xff]  ;;  %v150_v5 = vld [vmem:[%s2475_s1 + $0x428] sm:$0xff]  ;;  %v1721_v6 = vcombine.low %v137_v58, %v141_v59  ;;  %v1723_v7 = vcombine.low %v138_v60, %v142_v61 }
  0x24   :  { %v1730_v8 = vcombine.high %v145_v2, %v149_v3  ;;  %v1732_v9 = vcombine.high %v146_v4, %v150_v5  ;;  %v153_v10 = vld [vmem:[%s2475_s1 + $0x440] sm:$0xff]  ;;  %v1731_v16 = vcombine.low %v146_v4, %v150_v5  ;;  %v19_v5 = vld [vmem:[%s2475_s1 + $0x10] sm:$0xff] }
  0x25   :  { %v157_v11 = vld [vmem:[%s2475_s1 + $0x460] sm:$0xff] }
  0x26   :  { %1239 = vmatpush1.bf16.msra.mxu0 %v1665_v12  ;;  %1321 = vmatpush1.bf16.msra.mxu1 %v1667_v13  ;;  %v2073_v12 = vcombine.low %v1937_v53, %v1937_v53  ;;  %v154_v13 = vld [vmem:[%s2475_s1 + $0x448] sm:$0xff]  ;;  %v1738_v17 = vcombine.high %v153_v10, %v157_v11  ;;  %v161_v53 = vld [vmem:[%s2475_s1 + $0x480] sm:$0xff] }
  0x27   :  { %1240 = vmatprep.subr.bf16.mxu0 %v1674_v14  ;;  %1322 = vmatprep.subr.bf16.mxu1 %v1676_v15  ;;  %v158_v14 = vld [vmem:[%s2475_s1 + $0x468] sm:$0xff]  ;;  %v1729_v15 = vcombine.low %v145_v2, %v149_v3  ;;  %v165_v19 = vld [vmem:[%s2475_s1 + $0x4a0] sm:$0xff] }
  0x28   :  { %v1740_v18 = vcombine.high %v154_v13, %v158_v14  ;;  %v1746_v24 = vcombine.high %v161_v53, %v165_v19  ;;  %v169_v26 = vld [vmem:[%s2475_s1 + $0x4c0] sm:$0xff] }
  0x29   :  { %v173_v27 = vld [vmem:[%s2475_s1 + $0x4e0] sm:$0xff] }
  0x2a   :  { %1241 = vmatpush1.bf16.msra.mxu0 %v1673_v20  ;;  %1323 = vmatpush1.bf16.msra.mxu1 %v1675_v21  ;;  %v162_v20 = vld [vmem:[%s2475_s1 + $0x488] sm:$0xff]  ;;  %v1754_v33 = vcombine.high %v169_v26, %v173_v27  ;;  %v177_v35 = vld [vmem:[%s2475_s1 + $0x500] sm:$0xff] }
  0x2b   :  { %1242 = vmatprep.subr.bf16.mxu0 %v1682_v22  ;;  %1324 = vmatprep.subr.bf16.mxu1 %v1684_v23  ;;  %v166_v21 = vld [vmem:[%s2475_s1 + $0x4a8] sm:$0xff]  ;;  %v1737_v22 = vcombine.low %v153_v10, %v157_v11  ;;  %v1739_v23 = vcombine.low %v154_v13, %v158_v14  ;;  %v185_v43 = vld [vmem:[%s2475_s1 + $0x540] sm:$0xff]  ;;  %v27_v14 = vld [vmem:[%s2475_s1 + $0x50] sm:$0xff] }
  0x2c   :  { %v1748_v25 = vcombine.high %v162_v20, %v166_v21  ;;  %v1747_v32 = vcombine.low %v162_v20, %v166_v21  ;;  %v193_v51 = vld [vmem:[%s2475_s1 + $0x580] sm:$0xff] }
  0x2d   :  { %v201_v61 = vld [vmem:[%s2475_s1 + $0x5c0] sm:$0xff] }
  0x2e   :  { %1243 = vmatpush1.bf16.msra.mxu0 %v1681_v28  ;;  %1325 = vmatpush1.bf16.msra.mxu1 %v1683_v29  ;;  %v1829_v28 = vmov 0   ;;  %v170_v29 = vld [vmem:[%s2475_s1 + $0x4c8] sm:$0xff] }
  0x2f   :  { %1244 = vmatprep.subr.bf16.mxu0 %v1690_v30  ;;  %1326 = vmatprep.subr.bf16.mxu1 %v1692_v31  ;;  %v174_v30 = vld [vmem:[%s2475_s1 + $0x4e8] sm:$0xff]  ;;  %v1745_v31 = vcombine.low %v161_v53, %v165_v19 }
  0x30   :  { %v1756_v34 = vcombine.high %v170_v29, %v174_v30  ;;  %v1755_v40 = vcombine.low %v170_v29, %v174_v30 }
  0x32   :  { %1245 = vmatpush1.bf16.msra.mxu0 %v1689_v36  ;;  %1327 = vmatpush1.bf16.msra.mxu1 %v1691_v37  ;;  %v181_v36 = vld [vmem:[%s2475_s1 + $0x520] sm:$0xff]  ;;  %v178_v37 = vld [vmem:[%s2475_s1 + $0x508] sm:$0xff] }
  0x33   :  { %1246 = vmatprep.subr.bf16.mxu0 %v1698_v38  ;;  %1328 = vmatprep.subr.bf16.mxu1 %v1700_v39  ;;  %v182_v38 = vld [vmem:[%s2475_s1 + $0x528] sm:$0xff]  ;;  %v1753_v39 = vcombine.low %v169_v26, %v173_v27  ;;  %v1762_v41 = vcombine.high %v177_v35, %v181_v36 }
  0x34   :  { %v1764_v42 = vcombine.high %v178_v37, %v182_v38  ;;  %v1763_v48 = vcombine.low %v178_v37, %v182_v38 }
  0x36   :  { %1247 = vmatpush1.bf16.msra.mxu0 %v1697_v44  ;;  %1329 = vmatpush1.bf16.msra.mxu1 %v1699_v45  ;;  %v189_v44 = vld [vmem:[%s2475_s1 + $0x560] sm:$0xff]  ;;  %v186_v45 = vld [vmem:[%s2475_s1 + $0x548] sm:$0xff] }
  0x37   :  { %1248 = vmatprep.subr.bf16.mxu0 %v1706_v46  ;;  %1330 = vmatprep.subr.bf16.mxu1 %v1708_v47  ;;  %v190_v46 = vld [vmem:[%s2475_s1 + $0x568] sm:$0xff]  ;;  %v1761_v47 = vcombine.low %v177_v35, %v181_v36  ;;  %v1770_v49 = vcombine.high %v185_v43, %v189_v44 }
  0x38   :  { %v1772_v50 = vcombine.high %v186_v45, %v190_v46  ;;  %v1771_v58 = vcombine.low %v186_v45, %v190_v46  ;;  %v59_v46 = vld [vmem:[%s2475_s1 + $0x150] sm:$0xff] }
  0x3a   :  { %1249 = vmatpush1.bf16.msra.mxu0 %v1705_v52  ;;  %1331 = vmatpush1.bf16.msra.mxu1 %v1707_v54  ;;  %v197_v52 = vld [vmem:[%s2475_s1 + $0x5a0] sm:$0xff]  ;;  %v194_v54 = vld [vmem:[%s2475_s1 + $0x588] sm:$0xff] }
  0x3b   :  { %1250 = vmatprep.subr.bf16.mxu0 %v1714_v55  ;;  %1332 = vmatprep.subr.bf16.mxu1 %v1716_v56  ;;  %v198_v55 = vld [vmem:[%s2475_s1 + $0x5a8] sm:$0xff]  ;;  %v1769_v56 = vcombine.low %v185_v43, %v189_v44  ;;  %v1778_v59 = vcombine.high %v193_v51, %v197_v52 }
  0x3c   :  { %v1780_v60 = vcombine.high %v194_v54, %v198_v55  ;;  %v1779_v2 = vcombine.low %v194_v54, %v198_v55  ;;  %v67_v55 = vld [vmem:[%s2475_s1 + $0x190] sm:$0xff] }
  0x3e   :  { %1251 = vmatpush1.bf16.msra.mxu0 %v1713_v62  ;;  %1333 = vmatpush1.bf16.msra.mxu1 %v1715_v63  ;;  %v205_v62 = vld [vmem:[%s2475_s1 + $0x5e0] sm:$0xff]  ;;  %v202_v63 = vld [vmem:[%s2475_s1 + $0x5c8] sm:$0xff] }
  0x3f   :  { %1252 = vmatprep.subr.bf16.mxu0 %v1722_v0  ;;  %1334 = vmatprep.subr.bf16.mxu1 %v1724_v1  ;;  %v206_v0 = vld [vmem:[%s2475_s1 + $0x5e8] sm:$0xff]  ;;  %v1777_v1 = vcombine.low %v193_v51, %v197_v52  ;;  %v1786_v3 = vcombine.high %v201_v61, %v205_v62 }
  0x40   :  { %v1788_v4 = vcombine.high %v202_v63, %v206_v0  ;;  %v1787_v10 = vcombine.low %v202_v63, %v206_v0  ;;  %v75_v0 = vld [vmem:[%s2475_s1 + $0x1d0] sm:$0xff] }
  0x42   :  { %1253 = vmatpush1.bf16.msra.mxu0 %v1721_v6  ;;  %1335 = vmatpush1.bf16.msra.mxu1 %v1723_v7  ;;  %v23_v6 = vld [vmem:[%s2475_s1 + $0x30] sm:$0xff]  ;;  %v20_v7 = vld [vmem:[%s2475_s1 + $0x18] sm:$0xff] }
  0x43   :  { %1263 = vmatprep.subr.bf16.mxu0 %v1730_v8  ;;  %1345 = vmatprep.subr.bf16.mxu1 %v1732_v9  ;;  %v24_v8 = vld [vmem:[%s2475_s1 + $0x38] sm:$0xff]  ;;  %v1785_v9 = vcombine.low %v201_v61, %v205_v62  ;;  %v1606_v11 = vcombine.high %v19_v5, %v23_v6  ;;  %v1605_v53 = vcombine.low %v19_v5, %v23_v6 }
  0x44   :  { %v1608_v13 = vcombine.high %v20_v7, %v24_v8  ;;  %v1607_v19 = vcombine.low %v20_v7, %v24_v8  ;;  %v83_v8 = vld [vmem:[%s2475_s1 + $0x210] sm:$0xff] }
  0x45   :  { %1255 = vmatmul.mubr.bf16.vlgmr.msra.gmra.mrb[0].mxu0 %v2073_v12  ;;  %1337 = vmatmul.mubr.bf16.vlgmr.msra.gmra.mrb[0].mxu1 %v2073_v12 }
  0x46   :  { %1264 = vmatpush1.bf16.msra.mxu0 %v1729_v15  ;;  %1346 = vmatpush1.bf16.msra.mxu1 %v1731_v16  ;;  %v31_v15 = vld [vmem:[%s2475_s1 + $0x70] sm:$0xff]  ;;  %v2178_v16 = vld [vmem:[%s2476_s0 + $0x8] ss:$0 sps:$4 sm:$0xff]  }
  0x47   :  { %1265 = vmatprep.subr.bf16.mxu0 %v1738_v17  ;;  %1347 = vmatprep.subr.bf16.mxu1 %v1740_v18  ;;  %v28_v17 = vld [vmem:[%s2475_s1 + $0x58] sm:$0xff]  ;;  %v1614_v20 = vcombine.high %v27_v14, %v31_v15  ;;  %v1613_v26 = vcombine.low %v27_v14, %v31_v15 }
  0x48   :  { %1295 = vmatprep.mubr.bf16.mxu0 %v1829_v28  ;;  %1377 = vmatprep.mubr.bf16.mxu1 %v1829_v28  ;;  %v32_v18 = vld [vmem:[%s2475_s1 + $0x78] sm:$0xff] }
  0x49   :  { %v1616_v21 = vcombine.high %v28_v17, %v32_v18  ;;  %v1615_v27 = vcombine.low %v28_v17, %v32_v18  ;;  %v91_v18 = vld [vmem:[%s2475_s1 + $0x250] sm:$0xff] }
  0x4a   :  { %1266 = vmatpush1.bf16.msra.mxu0 %v1737_v22  ;;  %1348 = vmatpush1.bf16.msra.mxu1 %v1739_v23  ;;  %v35_v22 = vld [vmem:[%s2475_s1 + $0x90] sm:$0xff] }
  0x4b   :  { %1267 = vmatprep.subr.bf16.mxu0 %v1746_v24  ;;  %1349 = vmatprep.subr.bf16.mxu1 %v1748_v25  ;;  %v39_v23 = vld [vmem:[%s2475_s1 + $0xb0] sm:$0xff]  ;;  %v36_v24 = vld [vmem:[%s2475_s1 + $0x98] sm:$0xff] }
  0x4c   :  { %v40_v25 = vld [vmem:[%s2475_s1 + $0xb8] sm:$0xff]  ;;  %v1622_v29 = vcombine.high %v35_v22, %v39_v23  ;;  %v1621_v35 = vcombine.low %v35_v22, %v39_v23 }
  0x4d   :  { %v1624_v30 = vcombine.high %v36_v24, %v40_v25  ;;  %v1623_v36 = vcombine.low %v36_v24, %v40_v25  ;;  %v99_v25 = vld [vmem:[%s2475_s1 + $0x290] sm:$0xff] }
  0x4e   :  { %1268 = vmatpush1.bf16.msra.mxu0 %v1745_v31  ;;  %1350 = vmatpush1.bf16.msra.mxu1 %v1747_v32  ;;  %v43_v31 = vld [vmem:[%s2475_s1 + $0xd0] sm:$0xff] }
  0x4f   :  { %1269 = vmatprep.subr.bf16.mxu0 %v1754_v33  ;;  %1351 = vmatprep.subr.bf16.mxu1 %v1756_v34  ;;  %v47_v32 = vld [vmem:[%s2475_s1 + $0xf0] sm:$0xff]  ;;  %v44_v33 = vld [vmem:[%s2475_s1 + $0xd8] sm:$0xff] }
  0x50   :  { %v48_v34 = vld [vmem:[%s2475_s1 + $0xf8] sm:$0xff]  ;;  %v1630_v37 = vcombine.high %v43_v31, %v47_v32 }
  0x51   :  { %v1632_v38 = vcombine.high %v44_v33, %v48_v34  ;;  %v1631_v43 = vcombine.low %v44_v33, %v48_v34  ;;  %v107_v34 = vld [vmem:[%s2475_s1 + $0x2d0] sm:$0xff] }
  0x52   :  { %1270 = vmatpush1.bf16.msra.mxu0 %v1753_v39  ;;  %1352 = vmatpush1.bf16.msra.mxu1 %v1755_v40  ;;  %v51_v39 = vld [vmem:[%s2475_s1 + $0x110] sm:$0xff] }
  0x53   :  { %1271 = vmatprep.subr.bf16.mxu0 %v1762_v41  ;;  %1353 = vmatprep.subr.bf16.mxu1 %v1764_v42  ;;  %v55_v40 = vld [vmem:[%s2475_s1 + $0x130] sm:$0xff]  ;;  %v56_v41 = vld [vmem:[%s2475_s1 + $0x138] sm:$0xff]  ;;  %v1629_v42 = vcombine.low %v43_v31, %v47_v32 }
  0x54   :  { %v1638_v44 = vcombine.high %v51_v39, %v55_v40 }
  0x56   :  { %1272 = vmatpush1.bf16.msra.mxu0 %v1761_v47  ;;  %1354 = vmatpush1.bf16.msra.mxu1 %v1763_v48  ;;  %v63_v47 = vld [vmem:[%s2475_s1 + $0x170] sm:$0xff]  ;;  %v60_v48 = vld [vmem:[%s2475_s1 + $0x158] sm:$0xff] }
  0x57   :  { %1273 = vmatprep.subr.bf16.mxu0 %v1770_v49  ;;  %1355 = vmatprep.subr.bf16.mxu1 %v1772_v50  ;;  %v64_v49 = vld [vmem:[%s2475_s1 + $0x178] sm:$0xff]  ;;  %v1637_v50 = vcombine.low %v51_v39, %v55_v40  ;;  %v1646_v52 = vcombine.high %v59_v46, %v63_v47 }
  0x58   :  { %v1648_v54 = vcombine.high %v60_v48, %v64_v49  ;;  %v1647_v61 = vcombine.low %v60_v48, %v64_v49  ;;  %v123_v49 = vld [vmem:[%s2475_s1 + $0x350] sm:$0xff] }
  0x5a   :  { %1274 = vmatpush1.bf16.msra.mxu0 %v1769_v56  ;;  %1356 = vmatpush1.bf16.msra.mxu1 %v1771_v58  ;;  %v71_v56 = vld [vmem:[%s2475_s1 + $0x1b0] sm:$0xff]  ;;  %v68_v58 = vld [vmem:[%s2475_s1 + $0x198] sm:$0xff] }
  0x5b   :  { %1275 = vmatprep.subr.bf16.mxu0 %v1778_v59  ;;  %1357 = vmatprep.subr.bf16.mxu1 %v1780_v60  ;;  %v72_v59 = vld [vmem:[%s2475_s1 + $0x1b8] sm:$0xff]  ;;  %v1645_v60 = vcombine.low %v59_v46, %v63_v47  ;;  %v1654_v62 = vcombine.high %v67_v55, %v71_v56 }
  0x5c   :  { %v1656_v63 = vcombine.high %v68_v58, %v72_v59  ;;  %v1655_v5 = vcombine.low %v68_v58, %v72_v59  ;;  %v131_v59 = vld [vmem:[%s2475_s1 + $0x390] sm:$0xff] }
  0x5e   :  { %1276 = vmatpush1.bf16.msra.mxu0 %v1777_v1  ;;  %1358 = vmatpush1.bf16.msra.mxu1 %v1779_v2  ;;  %v79_v1 = vld [vmem:[%s2475_s1 + $0x1f0] sm:$0xff]  ;;  %v76_v2 = vld [vmem:[%s2475_s1 + $0x1d8] sm:$0xff] }
  0x5f   :  { %1277 = vmatprep.subr.bf16.mxu0 %v1786_v3  ;;  %1359 = vmatprep.subr.bf16.mxu1 %v1788_v4  ;;  %v80_v3 = vld [vmem:[%s2475_s1 + $0x1f8] sm:$0xff]  ;;  %v1653_v4 = vcombine.low %v67_v55, %v71_v56  ;;  %v1662_v6 = vcombine.high %v75_v0, %v79_v1 }
  0x60   :  { %v1664_v7 = vcombine.high %v76_v2, %v80_v3  ;;  %v1663_v14 = vcombine.low %v76_v2, %v80_v3  ;;  %v139_v3 = vld [vmem:[%s2475_s1 + $0x3d0] sm:$0xff] }
  0x62   :  { %1278 = vmatpush1.bf16.msra.mxu0 %v1785_v9  ;;  %1360 = vmatpush1.bf16.msra.mxu1 %v1787_v10  ;;  %v87_v9 = vld [vmem:[%s2475_s1 + $0x230] sm:$0xff]  ;;  %v84_v10 = vld [vmem:[%s2475_s1 + $0x218] sm:$0xff] }
  0x63   :  { %1386 = vmatprep.subr.bf16.mxu0 %v1606_v11  ;;  %1468 = vmatprep.subr.bf16.mxu1 %v1608_v13  ;;  %v88_v11 = vld [vmem:[%s2475_s1 + $0x238] sm:$0xff]  ;;  %v1661_v13 = vcombine.low %v75_v0, %v79_v1  ;;  %v1670_v15 = vcombine.high %v83_v8, %v87_v9 }
  0x64   :  { %v1672_v17 = vcombine.high %v84_v10, %v88_v11  ;;  %v1671_v22 = vcombine.low %v84_v10, %v88_v11  ;;  %v147_v11 = vld [vmem:[%s2475_s1 + $0x410] sm:$0xff] }
  0x65   :  { %1296 = vmatmul.mubr.bf16.vlgmr.msra.gmra.mrb[0].mxu0 %v2178_v16  ;;  %1378 = vmatmul.mubr.bf16.vlgmr.msra.gmra.mrb[0].mxu1 %v2178_v16 }
  0x66   :  { %1387 = vmatpush1.bf16.msra.mxu0 %v1605_v53  ;;  %1469 = vmatpush1.bf16.msra.mxu1 %v1607_v19  ;;  %v95_v53 = vld [vmem:[%s2475_s1 + $0x270] sm:$0xff]  ;;  %v92_v19 = vld [vmem:[%s2475_s1 + $0x258] sm:$0xff] }
  0x67   :  { %1388 = vmatprep.subr.bf16.mxu0 %v1614_v20  ;;  %1470 = vmatprep.subr.bf16.mxu1 %v1616_v21  ;;  %v96_v20 = vld [vmem:[%s2475_s1 + $0x278] sm:$0xff]  ;;  %v1669_v21 = vcombine.low %v83_v8, %v87_v9  ;;  %v1678_v23 = vcombine.high %v91_v18, %v95_v53 }
  0x68   :  { %1418 = vmatprep.mubr.bf16.mxu0 %v1947_v57  ;;  %1500 = vmatprep.mubr.bf16.mxu1 %v1947_v57  ;;  %v52_v57 = vld [vmem:[%s2475_s1 + $0x118] sm:$0xff]  ;;  %v1680_v24 = vcombine.high %v92_v19, %v96_v20  ;;  %v1679_v31 = vcombine.low %v92_v19, %v96_v20  ;;  %v155_v20 = vld [vmem:[%s2475_s1 + $0x450] sm:$0xff] }
  0x69   :  { %v1640_v45 = vcombine.high %v52_v57, %v56_v41  ;;  %v1639_v51 = vcombine.low %v52_v57, %v56_v41  ;;  %v115_v41 = vld [vmem:[%s2475_s1 + $0x310] sm:$0xff] }
  0x6a   :  { %1389 = vmatpush1.bf16.msra.mxu0 %v1613_v26  ;;  %1471 = vmatpush1.bf16.msra.mxu1 %v1615_v27  ;;  %v103_v26 = vld [vmem:[%s2475_s1 + $0x2b0] sm:$0xff]  ;;  %v100_v27 = vld [vmem:[%s2475_s1 + $0x298] sm:$0xff] }
  0x6b   :  { %1390 = vmatprep.subr.bf16.mxu0 %v1622_v29  ;;  %1472 = vmatprep.subr.bf16.mxu1 %v1624_v30  ;;  %v104_v29 = vld [vmem:[%s2475_s1 + $0x2b8] sm:$0xff]  ;;  %v1677_v30 = vcombine.low %v91_v18, %v95_v53  ;;  %v1686_v32 = vcombine.high %v99_v25, %v103_v26 }
  0x6c   :  { %v1688_v33 = vcombine.high %v100_v27, %v104_v29  ;;  %v1687_v39 = vcombine.low %v100_v27, %v104_v29  ;;  %v163_v29 = vld [vmem:[%s2475_s1 + $0x490] sm:$0xff] }
  0x6e   :  { %1391 = vmatpush1.bf16.msra.mxu0 %v1621_v35  ;;  %1473 = vmatpush1.bf16.msra.mxu1 %v1623_v36  ;;  %v111_v35 = vld [vmem:[%s2475_s1 + $0x2f0] sm:$0xff]  ;;  %v108_v36 = vld [vmem:[%s2475_s1 + $0x2d8] sm:$0xff] }
  0x6f   :  { %1392 = vmatprep.subr.bf16.mxu0 %v1630_v37  ;;  %1474 = vmatprep.subr.bf16.mxu1 %v1632_v38  ;;  %v112_v37 = vld [vmem:[%s2475_s1 + $0x2f8] sm:$0xff]  ;;  %v1685_v38 = vcombine.low %v99_v25, %v103_v26  ;;  %v1694_v40 = vcombine.high %v107_v34, %v111_v35 }
  0x70   :  { %v1696_v57 = vcombine.high %v108_v36, %v112_v37  ;;  %v1695_v46 = vcombine.low %v108_v36, %v112_v37  ;;  %v171_v37 = vld [vmem:[%s2475_s1 + $0x4d0] sm:$0xff] }
  0x72   :  { %1393 = vmatpush1.bf16.msra.mxu0 %v1629_v42  ;;  %1475 = vmatpush1.bf16.msra.mxu1 %v1631_v43  ;;  %v119_v42 = vld [vmem:[%s2475_s1 + $0x330] sm:$0xff]  ;;  %v116_v43 = vld [vmem:[%s2475_s1 + $0x318] sm:$0xff] }
  0x73   :  { %1394 = vmatprep.subr.bf16.mxu0 %v1638_v44  ;;  %1476 = vmatprep.subr.bf16.mxu1 %v1640_v45  ;;  %v120_v44 = vld [vmem:[%s2475_s1 + $0x338] sm:$0xff]  ;;  %v1693_v45 = vcombine.low %v107_v34, %v111_v35  ;;  %v1702_v47 = vcombine.high %v115_v41, %v119_v42 }
  0x74   :  { %v1704_v48 = vcombine.high %v116_v43, %v120_v44  ;;  %v1703_v55 = vcombine.low %v116_v43, %v120_v44  ;;  %v179_v43 = vld [vmem:[%s2475_s1 + $0x510] sm:$0xff] }
  0x75   :  { %v183_v44 = vld [vmem:[%s2475_s1 + $0x530] sm:$0xff] }
  0x76   :  { %1395 = vmatpush1.bf16.msra.mxu0 %v1637_v50  ;;  %1477 = vmatpush1.bf16.msra.mxu1 %v1639_v51  ;;  %v127_v50 = vld [vmem:[%s2475_s1 + $0x370] sm:$0xff]  ;;  %v124_v51 = vld [vmem:[%s2475_s1 + $0x358] sm:$0xff] }
  0x77   :  { %1396 = vmatprep.subr.bf16.mxu0 %v1646_v52  ;;  %1478 = vmatprep.subr.bf16.mxu1 %v1648_v54  ;;  %v128_v52 = vld [vmem:[%s2475_s1 + $0x378] sm:$0xff]  ;;  %v1701_v54 = vcombine.low %v115_v41, %v119_v42  ;;  %v1710_v56 = vcombine.high %v123_v49, %v127_v50 }
  0x78   :  { %v1712_v58 = vcombine.high %v124_v51, %v128_v52  ;;  %v1711_v0 = vcombine.low %v124_v51, %v128_v52  ;;  %v191_v51 = vld [vmem:[%s2475_s1 + $0x570] sm:$0xff]  ;;  %v188_v52 = vld [vmem:[%s2475_s1 + $0x558] sm:$0xff] }
  0x7a   :  { %1397 = vmatpush1.bf16.msra.mxu0 %v1645_v60  ;;  %1479 = vmatpush1.bf16.msra.mxu1 %v1647_v61  ;;  %v135_v60 = vld [vmem:[%s2475_s1 + $0x3b0] sm:$0xff]  ;;  %v132_v61 = vld [vmem:[%s2475_s1 + $0x398] sm:$0xff] }
  0x7b   :  { %1398 = vmatprep.subr.bf16.mxu0 %v1654_v62  ;;  %1480 = vmatprep.subr.bf16.mxu1 %v1656_v63  ;;  %v136_v62 = vld [vmem:[%s2475_s1 + $0x3b8] sm:$0xff]  ;;  %v1709_v63 = vcombine.low %v123_v49, %v127_v50  ;;  %v1718_v1 = vcombine.high %v131_v59, %v135_v60  ;;  %v187_v50 = vld [vmem:[%s2475_s1 + $0x550] sm:$0xff] }
  0x7c   :  { %v1720_v2 = vcombine.high %v132_v61, %v136_v62  ;;  %v1719_v8 = vcombine.low %v132_v61, %v136_v62  ;;  %v199_v61 = vld [vmem:[%s2475_s1 + $0x5b0] sm:$0xff]  ;;  %v196_v62 = vld [vmem:[%s2475_s1 + $0x598] sm:$0xff] }
  0x7e   :  { %1399 = vmatpush1.bf16.msra.mxu0 %v1653_v4  ;;  %1481 = vmatpush1.bf16.msra.mxu1 %v1655_v5  ;;  %v143_v4 = vld [vmem:[%s2475_s1 + $0x3f0] sm:$0xff]  ;;  %v140_v5 = vld [vmem:[%s2475_s1 + $0x3d8] sm:$0xff] }
  0x7f   :  { %1400 = vmatprep.subr.bf16.mxu0 %v1662_v6  ;;  %1482 = vmatprep.subr.bf16.mxu1 %v1664_v7  ;;  %v144_v6 = vld [vmem:[%s2475_s1 + $0x3f8] sm:$0xff]  ;;  %v1717_v7 = vcombine.low %v131_v59, %v135_v60  ;;  %v1726_v9 = vcombine.high %v139_v3, %v143_v4  ;;  %v195_v60 = vld [vmem:[%s2475_s1 + $0x590] sm:$0xff] }
  0x80   :  { %v1728_v10 = vcombine.high %v140_v5, %v144_v6  ;;  %v1727_v18 = vcombine.low %v140_v5, %v144_v6  ;;  %v207_v5 = vld [vmem:[%s2475_s1 + $0x5f0] sm:$0xff]  ;;  %v204_v6 = vld [vmem:[%s2475_s1 + $0x5d8] sm:$0xff] }
  0x82   :  { %1401 = vmatpush1.bf16.msra.mxu0 %v1661_v13  ;;  %1483 = vmatpush1.bf16.msra.mxu1 %v1663_v14  ;;  %v151_v13 = vld [vmem:[%s2475_s1 + $0x430] sm:$0xff]  ;;  %v148_v14 = vld [vmem:[%s2475_s1 + $0x418] sm:$0xff] }
  0x83   :  { %1402 = vmatprep.subr.bf16.mxu0 %v1670_v15  ;;  %1484 = vmatprep.subr.bf16.mxu1 %v1672_v17  ;;  %v152_v15 = vld [vmem:[%s2475_s1 + $0x438] sm:$0xff]  ;;  %v1725_v17 = vcombine.low %v139_v3, %v143_v4  ;;  %v1734_v53 = vcombine.high %v147_v11, %v151_v13  ;;  %v203_v4 = vld [vmem:[%s2475_s1 + $0x5d0] sm:$0xff] }
  0x84   :  { %v1736_v19 = vcombine.high %v148_v14, %v152_v15  ;;  %v1735_v25 = vcombine.low %v148_v14, %v152_v15  ;;  %v211_v15 = vlaneseq }
  0x86   :  { %1403 = vmatpush1.bf16.msra.mxu0 %v1669_v21  ;;  %1485 = vmatpush1.bf16.msra.mxu1 %v1671_v22  ;;  %v159_v21 = vld [vmem:[%s2475_s1 + $0x470] sm:$0xff]  ;;  %v156_v22 = vld [vmem:[%s2475_s1 + $0x458] sm:$0xff] }
  0x87   :  { %1404 = vmatprep.subr.bf16.mxu0 %v1678_v23  ;;  %1486 = vmatprep.subr.bf16.mxu1 %v1680_v24  ;;  %v160_v23 = vld [vmem:[%s2475_s1 + $0x478] sm:$0xff]  ;;  %v1733_v24 = vcombine.low %v147_v11, %v151_v13  ;;  %v1742_v26 = vcombine.high %v155_v20, %v159_v21  ;;  %v1789_v13 = vcombine.low %v203_v4, %v207_v5 }
  0x88   :  { %v1744_v27 = vcombine.high %v156_v22, %v160_v23  ;;  %v1743_v34 = vcombine.low %v156_v22, %v160_v23 }
  0x8a   :  { %1405 = vmatpush1.bf16.msra.mxu0 %v1677_v30  ;;  %1487 = vmatpush1.bf16.msra.mxu1 %v1679_v31  ;;  %v167_v30 = vld [vmem:[%s2475_s1 + $0x4b0] sm:$0xff]  ;;  %v164_v31 = vld [vmem:[%s2475_s1 + $0x498] sm:$0xff] }
  0x8b   :  { %1406 = vmatprep.subr.bf16.mxu0 %v1686_v32  ;;  %1488 = vmatprep.subr.bf16.mxu1 %v1688_v33  ;;  %v168_v32 = vld [vmem:[%s2475_s1 + $0x4b8] sm:$0xff]  ;;  %v1741_v33 = vcombine.low %v155_v20, %v159_v21  ;;  %v1750_v35 = vcombine.high %v163_v29, %v167_v30 }
  0x8c   :  { %v1752_v36 = vcombine.high %v164_v31, %v168_v32 }
  0x8e   :  { %1407 = vmatpush1.bf16.msra.mxu0 %v1685_v38  ;;  %1489 = vmatpush1.bf16.msra.mxu1 %v1687_v39  ;;  %v175_v38 = vld [vmem:[%s2475_s1 + $0x4f0] sm:$0xff]  ;;  %v176_v39 = vld [vmem:[%s2475_s1 + $0x4f8] sm:$0xff] }
  0x8f   :  { %1408 = vmatprep.subr.bf16.mxu0 %v1694_v40  ;;  %1490 = vmatprep.subr.bf16.mxu1 %v1696_v57  ;;  %v1749_v40 = vcombine.low %v163_v29, %v167_v30  ;;  %v1751_v57 = vcombine.low %v164_v31, %v168_v32  ;;  %v1758_v41 = vcombine.high %v171_v37, %v175_v38 }
  0x92   :  { %1409 = vmatpush1.bf16.msra.mxu0 %v1693_v45  ;;  %1491 = vmatpush1.bf16.msra.mxu1 %v1695_v46  ;;  %v184_v45 = vld [vmem:[%s2475_s1 + $0x538] sm:$0xff]  ;;  %v1757_v46 = vcombine.low %v171_v37, %v175_v38 }
  0x93   :  { %1410 = vmatprep.subr.bf16.mxu0 %v1702_v47  ;;  %1492 = vmatprep.subr.bf16.mxu1 %v1704_v48  ;;  %v1766_v48 = vcombine.high %v179_v43, %v183_v44 }
  0x96   :  { %1411 = vmatpush1.bf16.msra.mxu0 %v1701_v54  ;;  %1493 = vmatpush1.bf16.msra.mxu1 %v1703_v55  ;;  %v192_v54 = vld [vmem:[%s2475_s1 + $0x578] sm:$0xff]  ;;  %v1765_v55 = vcombine.low %v179_v43, %v183_v44 }
  0x97   :  { %1412 = vmatprep.subr.bf16.mxu0 %v1710_v56  ;;  %1494 = vmatprep.subr.bf16.mxu1 %v1712_v58  ;;  %v1774_v58 = vcombine.high %v187_v50, %v191_v51  ;;  %v1776_v59 = vcombine.high %v188_v52, %v192_v54 }
  0x9a   :  { %1413 = vmatpush1.bf16.msra.mxu0 %v1709_v63  ;;  %1495 = vmatpush1.bf16.msra.mxu1 %v1711_v0  ;;  %v200_v63 = vld [vmem:[%s2475_s1 + $0x5b8] sm:$0xff]  ;;  %v1773_v0 = vcombine.low %v187_v50, %v191_v51 }
  0x9b   :  { %1414 = vmatprep.subr.bf16.mxu0 %v1718_v1  ;;  %1496 = vmatprep.subr.bf16.mxu1 %v1720_v2  ;;  %v1775_v1 = vcombine.low %v188_v52, %v192_v54  ;;  %v1782_v2 = vcombine.high %v195_v60, %v199_v61  ;;  %v1784_v3 = vcombine.high %v196_v62, %v200_v63 }
  0x9e   :  { %1415 = vmatpush1.bf16.msra.mxu0 %v1717_v7  ;;  %1497 = vmatpush1.bf16.msra.mxu1 %v1719_v8  ;;  %v208_v7 = vld [vmem:[%s2475_s1 + $0x5f8] sm:$0xff]  ;;  %v1781_v8 = vcombine.low %v195_v60, %v199_v61 }
  0x9f   :  { %1416 = vmatprep.subr.bf16.mxu0 %v1726_v9  ;;  %1498 = vmatprep.subr.bf16.mxu1 %v1728_v10  ;;  %v1783_v9 = vcombine.low %v196_v62, %v200_v63  ;;  %v1790_v10 = vcombine.high %v203_v4, %v207_v5  ;;  %v1792_v11 = vcombine.high %v204_v6, %v208_v7 }
  0xa0   :  { %v1791_v14 = vcombine.low %v204_v6, %v208_v7 }
  0xa2   :  { %1417 = vmatpush1.bf16.msra.mxu0 %v1725_v17  ;;  %1499 = vmatpush1.bf16.msra.mxu1 %v1727_v18  ;;  %v212_v17 = vshrl.u32 %v211_v15, 7 }
  0xa3   :  { %1427 = vmatprep.subr.bf16.mxu0 %v1734_v53  ;;  %1509 = vmatprep.subr.bf16.mxu1 %v1736_v19  ;;  %v209_v53 = vld [vmem:[%s2477_s2] sm:$0xff] }
  0xa4   :  { %v213_v18 = vsub.s32 0, %v212_v17  ;;  %v221_v19 = vsub.s32 2, %v212_v17  ;;  %v217_v20 = vsub.s32 1, %v212_v17  ;;  %v225_v21 = vsub.s32 3, %v212_v17 }
  0xa5   :  { %1419 = vmatmul.mubr.bf16.vlgmr.msra.gmra.mrb[4].mxu0 %v2073_v12  ;;  %1501 = vmatmul.mubr.bf16.vlgmr.msra.gmra.mrb[4].mxu1 %v2073_v12  ;;  %v172_v12 = vld [vmem:[%s2475_s1 + $0x4d8] sm:$0xff]  ;;  %v237_v43 = vsub.s32 6, %v212_v17  ;;  %v233_v44 = vsub.s32 5, %v212_v17 }
  0xa6   :  { %1428 = vmatpush1.bf16.msra.mxu0 %v1733_v24  ;;  %1510 = vmatpush1.bf16.msra.mxu1 %v1735_v25  ;;  %v1760_v42 = vcombine.high %v172_v12, %v176_v39  ;;  %v1759_v47 = vcombine.low %v172_v12, %v176_v39  ;;  %v214_v22 = vrot.slane %v209_v53, %v213_v18 }
  0xa7   :  { %1429 = vmatprep.subr.bf16.mxu0 %v1742_v26  ;;  %1511 = vmatprep.subr.bf16.mxu1 %v1744_v27  ;;  %v222_v23 = vrot.slane %v209_v53, %v221_v19  ;;  %v218_v24 = vrot.slane %v209_v53, %v217_v20  ;;  %v226_v25 = vrot.slane %v209_v53, %v225_v21 }
  0xa8   :  { %1459 = vmatprep.mubr.bf16.mxu0 %v1829_v28  ;;  %1541 = vmatprep.mubr.bf16.mxu1 %v1829_v28  ;;  %v180_v28 = vld [vmem:[%s2475_s1 + $0x518] sm:$0xff] }
  0xa9   :  { %v1768_v49 = vcombine.high %v180_v28, %v184_v45  ;;  %v1767_v56 = vcombine.low %v180_v28, %v184_v45  ;;  %v241_v28 = vsub.s32 7, %v212_v17 }
  0xaa   :  { %1430 = vmatpush1.bf16.msra.mxu0 %v1741_v33  ;;  %1512 = vmatpush1.bf16.msra.mxu1 %v1743_v34 }
  0xab   :  { %1431 = vmatprep.subr.bf16.mxu0 %v1750_v35  ;;  %1513 = vmatprep.subr.bf16.mxu1 %v1752_v36 }
  0xae   :  { %1432 = vmatpush1.bf16.msra.mxu0 %v1749_v40  ;;  %1514 = vmatpush1.bf16.msra.mxu1 %v1751_v57 }
  0xaf   :  { %1433 = vmatprep.subr.bf16.mxu0 %v1758_v41  ;;  %1515 = vmatprep.subr.bf16.mxu1 %v1760_v42  ;;  %v229_v42 = vsub.s32 4, %v212_v17 }
  0xb1   :  { %v230_v45 = vrot.slane %v209_v53, %v229_v42 }
  0xb2   :  { %1434 = vmatpush1.bf16.msra.mxu0 %v1757_v46  ;;  %1516 = vmatpush1.bf16.msra.mxu1 %v1759_v47  ;;  %v238_v46 = vrot.slane %v209_v53, %v237_v43  ;;  %v234_v47 = vrot.slane %v209_v53, %v233_v44 }
  0xb3   :  { %1435 = vmatprep.subr.bf16.mxu0 %v1766_v48  ;;  %1517 = vmatprep.subr.bf16.mxu1 %v1768_v49  ;;  %v242_v48 = vrot.slane %v209_v53, %v241_v28 }
  0xb6   :  { %1436 = vmatpush1.bf16.msra.mxu0 %v1765_v55  ;;  %1518 = vmatpush1.bf16.msra.mxu1 %v1767_v56 }
  0xb7   :  { %1437 = vmatprep.subr.bf16.mxu0 %v1774_v58  ;;  %1519 = vmatprep.subr.bf16.mxu1 %v1776_v59 }
  0xba   :  { %1438 = vmatpush1.bf16.msra.mxu0 %v1773_v0  ;;  %1520 = vmatpush1.bf16.msra.mxu1 %v1775_v1 }
  0xbb   :  { %1439 = vmatprep.subr.bf16.mxu0 %v1782_v2  ;;  %1521 = vmatprep.subr.bf16.mxu1 %v1784_v3 }
  0xbe   :  { %1440 = vmatpush1.bf16.msra.mxu0 %v1781_v8  ;;  %1522 = vmatpush1.bf16.msra.mxu1 %v1783_v9 }
  0xbf   :  { %1441 = vmatprep.subr.bf16.mxu0 %v1790_v10  ;;  %1523 = vmatprep.subr.bf16.mxu1 %v1792_v11 }
  0xc2   :  { %1442 = vmatpush1.bf16.msra.mxu0 %v1789_v13  ;;  %1524 = vmatpush1.bf16.msra.mxu1 %v1791_v14 }
  0xc5   :  { %1460 = vmatmul.mubr.bf16.vlgmr.msra.gmra.mrb[4].mxu0 %v2178_v16  ;;  %1542 = vmatmul.mubr.bf16.vlgmr.msra.gmra.mrb[4].mxu1 %v2178_v16 }
 0x138   :  { %v1297_v26 = vpop.f32.mrb[0].mxu0  ;;  %v1379_v29 = vpop.f32.mrb[0].mxu1 }
 0x139   :  { %v1801_v27 = vadd.f32 %v1297_v26, %v214_v22  ;;  %v1299_v30 = vpop.f32.mrb[1].mxu0  ;;  %v1803_v31 = vadd.f32 %v1379_v29, %v222_v23  ;;  %v1381_v32 = vpop.f32.mrb[1].mxu1 }
 0x13a   :  { %v1802_v16 = vadd.f32 %v1299_v30, %v218_v24  ;;  %v1301_v33 = vpop.f32.mrb[2].mxu0  ;;  %v1804_v35 = vadd.f32 %v1381_v32, %v226_v25  ;;  %v1383_v36 = vpop.f32.mrb[2].mxu1 }
 0x13b   :  { %v1550_v34 = vmax.f32 %v1801_v27, 0.0  ;;  %v1302_v37 = vpop.f32.mrb[3].mxu0  ;;  %v1552_v38 = vmax.f32 %v1803_v31, 0.0  ;;  %v1384_v39 = vpop.f32.mrb[3].mxu1 }
 0x13c   :  { %v1551_v12 = vmax.f32 %v1802_v16, 0.0  ;;  %v1553_v40 = vmax.f32 %v1804_v35, 0.0 }
 0x13e   :  { %v1797_v57 = vpack.c.bf16 %v1551_v12, %v1550_v34  ;;  %v1798_v41 = vpack.c.bf16 %v1553_v40, %v1552_v38 }
 0x140   :  { %1590 = vst [vmem:[%s2478_s3] sm:$0xff] %v1797_v57  ;;  %1591 = vst [vmem:[%s2478_s3 + $0x8] sm:$0xff] %v1798_v41 }
 0x198   :  { %v1461_v49 = vpop.f32.mrb[4].mxu0  ;;  %v1543_v51 = vpop.f32.mrb[4].mxu1 }
 0x199   :  { %v1805_v50 = vadd.f32 %v1461_v49, %v230_v45  ;;  %v1463_v52 = vpop.f32.mrb[5].mxu0  ;;  %v1807_v54 = vadd.f32 %v1543_v51, %v238_v46  ;;  %v1545_v56 = vpop.f32.mrb[5].mxu1 }
 0x19a   :  { %v1806_v55 = vadd.f32 %v1463_v52, %v234_v47  ;;  %v1465_v58 = vpop.f32.mrb[6].mxu0  ;;  %v1808_v60 = vadd.f32 %v1545_v56, %v242_v48  ;;  %v1547_v61 = vpop.f32.mrb[6].mxu1 }
 0x19b   :  { %v1554_v59 = vmax.f32 %v1805_v50, 0.0  ;;  %v1466_v62 = vpop.f32.mrb[7].mxu0  ;;  %v1556_v63 = vmax.f32 %v1807_v54, 0.0  ;;  %v1548_v1 = vpop.f32.mrb[7].mxu1 }
 0x19c   :  { %v1555_v0 = vmax.f32 %v1806_v55, 0.0  ;;  %v1557_v2 = vmax.f32 %v1808_v60, 0.0 }
 0x19e   :  { %v1799_v3 = vpack.c.bf16 %v1555_v0, %v1554_v59  ;;  %v1800_v4 = vpack.c.bf16 %v1557_v2, %v1556_v63 }
 0x1a0   :  { %1592 = vst [vmem:[%s2478_s3 + $0x10] sm:$0xff] %v1799_v3  ;;  %1593 = vst [vmem:[%s2478_s3 + $0x18] sm:$0xff] %v1800_v4 }

// kernel: gamma_forward.10
= control target key start
LH: loop header
LB: loop body
LE: loop exit
PB: predicated region body
PF: predicated region fallthrough
CT: control target
= control target key end

     0   :  { %s4834_s21 = smov 0   ;;  %s4836_s22 = smov 0   ;;  %s6008_s0 = inlined_call_operand.vmem [shape: bf16[2,2,2,1024], index: 0, kind: input, shape index: {}]   ;;  %s6009_s1 = inlined_call_operand.vmem [shape: bf16[2,2,2,384], index: 1, kind: input, shape index: {}]   ;;  %s6010_s2 = inlined_call_operand.vmem [shape: bf16[2,4,4,192], index: 2, kind: input, shape index: {}]   ;;  %s6011_s3 = inlined_call_operand.vmem [shape: bf16[2,8,8,64], index: 3, kind: input, shape index: {}]   ;;  %s6012_s4 = inlined_call_operand.vmem [shape: bf16[1024,384], index: 4, kind: input, shape index: {}]   ;;  %s6013_s5 = inlined_call_operand.vmem [shape: f32[1,384], index: 5, kind: input, shape index: {}]   ;;  %s6014_s6 = inlined_call_operand.vmem [shape: bf16[384,192], index: 6, kind: input, shape index: {}]   ;;  %s6015_s7 = inlined_call_operand.vmem [shape: f32[1,192], index: 7, kind: input, shape index: {}]   ;;  %s6016_s8 = inlined_call_operand.vmem [shape: bf16[192,64], index: 8, kind: input, shape index: {}]   ;;  %s6017_s9 = inlined_call_operand.vmem [shape: f32[1,64], index: 9, kind: input, shape index: {}]   ;;  %s6018_s10 = inlined_call_operand.vmem [shape: bf16[64,128], index: 10, kind: input, shape index: {}]   ;;  %s6019_s11 = inlined_call_operand.vmem [shape: f32[1,128], index: 11, kind: input, shape index: {}]   ;;  %s6020_s12 = inlined_call_operand.vmem [shape: bf16[2,8,8,128], index: 12, kind: output, shape index: {}]  }
   0x1   :  { %s4838_s23 = smov 0  }
   0x2 LB: > { %s34_s24 = sadd.s32 1, %s4760_s22  ;;  %p3922_p0 = scmp.ge.s32.totalorder %s4764_s23, 1  ;;  %s4764_s23 = sphi %s4838_s23, %s22_s23   ;;  %s4760_s22 = sphi %s4836_s22, %s6022_s22   ;;  %s4756_s21 = sphi %s4834_s21, %s6021_s21  }
   0x3   : > { %p36_p1 = scmp.ge.s32.totalorder %s34_s24, 2  ;;  %p435_p2 = scmp.lt.s32.totalorder %s4764_s23, 3 }
   0x5   : > { %s6024_s24 = smov (%p36_p1, %s34_s24), 0  ;;  %p436_p3 = pnand %p3922_p0, %p435_p2 }
   0x6   : > { %v4395_v0 = vld [vmem:[%s6012_s4 + $0x4] ss:$12 sps:$4 sm:$0xff] (!%p436_p3)   ;;  %v4399_v2 = vld [vmem:[%s6012_s4] ss:$12 sps:$4 sm:$0xff] (!%p436_p3)   ;;  %v4401_v4 = vld [vmem:[%s6012_s4 + $0x1c] ss:$12 sps:$4 sm:$0xff] (!%p436_p3)   ;;  %v825_v38 = vlaneseq (!%p436_p3) }
   0x7   : > { %439 = sbr.rel (%p436_p3) target bundleno = 1150 (0x47e), region = 68  ;;  %v4397_v1 = vld [vmem:[%s6012_s4 + $0x184] ss:$12 sps:$4 sm:$0xff] (!%p436_p3)   ;;  %1924 = vmatprep.subr.bf16.mxu0 (!%p436_p3), %v4395_v0  ;;  %v4400_v3 = vld [vmem:[%s6012_s4 + $0x180] ss:$12 sps:$4 sm:$0xff] (!%p436_p3)   ;;  %p514_p4 = scmp.lt.s32.totalorder (!%p436_p3), %s4756_s21, 1 }
   0x8   : > { %1965 = vmatprep.subr.bf16.mxu1 (!%p436_p3), %v4397_v1  ;;  %1925 = vmatpush1.bf16.msra.mxu0 (!%p436_p3), %v4399_v2  ;;  %v4403_v5 = vld [vmem:[%s6012_s4 + $0x19c] ss:$12 sps:$4 sm:$0xff] (!%p436_p3)   ;;  %v4405_v6 = vld [vmem:[%s6012_s4 + $0x18] ss:$12 sps:$4 sm:$0xff] (!%p436_p3)   ;;  %v4407_v8 = vld [vmem:[%s6012_s4 + $0x34] ss:$12 sps:$4 sm:$0xff] (!%p436_p3)  }
   0x9   : > { %1966 = vmatpush1.bf16.msra.mxu1 (!%p436_p3), %v4400_v3  ;;  %1926 = vmatprep.subr.bf16.mxu0 (!%p436_p3), %v4401_v4  ;;  %v4406_v7 = vld [vmem:[%s6012_s4 + $0x198] ss:$12 sps:$4 sm:$0xff] (!%p436_p3)   ;;  %v4409_v9 = vld [vmem:[%s6012_s4 + $0x1b4] ss:$12 sps:$4 sm:$0xff] (!%p436_p3)   ;;  %v4411_v10 = vld [vmem:[%s6012_s4 + $0x30] ss:$12 sps:$4 sm:$0xff] (!%p436_p3)  }
   0xa   : > { %1967 = vmatprep.subr.bf16.mxu1 (!%p436_p3), %v4403_v5  ;;  %v4412_v11 = vld [vmem:[%s6012_s4 + $0x1b0] ss:$12 sps:$4 sm:$0xff] (!%p436_p3)   ;;  %v4413_v12 = vld [vmem:[%s6012_s4 + $0x4c] ss:$12 sps:$4 sm:$0xff] (!%p436_p3)   ;;  %v4417_v14 = vld [vmem:[%s6012_s4 + $0x48] ss:$12 sps:$4 sm:$0xff] (!%p436_p3)  }
   0xb   : > { %v4415_v13 = vld [vmem:[%s6012_s4 + $0x1cc] ss:$12 sps:$4 sm:$0xff] (!%p436_p3)   ;;  %v4418_v15 = vld [vmem:[%s6012_s4 + $0x1c8] ss:$12 sps:$4 sm:$0xff] (!%p436_p3)   ;;  %v4419_v16 = vld [vmem:[%s6012_s4 + $0x64] ss:$12 sps:$4 sm:$0xff] (!%p436_p3)  }
   0xc   : > { %1927 = vmatpush1.bf16.msra.mxu0 (!%p436_p3), %v4405_v6  ;;  %v4421_v17 = vld [vmem:[%s6012_s4 + $0x1e4] ss:$12 sps:$4 sm:$0xff] (!%p436_p3)   ;;  %v4423_v18 = vld [vmem:[%s6012_s4 + $0x60] ss:$12 sps:$4 sm:$0xff] (!%p436_p3)   ;;  %v4425_v20 = vld [vmem:[%s6012_s4 + $0x7c] ss:$12 sps:$4 sm:$0xff] (!%p436_p3)  }
   0xd   : > { %1968 = vmatpush1.bf16.msra.mxu1 (!%p436_p3), %v4406_v7  ;;  %1928 = vmatprep.subr.bf16.mxu0 (!%p436_p3), %v4407_v8  ;;  %v4424_v19 = vld [vmem:[%s6012_s4 + $0x1e0] ss:$12 sps:$4 sm:$0xff] (!%p436_p3)   ;;  %v4427_v21 = vld [vmem:[%s6012_s4 + $0x1fc] ss:$12 sps:$4 sm:$0xff] (!%p436_p3)   ;;  %v4429_v22 = vld [vmem:[%s6012_s4 + $0x78] ss:$12 sps:$4 sm:$0xff] (!%p436_p3)  }
   0xe   : > { %1969 = vmatprep.subr.bf16.mxu1 %v4409_v9  ;;  %v4430_v23 = vld [vmem:[%s6012_s4 + $0x1f8] ss:$12 sps:$4 sm:$0xff]   ;;  %v4431_v24 = vld [vmem:[%s6012_s4 + $0x94] ss:$12 sps:$4 sm:$0xff]   ;;  %v4435_v26 = vld [vmem:[%s6012_s4 + $0x90] ss:$12 sps:$4 sm:$0xff]  }
   0xf   : > { %v4433_v25 = vld [vmem:[%s6012_s4 + $0x214] ss:$12 sps:$4 sm:$0xff]   ;;  %v4436_v27 = vld [vmem:[%s6012_s4 + $0x210] ss:$12 sps:$4 sm:$0xff]   ;;  %v4437_v28 = vld [vmem:[%s6012_s4 + $0xac] ss:$12 sps:$4 sm:$0xff]  }
  0x10   : > { %1929 = vmatpush1.bf16.msra.mxu0 %v4411_v10  ;;  %v4439_v29 = vld [vmem:[%s6012_s4 + $0x22c] ss:$12 sps:$4 sm:$0xff]   ;;  %v4441_v30 = vld [vmem:[%s6012_s4 + $0xa8] ss:$12 sps:$4 sm:$0xff]   ;;  %v4443_v32 = vld [vmem:[%s6012_s4 + $0xc4] ss:$12 sps:$4 sm:$0xff]  }
  0x11   : > { %1970 = vmatpush1.bf16.msra.mxu1 %v4412_v11  ;;  %1930 = vmatprep.subr.bf16.mxu0 %v4413_v12  ;;  %v4442_v31 = vld [vmem:[%s6012_s4 + $0x228] ss:$12 sps:$4 sm:$0xff]   ;;  %v4445_v33 = vld [vmem:[%s6012_s4 + $0x244] ss:$12 sps:$4 sm:$0xff]   ;;  %v4447_v34 = vld [vmem:[%s6012_s4 + $0xc0] ss:$12 sps:$4 sm:$0xff]  }
  0x12   : > { %1971 = vmatprep.subr.bf16.mxu1 %v4415_v13  ;;  %v4448_v35 = vld [vmem:[%s6012_s4 + $0x240] ss:$12 sps:$4 sm:$0xff]   ;;  %v4449_v36 = vld [vmem:[%s6012_s4 + $0xdc] ss:$12 sps:$4 sm:$0xff]   ;;  %s6026_s21 = smov (!%p514_p4, %s4756_s21), 1  ;;  %v4985_v45 = vshrl.u32 %v825_v38, 7 }
  0x13   : > { %v4451_v37 = vld [vmem:[%s6012_s4 + $0x25c] ss:$12 sps:$4 sm:$0xff]   ;;  %v4766_v39 = vmov 1966171168   ;;  %v4453_v41 = vld [vmem:[%s6012_s4 + $0xd8] ss:$12 sps:$4 sm:$0xff]  }
  0x14   : > { %1931 = vmatpush1.bf16.msra.mxu0 %v4417_v14  ;;  %v845_v40 = vunpack.c.l.s4 %v4766_v39  ;;  %v4454_v42 = vld [vmem:[%s6012_s4 + $0x258] ss:$12 sps:$4 sm:$0xff]   ;;  %v4455_v43 = vld [vmem:[%s6012_s4 + $0xf4] ss:$12 sps:$4 sm:$0xff]   ;;  %s3923_s25 = sshll.u32 %s6026_s21, 4  ;;  %s4367_s18 = smul.u32 6, %s6026_s21 }
  0x15   : > { %1972 = vmatpush1.bf16.msra.mxu1 %v4418_v15  ;;  %1932 = vmatprep.subr.bf16.mxu0 %v4419_v16  ;;  %v4457_v44 = vld [vmem:[%s6012_s4 + $0x274] ss:$12 sps:$4 sm:$0xff]   ;;  %v4459_v47 = vld [vmem:[%s6012_s4 + $0xf0] ss:$12 sps:$4 sm:$0xff]   ;;  %v4461_v49 = vld [vmem:[%s6012_s4 + $0x10c] ss:$12 sps:$4 sm:$0xff]   ;;  %s5001_s16 = scalar_lea.vmem %s6008_s0, %s3923_s25  ;;  %s542_s20 = scalar_lea.vmem %s6010_s2, %s3923_s25 }
  0x16   : > { %1973 = vmatprep.subr.bf16.mxu1 %v4421_v17  ;;  %v846_v46 = vunpack.c.0.s8 %v845_v40  ;;  %v4460_v48 = vld [vmem:[%s6012_s4 + $0x270] ss:$12 sps:$4 sm:$0xff]   ;;  %v4463_v50 = vld [vmem:[%s6012_s4 + $0x28c] ss:$12 sps:$4 sm:$0xff]   ;;  %v4465_v52 = vld [vmem:[%s6012_s4 + $0x108] ss:$12 sps:$4 sm:$0xff]  }
  0x17   : > { %v4491_v53 = vld [vmem:[%s5001_s16] ss:$8 sps:$4 sm:$0xff]   ;;  %v4467_v55 = vld [vmem:[%s6012_s4 + $0x124] ss:$12 sps:$4 sm:$0xff]   ;;  %v4485_v7 = vld [vmem:[%s6012_s4 + $0x16c] ss:$12 sps:$4 sm:$0xff]  }
  0x18   : > { %1933 = vmatpush1.bf16.msra.mxu0 %v4423_v18  ;;  %v5007_v51 = vsub.s32 %v846_v46, %v4985_v45  ;;  %v4466_v54 = vld [vmem:[%s6012_s4 + $0x288] ss:$12 sps:$4 sm:$0xff]   ;;  %v4469_v56 = vld [vmem:[%s6012_s4 + $0x2a4] ss:$12 sps:$4 sm:$0xff]   ;;  %v4471_v58 = vld [vmem:[%s6012_s4 + $0x120] ss:$12 sps:$4 sm:$0xff]  }
  0x19   : > { %1974 = vmatpush1.bf16.msra.mxu1 %v4424_v19  ;;  %1934 = vmatprep.subr.bf16.mxu0 %v4425_v20  ;;  %v4472_v60 = vld [vmem:[%s6012_s4 + $0x2a0] ss:$12 sps:$4 sm:$0xff]   ;;  %v4473_v61 = vld [vmem:[%s6012_s4 + $0x13c] ss:$12 sps:$4 sm:$0xff]   ;;  %v4477_v0 = vld [vmem:[%s6012_s4 + $0x138] ss:$12 sps:$4 sm:$0xff]  }
  0x1a   : > { %1975 = vmatprep.subr.bf16.mxu1 %v4427_v21  ;;  %v850_v57 = vrot.slane %v4491_v53, %v5007_v51  ;;  %v4475_v62 = vld [vmem:[%s6012_s4 + $0x2bc] ss:$12 sps:$4 sm:$0xff]   ;;  %v4478_v2 = vld [vmem:[%s6012_s4 + $0x2b8] ss:$12 sps:$4 sm:$0xff]   ;;  %v4479_v3 = vld [vmem:[%s6012_s4 + $0x154] ss:$12 sps:$4 sm:$0xff]  }
  0x1b   : > { %v4481_v4 = vld [vmem:[%s6012_s4 + $0x2d4] ss:$12 sps:$4 sm:$0xff]   ;;  %v4483_v5 = vld [vmem:[%s6012_s4 + $0x150] ss:$12 sps:$4 sm:$0xff]   ;;  %v4487_v8 = vld [vmem:[%s6012_s4 + $0x2ec] ss:$12 sps:$4 sm:$0xff]  }
  0x1c   : > { %1935 = vmatpush1.bf16.msra.mxu0 %v4429_v22  ;;  %v858_v59 = vcombine.high %v850_v57, %v850_v57  ;;  %v4484_v6 = vld [vmem:[%s6012_s4 + $0x2d0] ss:$12 sps:$4 sm:$0xff]   ;;  %v4489_v9 = vld [vmem:[%s6012_s4 + $0x168] ss:$12 sps:$4 sm:$0xff]   ;;  %v5072_v10 = vrot.slane %v850_v57, %v5007_v51  ;;  %v4493_v15 = vld [vmem:[%s6012_s4 + $0x300] ss:$12 sps:$4 sm:$0xff]  }
  0x1d   : > { %1976 = vmatpush1.bf16.msra.mxu1 %v4430_v23  ;;  %1936 = vmatprep.subr.bf16.mxu0 %v4431_v24  ;;  %v4490_v11 = vld [vmem:[%s6012_s4 + $0x2e8] ss:$12 sps:$4 sm:$0xff]   ;;  %v4495_v12 = vld [vmem:[%s6012_s4 + $0x304] ss:$12 sps:$4 sm:$0xff]   ;;  %v4496_v16 = vld [vmem:[%s6012_s4 + $0x480] ss:$12 sps:$4 sm:$0xff]  }
  0x1e   : > { %1977 = vmatprep.subr.bf16.mxu1 %v4433_v25  ;;  %v5036_v63 = vrot.slane %v858_v59, %v5007_v51  ;;  %v4498_v13 = vld [vmem:[%s6012_s4 + $0x484] ss:$12 sps:$4 sm:$0xff]   ;;  %v5085_v14 = vcombine.high %v5072_v10, %v5072_v10  ;;  %v4501_v17 = vld [vmem:[%s6012_s4 + $0x31c] ss:$12 sps:$4 sm:$0xff]   ;;  %v4507_v21 = vld [vmem:[%s6012_s4 + $0x334] ss:$12 sps:$4 sm:$0xff]  }
  0x1f   : > { %v4504_v18 = vld [vmem:[%s6012_s4 + $0x49c] ss:$12 sps:$4 sm:$0xff]   ;;  %v4499_v19 = vld [vmem:[%s6012_s4 + $0x318] ss:$12 sps:$4 sm:$0xff]   ;;  %v4510_v22 = vld [vmem:[%s6012_s4 + $0x4b4] ss:$12 sps:$4 sm:$0xff]  }
  0x20   : > { %1937 = vmatpush1.bf16.msra.mxu0 %v4435_v26  ;;  %1956 = vmatprep.mubr.bf16.mxu0 %v5036_v63  ;;  %v5044_v1 = vcombine.high %v5036_v63, %v5036_v63  ;;  %v4502_v20 = vld [vmem:[%s6012_s4 + $0x498] ss:$12 sps:$4 sm:$0xff]   ;;  %v4505_v23 = vld [vmem:[%s6012_s4 + $0x330] ss:$12 sps:$4 sm:$0xff]   ;;  %v4534_v38 = vld [vmem:[%s6012_s4 + $0x514] ss:$12 sps:$4 sm:$0xff]  }
  0x21   : > { %1978 = vmatpush1.bf16.msra.mxu1 %v4436_v27  ;;  %1938 = vmatprep.subr.bf16.mxu0 %v4437_v28  ;;  %v4508_v24 = vld [vmem:[%s6012_s4 + $0x4b0] ss:$12 sps:$4 sm:$0xff]   ;;  %v4513_v25 = vld [vmem:[%s6012_s4 + $0x34c] ss:$12 sps:$4 sm:$0xff]   ;;  %v4511_v27 = vld [vmem:[%s6012_s4 + $0x348] ss:$12 sps:$4 sm:$0xff]  }
  0x22   : > { %1979 = vmatprep.subr.bf16.mxu1 %v4439_v29  ;;  %1997 = vmatprep.mubr.bf16.mxu1 %v5044_v1  ;;  %v4516_v26 = vld [vmem:[%s6012_s4 + $0x4cc] ss:$12 sps:$4 sm:$0xff]   ;;  %v4514_v28 = vld [vmem:[%s6012_s4 + $0x4c8] ss:$12 sps:$4 sm:$0xff]   ;;  %v4519_v29 = vld [vmem:[%s6012_s4 + $0x364] ss:$12 sps:$4 sm:$0xff]  }
  0x23   : > { %v4529_v39 = vld [vmem:[%s6012_s4 + $0x390] ss:$12 sps:$4 sm:$0xff]   ;;  %v4535_v46 = vld [vmem:[%s6012_s4 + $0x3a8] ss:$12 sps:$4 sm:$0xff]   ;;  %v4541_v53 = vld [vmem:[%s6012_s4 + $0x3c0] ss:$12 sps:$4 sm:$0xff]  }
  0x24   : > { %1939 = vmatpush1.bf16.msra.mxu0 %v4441_v30  ;;  %v4522_v30 = vld [vmem:[%s6012_s4 + $0x4e4] ss:$12 sps:$4 sm:$0xff]   ;;  %v4552_v57 = vld [vmem:[%s6012_s4 + $0x55c] ss:$12 sps:$4 sm:$0xff]   ;;  %vm2981_vm0 = vcmask 523264   ;;  %s4196_s14 = sshll.u32 %s6026_s21, 5 }
  0x25   : > { %1980 = vmatpush1.bf16.msra.mxu1 %v4442_v31  ;;  %1940 = vmatprep.subr.bf16.mxu0 %v4443_v32  ;;  %v4517_v31 = vld [vmem:[%s6012_s4 + $0x360] ss:$12 sps:$4 sm:$0xff]   ;;  %v4532_v40 = vld [vmem:[%s6012_s4 + $0x510] ss:$12 sps:$4 sm:$0xff]   ;;  %v4550_v59 = vld [vmem:[%s6012_s4 + $0x558] ss:$12 sps:$4 sm:$0xff]   ;;  %s562_s28 = scalar_lea.vmem %s6020_s12, %s4196_s14 }
  0x26   : > { %1981 = vmatprep.subr.bf16.mxu1 %v4445_v33  ;;  %v4520_v32 = vld [vmem:[%s6012_s4 + $0x4e0] ss:$12 sps:$4 sm:$0xff]   ;;  %v4525_v33 = vld [vmem:[%s6012_s4 + $0x37c] ss:$12 sps:$4 sm:$0xff]  }
  0x28   : > { %1941 = vmatpush1.bf16.msra.mxu0 %v4447_v34  ;;  %v4528_v34 = vld [vmem:[%s6012_s4 + $0x4fc] ss:$12 sps:$4 sm:$0xff]  }
  0x29   : > { %1982 = vmatpush1.bf16.msra.mxu1 %v4448_v35  ;;  %1942 = vmatprep.subr.bf16.mxu0 %v4449_v36  ;;  %v4523_v35 = vld [vmem:[%s6012_s4 + $0x378] ss:$12 sps:$4 sm:$0xff]  }
  0x2a   : > { %1983 = vmatprep.subr.bf16.mxu1 %v4451_v37  ;;  %v4526_v36 = vld [vmem:[%s6012_s4 + $0x4f8] ss:$12 sps:$4 sm:$0xff]   ;;  %v4531_v37 = vld [vmem:[%s6012_s4 + $0x394] ss:$12 sps:$4 sm:$0xff]  }
  0x2c   : > { %1943 = vmatpush1.bf16.msra.mxu0 %v4453_v41  ;;  %v4589_v41 = vld [vmem:[%s5001_s16 + $0x4] ss:$8 sps:$4 sm:$0xff]   ;;  %s531_s16 = scalar_lea.vmem %s6009_s1, %s4367_s18  ;;  %s552_s18 = scalar_lea.vmem %s6011_s3, %s4196_s14 }
  0x2d   : > { %1984 = vmatpush1.bf16.msra.mxu1 %v4454_v42  ;;  %1944 = vmatprep.subr.bf16.mxu0 %v4455_v43  ;;  %v4537_v42 = vld [vmem:[%s6012_s4 + $0x3ac] ss:$12 sps:$4 sm:$0xff]  }
  0x2e   : > { %1985 = vmatprep.subr.bf16.mxu1 %v4457_v44  ;;  %v4540_v43 = vld [vmem:[%s6012_s4 + $0x52c] ss:$12 sps:$4 sm:$0xff]   ;;  %v5175_v44 = vrot.slane %v4589_v41, %v5007_v51  ;;  %v4607_v41 = vld [vmem:[%s6012_s4 + $0x2a8] ss:$12 sps:$4 sm:$0xff]  }
  0x30   : > { %1945 = vmatpush1.bf16.msra.mxu0 %v4459_v47  ;;  %v4538_v47 = vld [vmem:[%s6012_s4 + $0x528] ss:$12 sps:$4 sm:$0xff]  }
  0x31   : > { %1986 = vmatpush1.bf16.msra.mxu1 %v4460_v48  ;;  %1946 = vmatprep.subr.bf16.mxu0 %v4461_v49  ;;  %v859_v48 = vcombine.high %v5175_v44, %v5175_v44  ;;  %v4543_v49 = vld [vmem:[%s6012_s4 + $0x3c4] ss:$12 sps:$4 sm:$0xff]  }
  0x32   : > { %1987 = vmatprep.subr.bf16.mxu1 %v4463_v50  ;;  %v4546_v50 = vld [vmem:[%s6012_s4 + $0x544] ss:$12 sps:$4 sm:$0xff]  }
  0x34   : > { %1947 = vmatpush1.bf16.msra.mxu0 %v4465_v52  ;;  %v5192_v52 = vrot.slane %v859_v48, %v5007_v51  ;;  %v4613_v48 = vld [vmem:[%s6012_s4 + $0x200] ss:$12 sps:$4 sm:$0xff]  }
  0x35   : > { %1988 = vmatpush1.bf16.msra.mxu1 %v4466_v54  ;;  %1948 = vmatprep.subr.bf16.mxu0 %v4467_v55  ;;  %v4544_v54 = vld [vmem:[%s6012_s4 + $0x540] ss:$12 sps:$4 sm:$0xff]  }
  0x36   : > { %1989 = vmatprep.subr.bf16.mxu1 %v4469_v56  ;;  %v5203_v55 = vcombine.high %v5192_v52, %v5192_v52  ;;  %v4549_v56 = vld [vmem:[%s6012_s4 + $0x3dc] ss:$12 sps:$4 sm:$0xff]  }
  0x38   : > { %1949 = vmatpush1.bf16.msra.mxu0 %v4471_v58  ;;  %v4547_v58 = vld [vmem:[%s6012_s4 + $0x3d8] ss:$12 sps:$4 sm:$0xff]  }
  0x39   : > { %1990 = vmatpush1.bf16.msra.mxu1 %v4472_v60  ;;  %1950 = vmatprep.subr.bf16.mxu0 %v4473_v61  ;;  %v4555_v60 = vld [vmem:[%s6012_s4 + $0x3f4] ss:$12 sps:$4 sm:$0xff]  }
  0x3a   : > { %1991 = vmatprep.subr.bf16.mxu1 %v4475_v62  ;;  %v4558_v61 = vld [vmem:[%s6012_s4 + $0x574] ss:$12 sps:$4 sm:$0xff]   ;;  %v4553_v62 = vld [vmem:[%s6012_s4 + $0x3f0] ss:$12 sps:$4 sm:$0xff]  }
  0x3c   : > { %1951 = vmatpush1.bf16.msra.mxu0 %v4477_v0  ;;  %v4556_v0 = vld [vmem:[%s6012_s4 + $0x570] ss:$12 sps:$4 sm:$0xff]  }
  0x3d   : > { %1992 = vmatpush1.bf16.msra.mxu1 %v4478_v2  ;;  %1952 = vmatprep.subr.bf16.mxu0 %v4479_v3  ;;  %v4561_v2 = vld [vmem:[%s6012_s4 + $0x40c] ss:$12 sps:$4 sm:$0xff]  }
  0x3e   : > { %1993 = vmatprep.subr.bf16.mxu1 %v4481_v4  ;;  %v4564_v3 = vld [vmem:[%s6012_s4 + $0x58c] ss:$12 sps:$4 sm:$0xff]   ;;  %v4559_v4 = vld [vmem:[%s6012_s4 + $0x408] ss:$12 sps:$4 sm:$0xff]  }
  0x40   : > { %1953 = vmatpush1.bf16.msra.mxu0 %v4483_v5  ;;  %v4562_v5 = vld [vmem:[%s6012_s4 + $0x588] ss:$12 sps:$4 sm:$0xff]  }
  0x41   : > { %1994 = vmatpush1.bf16.msra.mxu1 %v4484_v6  ;;  %1954 = vmatprep.subr.bf16.mxu0 %v4485_v7  ;;  %v4567_v6 = vld [vmem:[%s6012_s4 + $0x424] ss:$12 sps:$4 sm:$0xff]  }
  0x42   : > { %1995 = vmatprep.subr.bf16.mxu1 %v4487_v8  ;;  %v4570_v7 = vld [vmem:[%s6012_s4 + $0x5a4] ss:$12 sps:$4 sm:$0xff]   ;;  %v4565_v8 = vld [vmem:[%s6012_s4 + $0x420] ss:$12 sps:$4 sm:$0xff]  }
  0x44   : > { %1955 = vmatpush1.bf16.msra.mxu0 %v4489_v9  ;;  %v4568_v9 = vld [vmem:[%s6012_s4 + $0x5a0] ss:$12 sps:$4 sm:$0xff]  }
  0x45   : > { %1996 = vmatpush1.bf16.msra.mxu1 %v4490_v11  ;;  %2006 = vmatprep.subr.bf16.mxu0 %v4495_v12  ;;  %v4573_v11 = vld [vmem:[%s6012_s4 + $0x43c] ss:$12 sps:$4 sm:$0xff]  }
  0x46   : > { %2047 = vmatprep.subr.bf16.mxu1 %v4498_v13  ;;  %v4576_v12 = vld [vmem:[%s6012_s4 + $0x5bc] ss:$12 sps:$4 sm:$0xff]   ;;  %v4571_v13 = vld [vmem:[%s6012_s4 + $0x438] ss:$12 sps:$4 sm:$0xff]  }
  0x47   : > { %1957 = vmatmul.mubr.bf16.vlgmr.msra.gmra.mrb[0].mxu0 %v5072_v10 }
  0x48   : > { %1998 = vmatmul.mubr.bf16.vlgmr.msra.gmra.mrb[0].mxu1 %v5085_v14  ;;  %2007 = vmatpush1.bf16.msra.mxu0 %v4493_v15  ;;  %v4574_v15 = vld [vmem:[%s6012_s4 + $0x5b8] ss:$12 sps:$4 sm:$0xff]  }
  0x49   : > { %2048 = vmatpush1.bf16.msra.mxu1 %v4496_v16  ;;  %2008 = vmatprep.subr.bf16.mxu0 %v4501_v17  ;;  %v4579_v16 = vld [vmem:[%s6012_s4 + $0x454] ss:$12 sps:$4 sm:$0xff]  }
  0x4a   : > { %2049 = vmatprep.subr.bf16.mxu1 %v4504_v18  ;;  %2038 = vmatprep.mubr.bf16.mxu0 %v5192_v52  ;;  %v4582_v17 = vld [vmem:[%s6012_s4 + $0x5d4] ss:$12 sps:$4 sm:$0xff]   ;;  %v4577_v18 = vld [vmem:[%s6012_s4 + $0x450] ss:$12 sps:$4 sm:$0xff]  }
  0x4b   : > { %2079 = vmatprep.mubr.bf16.mxu1 %v5203_v55 }
  0x4c   : > { %2009 = vmatpush1.bf16.msra.mxu0 %v4499_v19  ;;  %v4580_v19 = vld [vmem:[%s6012_s4 + $0x5d0] ss:$12 sps:$4 sm:$0xff]  }
  0x4d   : > { %2050 = vmatpush1.bf16.msra.mxu1 %v4502_v20  ;;  %2010 = vmatprep.subr.bf16.mxu0 %v4507_v21  ;;  %v4585_v20 = vld [vmem:[%s6012_s4 + $0x46c] ss:$12 sps:$4 sm:$0xff]  }
  0x4e   : > { %2051 = vmatprep.subr.bf16.mxu1 %v4510_v22  ;;  %v4588_v21 = vld [vmem:[%s6012_s4 + $0x5ec] ss:$12 sps:$4 sm:$0xff]   ;;  %v4583_v22 = vld [vmem:[%s6012_s4 + $0x468] ss:$12 sps:$4 sm:$0xff]  }
  0x50   : > { %2011 = vmatpush1.bf16.msra.mxu0 %v4505_v23  ;;  %v4586_v23 = vld [vmem:[%s6012_s4 + $0x5e8] ss:$12 sps:$4 sm:$0xff]  }
  0x51   : > { %2052 = vmatpush1.bf16.msra.mxu1 %v4508_v24  ;;  %2012 = vmatprep.subr.bf16.mxu0 %v4513_v25  ;;  %v5292_v24 = vrot.slane %v5175_v44, %v5007_v51  ;;  %v4590_v25 = vld [vmem:[%s6012_s4 + $0xc8] ss:$12 sps:$4 sm:$0xff]   ;;  %v4610_v44 = vld [vmem:[%s6012_s4 + $0x140] ss:$12 sps:$4 sm:$0xff]  }
  0x52   : > { %2053 = vmatprep.subr.bf16.mxu1 %v4516_v26  ;;  %v4591_v26 = vld [vmem:[%s6012_s4 + $0x248] ss:$12 sps:$4 sm:$0xff]  }
  0x54   : > { %2013 = vmatpush1.bf16.msra.mxu0 %v4511_v27  ;;  %v4592_v27 = vld [vmem:[%s6012_s4 + $0x8] ss:$12 sps:$4 sm:$0xff]  }
  0x55   : > { %2054 = vmatpush1.bf16.msra.mxu1 %v4514_v28  ;;  %2014 = vmatprep.subr.bf16.mxu0 %v4519_v29  ;;  %v5305_v28 = vcombine.high %v5292_v24, %v5292_v24  ;;  %v4593_v29 = vld [vmem:[%s6012_s4 + $0x188] ss:$12 sps:$4 sm:$0xff]  }
  0x56   : > { %2055 = vmatprep.subr.bf16.mxu1 %v4522_v30  ;;  %v4594_v30 = vld [vmem:[%s6012_s4 + $0xe0] ss:$12 sps:$4 sm:$0xff]  }
  0x58   : > { %2015 = vmatpush1.bf16.msra.mxu0 %v4517_v31  ;;  %v4595_v31 = vld [vmem:[%s6012_s4 + $0x260] ss:$12 sps:$4 sm:$0xff]  }
  0x59   : > { %2056 = vmatpush1.bf16.msra.mxu1 %v4520_v32  ;;  %2016 = vmatprep.subr.bf16.mxu0 %v4525_v33  ;;  %v4596_v32 = vld [vmem:[%s6012_s4 + $0x20] ss:$12 sps:$4 sm:$0xff]  }
  0x5a   : > { %2057 = vmatprep.subr.bf16.mxu1 %v4528_v34  ;;  %v4597_v33 = vld [vmem:[%s6012_s4 + $0x1a0] ss:$12 sps:$4 sm:$0xff]   ;;  %v4598_v34 = vld [vmem:[%s6012_s4 + $0xf8] ss:$12 sps:$4 sm:$0xff]  }
  0x5c   : > { %2017 = vmatpush1.bf16.msra.mxu0 %v4523_v35  ;;  %v4599_v35 = vld [vmem:[%s6012_s4 + $0x278] ss:$12 sps:$4 sm:$0xff]  }
  0x5d   : > { %2058 = vmatpush1.bf16.msra.mxu1 %v4526_v36  ;;  %2018 = vmatprep.subr.bf16.mxu0 %v4531_v37  ;;  %v4600_v36 = vld [vmem:[%s6012_s4 + $0x38] ss:$12 sps:$4 sm:$0xff]  }
  0x5e   : > { %2059 = vmatprep.subr.bf16.mxu1 %v4534_v38  ;;  %v4601_v37 = vld [vmem:[%s6012_s4 + $0x1b8] ss:$12 sps:$4 sm:$0xff]   ;;  %v4602_v38 = vld [vmem:[%s6012_s4 + $0x110] ss:$12 sps:$4 sm:$0xff]  }
  0x60   : > { %2019 = vmatpush1.bf16.msra.mxu0 %v4529_v39  ;;  %v4603_v39 = vld [vmem:[%s6012_s4 + $0x290] ss:$12 sps:$4 sm:$0xff]  }
  0x61   : > { %2060 = vmatpush1.bf16.msra.mxu1 %v4532_v40  ;;  %2020 = vmatprep.subr.bf16.mxu0 %v4537_v42  ;;  %v4606_v40 = vld [vmem:[%s6012_s4 + $0x128] ss:$12 sps:$4 sm:$0xff]  }
  0x62   : > { %2061 = vmatprep.subr.bf16.mxu1 %v4540_v43  ;;  %v4608_v42 = vld [vmem:[%s6012_s4 + $0x68] ss:$12 sps:$4 sm:$0xff]  }
  0x63   : > { %v4609_v43 = vld [vmem:[%s6012_s4 + $0x1e8] ss:$12 sps:$4 sm:$0xff]  }
  0x64   : > { %2021 = vmatpush1.bf16.msra.mxu0 %v4535_v46  ;;  %v4611_v46 = vld [vmem:[%s6012_s4 + $0x2c0] ss:$12 sps:$4 sm:$0xff]  }
  0x65   : > { %2062 = vmatpush1.bf16.msra.mxu1 %v4538_v47  ;;  %2022 = vmatprep.subr.bf16.mxu0 %v4543_v49  ;;  %v4612_v47 = vld [vmem:[%s6012_s4 + $0x80] ss:$12 sps:$4 sm:$0xff]   ;;  %v4614_v49 = vld [vmem:[%s6012_s4 + $0x158] ss:$12 sps:$4 sm:$0xff]  }
  0x66   : > { %2063 = vmatprep.subr.bf16.mxu1 %v4546_v50  ;;  %v4615_v50 = vld [vmem:[%s6012_s4 + $0x2d8] ss:$12 sps:$4 sm:$0xff]  }
  0x68   : > { %2023 = vmatpush1.bf16.msra.mxu0 %v4541_v53  ;;  %v4616_v53 = vld [vmem:[%s6012_s4 + $0x98] ss:$12 sps:$4 sm:$0xff]  }
  0x69   : > { %2064 = vmatpush1.bf16.msra.mxu1 %v4544_v54  ;;  %2024 = vmatprep.subr.bf16.mxu0 %v4549_v56  ;;  %v4617_v54 = vld [vmem:[%s6012_s4 + $0x218] ss:$12 sps:$4 sm:$0xff]   ;;  %v4618_v56 = vld [vmem:[%s6012_s4 + $0x170] ss:$12 sps:$4 sm:$0xff]  }
  0x6a   : > { %2065 = vmatprep.subr.bf16.mxu1 %v4552_v57  ;;  %v4619_v57 = vld [vmem:[%s6012_s4 + $0x2f0] ss:$12 sps:$4 sm:$0xff]  }
  0x6c   : > { %2025 = vmatpush1.bf16.msra.mxu0 %v4547_v58  ;;  %v4620_v58 = vld [vmem:[%s6012_s4 + $0xb0] ss:$12 sps:$4 sm:$0xff]  }
  0x6d   : > { %2066 = vmatpush1.bf16.msra.mxu1 %v4550_v59  ;;  %2026 = vmatprep.subr.bf16.mxu0 %v4555_v60  ;;  %v4621_v59 = vld [vmem:[%s6012_s4 + $0x230] ss:$12 sps:$4 sm:$0xff]   ;;  %v4622_v60 = vld [vmem:[%s6012_s4 + $0x3c8] ss:$12 sps:$4 sm:$0xff]  }
  0x6e   : > { %2067 = vmatprep.subr.bf16.mxu1 %v4558_v61  ;;  %v4623_v61 = vld [vmem:[%s6012_s4 + $0x548] ss:$12 sps:$4 sm:$0xff]  }
  0x70   : > { %2027 = vmatpush1.bf16.msra.mxu0 %v4553_v62  ;;  %v4624_v62 = vld [vmem:[%s6012_s4 + $0x308] ss:$12 sps:$4 sm:$0xff]  }
  0x71   : > { %2068 = vmatpush1.bf16.msra.mxu1 %v4556_v0  ;;  %2028 = vmatprep.subr.bf16.mxu0 %v4561_v2  ;;  %v4625_v0 = vld [vmem:[%s6012_s4 + $0x488] ss:$12 sps:$4 sm:$0xff]   ;;  %v4626_v2 = vld [vmem:[%s6012_s4 + $0x3e0] ss:$12 sps:$4 sm:$0xff]  }
  0x72   : > { %2069 = vmatprep.subr.bf16.mxu1 %v4564_v3  ;;  %v4627_v3 = vld [vmem:[%s6012_s4 + $0x560] ss:$12 sps:$4 sm:$0xff]  }
  0x74   : > { %2029 = vmatpush1.bf16.msra.mxu0 %v4559_v4  ;;  %v4628_v4 = vld [vmem:[%s6012_s4 + $0x320] ss:$12 sps:$4 sm:$0xff]  }
  0x75   : > { %2070 = vmatpush1.bf16.msra.mxu1 %v4562_v5  ;;  %2030 = vmatprep.subr.bf16.mxu0 %v4567_v6  ;;  %v4629_v5 = vld [vmem:[%s6012_s4 + $0x4a0] ss:$12 sps:$4 sm:$0xff]   ;;  %v4630_v6 = vld [vmem:[%s6012_s4 + $0x3f8] ss:$12 sps:$4 sm:$0xff]  }
  0x76   : > { %2071 = vmatprep.subr.bf16.mxu1 %v4570_v7  ;;  %v4633_v7 = vld [vmem:[%s6012_s4 + $0x4b8] ss:$12 sps:$4 sm:$0xff]  }
  0x78   : > { %2031 = vmatpush1.bf16.msra.mxu0 %v4565_v8  ;;  %v4634_v8 = vld [vmem:[%s6012_s4 + $0x410] ss:$12 sps:$4 sm:$0xff]  }
  0x79   : > { %2072 = vmatpush1.bf16.msra.mxu1 %v4568_v9  ;;  %2032 = vmatprep.subr.bf16.mxu0 %v4573_v11  ;;  %v4637_v9 = vld [vmem:[%s6012_s4 + $0x4d0] ss:$12 sps:$4 sm:$0xff]   ;;  %v4638_v11 = vld [vmem:[%s6012_s4 + $0x428] ss:$12 sps:$4 sm:$0xff]  }
  0x7a   : > { %2073 = vmatprep.subr.bf16.mxu1 %v4576_v12  ;;  %v4639_v12 = vld [vmem:[%s6012_s4 + $0x5a8] ss:$12 sps:$4 sm:$0xff]  }
  0x7c   : > { %2033 = vmatpush1.bf16.msra.mxu0 %v4571_v13  ;;  %v4640_v13 = vld [vmem:[%s6012_s4 + $0x368] ss:$12 sps:$4 sm:$0xff]  }
  0x7d   : > { %2074 = vmatpush1.bf16.msra.mxu1 %v4574_v15  ;;  %2034 = vmatprep.subr.bf16.mxu0 %v4579_v16  ;;  %v4641_v15 = vld [vmem:[%s6012_s4 + $0x4e8] ss:$12 sps:$4 sm:$0xff]   ;;  %v4642_v16 = vld [vmem:[%s6012_s4 + $0x440] ss:$12 sps:$4 sm:$0xff]  }
  0x7e   : > { %2075 = vmatprep.subr.bf16.mxu1 %v4582_v17  ;;  %v4643_v17 = vld [vmem:[%s6012_s4 + $0x5c0] ss:$12 sps:$4 sm:$0xff]  }
  0x80   : > { %2035 = vmatpush1.bf16.msra.mxu0 %v4577_v18  ;;  %v4644_v18 = vld [vmem:[%s6012_s4 + $0x380] ss:$12 sps:$4 sm:$0xff]  }
  0x81   : > { %2076 = vmatpush1.bf16.msra.mxu1 %v4580_v19  ;;  %2036 = vmatprep.subr.bf16.mxu0 %v4585_v20  ;;  %v4645_v19 = vld [vmem:[%s6012_s4 + $0x500] ss:$12 sps:$4 sm:$0xff]   ;;  %v4646_v20 = vld [vmem:[%s6012_s4 + $0x458] ss:$12 sps:$4 sm:$0xff]  }
  0x82   : > { %2077 = vmatprep.subr.bf16.mxu1 %v4588_v21  ;;  %v4647_v21 = vld [vmem:[%s6012_s4 + $0x5d8] ss:$12 sps:$4 sm:$0xff]  }
  0x84   : > { %2037 = vmatpush1.bf16.msra.mxu0 %v4583_v22  ;;  %v4648_v22 = vld [vmem:[%s6012_s4 + $0x398] ss:$12 sps:$4 sm:$0xff]  }
  0x85   : > { %2078 = vmatpush1.bf16.msra.mxu1 %v4586_v23  ;;  %4249 = vmatprep.subr.bf16.mxu0 %v4590_v25  ;;  %v4649_v23 = vld [vmem:[%s6012_s4 + $0x518] ss:$12 sps:$4 sm:$0xff]   ;;  %v4650_v25 = vld [vmem:[%s6012_s4 + $0x470] ss:$12 sps:$4 sm:$0xff]  }
  0x86   : > { %4271 = vmatprep.subr.bf16.mxu1 %v4591_v26  ;;  %v4651_v26 = vld [vmem:[%s6012_s4 + $0x5f0] ss:$12 sps:$4 sm:$0xff]  }
  0x87   : > { %2039 = vmatmul.mubr.bf16.vlgmr.msra.gmra.mrb[4].mxu0 %v5292_v24 }
  0x88   : > { %2080 = vmatmul.mubr.bf16.vlgmr.msra.gmra.mrb[4].mxu1 %v5305_v28  ;;  %4250 = vmatpush3.bf16.msra.mxu0 %v4592_v27  ;;  %v4652_v27 = vld [vmem:[%s6012_s4 + $0x3b0] ss:$12 sps:$4 sm:$0xff]  }
  0x89   : > { %4272 = vmatpush3.bf16.msra.mxu1 %v4593_v29  ;;  %4251 = vmatprep.subr.bf16.mxu0 %v4594_v30  ;;  %v4653_v29 = vld [vmem:[%s6012_s4 + $0x530] ss:$12 sps:$4 sm:$0xff]   ;;  %v4656_v30 = vld [vmem:[%s6014_s6 + $0x4] ss:$8 sps:$4 sm:$0xff]  }
  0x8a   : > { %4273 = vmatprep.subr.bf16.mxu1 %v4595_v31  ;;  %2120 = vmatprep.mubr.bf16.mxu0 %v5036_v63  ;;  %v4604_v63 = vld [vmem:[%s6012_s4 + $0x50] ss:$12 sps:$4 sm:$0xff]   ;;  %v4654_v31 = vld [vmem:[%s6014_s6] ss:$8 sps:$4 sm:$0xff]  }
  0x8b   : > { %2160 = vmatprep.mubr.bf16.mxu1 %v5044_v1  ;;  %v4605_v1 = vld [vmem:[%s6012_s4 + $0x1d0] ss:$12 sps:$4 sm:$0xff]  }
  0x8c   : > { %4252 = vmatpush3.bf16.msra.mxu0 %v4596_v32  ;;  %v4659_v32 = vld [vmem:[%s6014_s6 + $0x14] ss:$8 sps:$4 sm:$0xff]  }
  0x8d   : > { %4274 = vmatpush3.bf16.msra.mxu1 %v4597_v33  ;;  %4253 = vmatprep.subr.bf16.mxu0 %v4598_v34  ;;  %v4657_v33 = vld [vmem:[%s6014_s6 + $0x10] ss:$8 sps:$4 sm:$0xff]   ;;  %v4662_v34 = vld [vmem:[%s6014_s6 + $0x24] ss:$8 sps:$4 sm:$0xff]  }
  0x8e   : > { %4275 = vmatprep.subr.bf16.mxu1 %v4599_v35  ;;  %v4660_v35 = vld [vmem:[%s6014_s6 + $0x20] ss:$8 sps:$4 sm:$0xff]  }
  0x90   : > { %4254 = vmatpush3.bf16.msra.mxu0 %v4600_v36  ;;  %v4668_v36 = vld [vmem:[%s6014_s6 + $0x44] ss:$8 sps:$4 sm:$0xff]  }
  0x91   : > { %4276 = vmatpush3.bf16.msra.mxu1 %v4601_v37  ;;  %4255 = vmatprep.subr.bf16.mxu0 %v4602_v38  ;;  %v4666_v37 = vld [vmem:[%s6014_s6 + $0x40] ss:$8 sps:$4 sm:$0xff]   ;;  %v4671_v38 = vld [vmem:[%s6014_s6 + $0x54] ss:$8 sps:$4 sm:$0xff]  }
  0x92   : > { %4277 = vmatprep.subr.bf16.mxu1 %v4603_v39  ;;  %v4669_v39 = vld [vmem:[%s6014_s6 + $0x50] ss:$8 sps:$4 sm:$0xff]  }
  0x94   : > { %4256 = vmatpush3.bf16.msra.mxu0 %v4604_v63  ;;  %v4674_v63 = vld [vmem:[%s6014_s6 + $0x64] ss:$8 sps:$4 sm:$0xff]  }
  0x95   : > { %4278 = vmatpush3.bf16.msra.mxu1 %v4605_v1  ;;  %4257 = vmatprep.subr.bf16.mxu0 %v4606_v40  ;;  %v4672_v1 = vld [vmem:[%s6014_s6 + $0x60] ss:$8 sps:$4 sm:$0xff]   ;;  %v4677_v40 = vld [vmem:[%s6014_s6 + $0x74] ss:$8 sps:$4 sm:$0xff]  }
  0x96   : > { %4279 = vmatprep.subr.bf16.mxu1 %v4607_v41  ;;  %v4675_v41 = vld [vmem:[%s6014_s6 + $0x70] ss:$8 sps:$4 sm:$0xff]  }
  0x98   : > { %4258 = vmatpush3.bf16.msra.mxu0 %v4608_v42  ;;  %v4680_v42 = vld [vmem:[%s6014_s6 + $0x84] ss:$8 sps:$4 sm:$0xff]  }
  0x99   : > { %4280 = vmatpush3.bf16.msra.mxu1 %v4609_v43  ;;  %4259 = vmatprep.subr.bf16.mxu0 %v4610_v44  ;;  %v4678_v43 = vld [vmem:[%s6014_s6 + $0x80] ss:$8 sps:$4 sm:$0xff]   ;;  %v4683_v44 = vld [vmem:[%s6014_s6 + $0x94] ss:$8 sps:$4 sm:$0xff]  }
  0x9a   : > { %4281 = vmatprep.subr.bf16.mxu1 %v4611_v46  ;;  %v4681_v46 = vld [vmem:[%s6014_s6 + $0x90] ss:$8 sps:$4 sm:$0xff]  }
  0x9c   : > { %4260 = vmatpush3.bf16.msra.mxu0 %v4612_v47  ;;  %v4686_v47 = vld [vmem:[%s6014_s6 + $0xa4] ss:$8 sps:$4 sm:$0xff]  }
  0x9d   : > { %4282 = vmatpush3.bf16.msra.mxu1 %v4613_v48  ;;  %4261 = vmatprep.subr.bf16.mxu0 %v4614_v49  ;;  %v4684_v48 = vld [vmem:[%s6014_s6 + $0xa0] ss:$8 sps:$4 sm:$0xff]   ;;  %v4689_v49 = vld [vmem:[%s6014_s6 + $0xb4] ss:$8 sps:$4 sm:$0xff]  }
  0x9e   : > { %4283 = vmatprep.subr.bf16.mxu1 %v4615_v50  ;;  %v4687_v50 = vld [vmem:[%s6014_s6 + $0xb0] ss:$8 sps:$4 sm:$0xff]  }
  0xa0   : > { %4262 = vmatpush3.bf16.msra.mxu0 %v4616_v53  ;;  %v4692_v53 = vld [vmem:[%s6014_s6 + $0xc4] ss:$8 sps:$4 sm:$0xff]  }
  0xa1   : > { %4284 = vmatpush3.bf16.msra.mxu1 %v4617_v54  ;;  %4263 = vmatprep.subr.bf16.mxu0 %v4618_v56  ;;  %v4690_v54 = vld [vmem:[%s6014_s6 + $0xc0] ss:$8 sps:$4 sm:$0xff]   ;;  %v4695_v56 = vld [vmem:[%s6014_s6 + $0xd4] ss:$8 sps:$4 sm:$0xff]  }
  0xa2   : > { %4285 = vmatprep.subr.bf16.mxu1 %v4619_v57  ;;  %v4693_v57 = vld [vmem:[%s6014_s6 + $0xd0] ss:$8 sps:$4 sm:$0xff]  }
  0xa4   : > { %4264 = vmatpush3.bf16.msra.mxu0 %v4620_v58  ;;  %v4698_v58 = vld [vmem:[%s6014_s6 + $0xe4] ss:$8 sps:$4 sm:$0xff]  }
  0xa5   : > { %4286 = vmatpush3.bf16.msra.mxu1 %v4621_v59  ;;  %4293 = vmatprep.subr.bf16.mxu0 %v4622_v60  ;;  %v4696_v59 = vld [vmem:[%s6014_s6 + $0xe0] ss:$8 sps:$4 sm:$0xff]   ;;  %v4701_v60 = vld [vmem:[%s6014_s6 + $0xf4] ss:$8 sps:$4 sm:$0xff]  }
  0xa6   : > { %4315 = vmatprep.subr.bf16.mxu1 %v4623_v61  ;;  %v4699_v61 = vld [vmem:[%s6014_s6 + $0xf0] ss:$8 sps:$4 sm:$0xff]  }
  0xa7   : > { %2121 = vmatmul.mubr.bf16.vlgmr.msra.gmra.mrb[8].mxu0 %v5072_v10  ;;  %v4631_v10 = vld [vmem:[%s6012_s4 + $0x578] ss:$12 sps:$4 sm:$0xff]  }
  0xa8   : > { %2161 = vmatmul.mubr.bf16.vlgmr.msra.gmra.mrb[8].mxu1 %v5085_v14  ;;  %4294 = vmatpush3.bf16.msra.mxu0 %v4624_v62  ;;  %v4632_v14 = vld [vmem:[%s6012_s4 + $0x338] ss:$12 sps:$4 sm:$0xff]  }
  0xa9   : > { %4316 = vmatpush3.bf16.msra.mxu1 %v4625_v0  ;;  %4295 = vmatprep.subr.bf16.mxu0 %v4626_v2  ;;  %v4704_v62 = vld [vmem:[%s6014_s6 + $0x104] ss:$8 sps:$4 sm:$0xff]   ;;  %v5600_v0 = vsub.s32 0, %v4985_v45  ;;  %v5605_v2 = vld [vmem:[%s6013_s5] sm:$0x7] }
  0xaa   : > { %4317 = vmatprep.subr.bf16.mxu1 %v4627_v3  ;;  %2200 = vmatprep.mubr.bf16.mxu0 %v5192_v52  ;;  %v4635_v52 = vld [vmem:[%s6012_s4 + $0x590] ss:$12 sps:$4 sm:$0xff]   ;;  %v5608_v3 = vsub.s32 1, %v4985_v45 }
  0xab   : > { %2240 = vmatprep.mubr.bf16.mxu1 %v5203_v55  ;;  %v4636_v55 = vld [vmem:[%s6012_s4 + $0x350] ss:$12 sps:$4 sm:$0xff]  }
  0xac   : > { %4296 = vmatpush3.bf16.msra.mxu0 %v4628_v4  ;;  %v828_v4 = vrot.slane %v5605_v2, %v5600_v0 }
  0xad   : > { %4318 = vmatpush3.bf16.msra.mxu1 %v4629_v5  ;;  %4297 = vmatprep.subr.bf16.mxu0 %v4630_v6  ;;  %v832_v5 = vrot.slane %v5605_v2, %v5608_v3 }
  0xae   : > { %4319 = vmatprep.subr.bf16.mxu1 %v4631_v10 }
  0xb0   : > { %4298 = vmatpush3.bf16.msra.mxu0 %v4632_v14 }
  0xb1   : > { %4320 = vmatpush3.bf16.msra.mxu1 %v4633_v7  ;;  %4299 = vmatprep.subr.bf16.mxu0 %v4634_v8 }
  0xb2   : > { %4321 = vmatprep.subr.bf16.mxu1 %v4635_v52 }
  0xb4   : > { %4300 = vmatpush3.bf16.msra.mxu0 %v4636_v55 }
  0xb5   : > { %4322 = vmatpush3.bf16.msra.mxu1 %v4637_v9  ;;  %4301 = vmatprep.subr.bf16.mxu0 %v4638_v11 }
  0xb6   : > { %4323 = vmatprep.subr.bf16.mxu1 %v4639_v12 }
  0xb8   : > { %4302 = vmatpush3.bf16.msra.mxu0 %v4640_v13 }
  0xb9   : > { %4324 = vmatpush3.bf16.msra.mxu1 %v4641_v15  ;;  %4303 = vmatprep.subr.bf16.mxu0 %v4642_v16  ;;  %v4767_v16 = vmov 0  }
  0xba   : > { %4325 = vmatprep.subr.bf16.mxu1 %v4643_v17  ;;  %v4726_v17 = vld [vmem:[%s6016_s8] sm:$0xff]  }
  0xbc   : > { %4304 = vmatpush3.bf16.msra.mxu0 %v4644_v18  ;;  %v4727_v18 = vld [vmem:[%s6016_s8 + $0x8] sm:$0xff]  }
  0xbd   : > { %4326 = vmatpush3.bf16.msra.mxu1 %v4645_v19  ;;  %4305 = vmatprep.subr.bf16.mxu0 %v4646_v20  ;;  %v4728_v19 = vld [vmem:[%s6016_s8 + $0x10] sm:$0xff]   ;;  %v4729_v20 = vld [vmem:[%s6016_s8 + $0x18] sm:$0xff]  }
  0xbe   : > { %4327 = vmatprep.subr.bf16.mxu1 %v4647_v21  ;;  %v4768_v21 = vmov 1983009808  }
  0xc0   : > { %4306 = vmatpush3.bf16.msra.mxu0 %v4648_v22  ;;  %v2257_v22 = vunpack.c.l.s4 %v4768_v21 }
  0xc1   : > { %4328 = vmatpush3.bf16.msra.mxu1 %v4649_v23  ;;  %4307 = vmatprep.subr.bf16.mxu0 %v4650_v25  ;;  %v5635_v23 = vld [vmem:[%s531_s16] sm:$0x7]  ;;  %v5637_v25 = vld [vmem:[%s531_s16 + $0x3] sm:$0x7] }
  0xc2   : > { %4329 = vmatprep.subr.bf16.mxu1 %v4651_v26  ;;  %v2258_v26 = vunpack.c.0.s8 %v2257_v22 }
  0xc4   : > { %4308 = vmatpush3.bf16.msra.mxu0 %v4652_v27  ;;  %v2250_v27 = vunpack.c.l.bf16 %v5635_v23  ;;  %v4730_v23 = vld [vmem:[%s6016_s8 + $0x20] sm:$0xff]  }
  0xc5   : > { %4330 = vmatpush3.bf16.msra.mxu1 %v4653_v29  ;;  %2583 = vmatprep.subr.bf16.mxu0 %v4656_v30  ;;  %v2251_v29 = vunpack.c.l.bf16 %v5637_v25  ;;  %v5642_v30 = vsub.s32 %v2258_v26, %v4985_v45  ;;  %v4731_v25 = vld [vmem:[%s6016_s8 + $0x28] sm:$0xff]  }
  0xc6   : > { %2985 = vmatprep.subr.bf16.mxu1 %v4767_v16 }
  0xc7   : > { %2201 = vmatmul.mubr.bf16.vlgmr.msra.gmra.mrb[12].mxu0 %v5292_v24  ;;  %v4665_v24 = vld [vmem:[%s6014_s6 + $0x34] ss:$8 sps:$4 sm:$0xff]   ;;  %v2255_v21 = vcombine.high %v2250_v27, %v2251_v29 }
  0xc8   : > { %2241 = vmatmul.mubr.bf16.vlgmr.msra.gmra.mrb[12].mxu1 %v5305_v28  ;;  %2584 = vmatpush1.bf16.msra.mxu0 %v4654_v31  ;;  %v4663_v28 = vld [vmem:[%s6014_s6 + $0x30] ss:$8 sps:$4 sm:$0xff]   ;;  %v2254_v31 = vcombine.low %v2250_v27, %v2251_v29 }
  0xc9   : > { %2585 = vmatprep.subr.bf16.mxu0 %v4659_v32  ;;  %2986 = vmatpush1.bf16.msra.mxu1 %v4726_v17  ;;  %v4732_v27 = vld [vmem:[%s6016_s8 + $0x30] sm:$0xff]   ;;  %v4733_v29 = vld [vmem:[%s6016_s8 + $0x38] sm:$0xff]  }
  0xca   : > { %2987 = vmatprep.subr.bf16.mxu1 %v4767_v16  ;;  %v2262_v32 = vrot.slane %v2254_v31, %v5642_v30 }
  0xcc   : > { %2586 = vmatpush1.bf16.msra.mxu0 %v4657_v33 }
  0xcd   : > { %2587 = vmatprep.subr.bf16.mxu0 %v4662_v34  ;;  %2988 = vmatpush1.bf16.msra.mxu1 %v4727_v18  ;;  %v4723_v18 = vld [vmem:[%s6014_s6 + $0x170] ss:$8 sps:$4 sm:$0xff]  }
  0xce   : > { %2989 = vmatprep.subr.bf16.mxu1 %v4767_v16 }
  0xd0   : > { %2588 = vmatpush1.bf16.msra.mxu0 %v4660_v35 }
  0xd1   : > { %2589 = vmatprep.subr.bf16.mxu0 %v4665_v24  ;;  %2990 = vmatpush1.bf16.msra.mxu1 %v4728_v19 }
  0xd2   : > { %2991 = vmatprep.subr.bf16.mxu1 %v4767_v16 }
  0xd4   : > { %2590 = vmatpush1.bf16.msra.mxu0 %v4663_v28 }
  0xd5   : > { %2591 = vmatprep.subr.bf16.mxu0 %v4668_v36  ;;  %2992 = vmatpush1.bf16.msra.mxu1 %v4729_v20 }
  0xd6   : > { %2993 = vmatprep.subr.bf16.mxu1 %v4767_v16 }
  0xd8   : > { %2592 = vmatpush1.bf16.msra.mxu0 %v4666_v37  ;;  %v2270_v37 = vcombine.high %v2262_v32, %v2262_v32 }
  0xd9   : > { %2593 = vmatprep.subr.bf16.mxu0 %v4671_v38  ;;  %2994 = vmatpush1.bf16.msra.mxu1 %v4730_v23 }
  0xda   : > { %2995 = vmatprep.subr.bf16.mxu1 %v4767_v16 }
  0xdc   : > { %2594 = vmatpush1.bf16.msra.mxu0 %v4669_v39 }
  0xdd   : > { %2595 = vmatprep.subr.bf16.mxu0 %v4674_v63  ;;  %2996 = vmatpush1.bf16.msra.mxu1 %v4731_v25 }
  0xde   : > { %2997 = vmatprep.subr.bf16.mxu1 %v4767_v16 }
  0xe0   : > { %2596 = vmatpush1.bf16.msra.mxu0 %v4672_v1 }
  0xe1   : > { %2597 = vmatprep.subr.bf16.mxu0 %v4677_v40  ;;  %2998 = vmatpush1.bf16.msra.mxu1 %v4732_v27 }
  0xe2   : > { %2999 = vmatprep.subr.bf16.mxu1 %v4767_v16 }
  0xe4   : > { %2598 = vmatpush1.bf16.msra.mxu0 %v4675_v41 }
  0xe5   : > { %2599 = vmatprep.subr.bf16.mxu0 %v4680_v42  ;;  %3000 = vmatpush1.bf16.msra.mxu1 %v4733_v29 }
  0xe6   : > { %3001 = vmatprep.subr.bf16.mxu1 %v4767_v16 }
  0xe8   : > { %2600 = vmatpush1.bf16.msra.mxu0 %v4678_v43 }
  0xe9   : > { %2601 = vmatprep.subr.bf16.mxu0 %v4683_v44 }
  0xec   : > { %2602 = vmatpush1.bf16.msra.mxu0 %v4681_v46 }
  0xed   : > { %2603 = vmatprep.subr.bf16.mxu0 %v4686_v47 }
  0xf0   : > { %2604 = vmatpush1.bf16.msra.mxu0 %v4684_v48  ;;  %v4702_v48 = vld [vmem:[%s6014_s6 + $0x100] ss:$8 sps:$4 sm:$0xff]  }
  0xf1   : > { %2605 = vmatprep.subr.bf16.mxu0 %v4689_v49 }
  0xf4   : > { %2606 = vmatpush1.bf16.msra.mxu0 %v4687_v50  ;;  %v4707_v50 = vld [vmem:[%s6014_s6 + $0x114] ss:$8 sps:$4 sm:$0xff]  }
  0xf5   : > { %2607 = vmatprep.subr.bf16.mxu0 %v4692_v53  ;;  %v4705_v53 = vld [vmem:[%s6014_s6 + $0x110] ss:$8 sps:$4 sm:$0xff]  }
  0xf8   : > { %2608 = vmatpush1.bf16.msra.mxu0 %v4690_v54  ;;  %v4710_v54 = vld [vmem:[%s6014_s6 + $0x124] ss:$8 sps:$4 sm:$0xff]  }
  0xf9   : > { %2609 = vmatprep.subr.bf16.mxu0 %v4695_v56  ;;  %v4708_v56 = vld [vmem:[%s6014_s6 + $0x120] ss:$8 sps:$4 sm:$0xff]  }
  0xfc   : > { %2610 = vmatpush1.bf16.msra.mxu0 %v4693_v57  ;;  %v4713_v57 = vld [vmem:[%s6014_s6 + $0x134] ss:$8 sps:$4 sm:$0xff]  }
  0xfd   : > { %2611 = vmatprep.subr.bf16.mxu0 %v4698_v58  ;;  %v4711_v58 = vld [vmem:[%s6014_s6 + $0x130] ss:$8 sps:$4 sm:$0xff]  }
 0x100   : > { %2612 = vmatpush1.bf16.msra.mxu0 %v4696_v59  ;;  %v4716_v59 = vld [vmem:[%s6014_s6 + $0x144] ss:$8 sps:$4 sm:$0xff]  }
 0x101   : > { %2613 = vmatprep.subr.bf16.mxu0 %v4701_v60  ;;  %v4714_v60 = vld [vmem:[%s6014_s6 + $0x140] ss:$8 sps:$4 sm:$0xff]  }
 0x104   : > { %2614 = vmatpush1.bf16.msra.mxu0 %v4699_v61  ;;  %v4719_v61 = vld [vmem:[%s6014_s6 + $0x154] ss:$8 sps:$4 sm:$0xff]  }
 0x105   : > { %2624 = vmatprep.subr.bf16.mxu0 %v4704_v62  ;;  %v835_v62 = vsub.s32 2, %v4985_v45 }
 0x11a   : > { %v1958_v6 = vpop.f32.mrb[0].mxu0 }
 0x11b   : > { %v1999_v10 = vpop.f32.mrb[0].mxu1  ;;  %v1959_v14 = vadd.f32 %v1958_v6, %v828_v4  ;;  %v1960_v7 = vpop.f32.mrb[1].mxu0  ;;  %v4717_v4 = vld [vmem:[%s6014_s6 + $0x150] ss:$8 sps:$4 sm:$0xff]  }
 0x11c   : > { %v2001_v8 = vpop.f32.mrb[1].mxu1  ;;  %v1961_v52 = vadd.f32 %v1960_v7, %v832_v5  ;;  %v1962_v55 = vpop.f32.mrb[2].mxu0  ;;  %v4722_v5 = vld [vmem:[%s6014_s6 + $0x164] ss:$8 sps:$4 sm:$0xff]  }
 0x11d   : > { %v2003_v9 = vpop.f32.mrb[2].mxu1  ;;  %v2000_v11 = vadd.f32 %v1999_v10, %v1959_v14  ;;  %v1963_v12 = vpop.f32.mrb[3].mxu0  ;;  %v836_v14 = vrot.slane %v5605_v2, %v835_v62 }
 0x11e   : > { %v2004_v13 = vpop.f32.mrb[3].mxu1  ;;  %v2002_v15 = vadd.f32 %v2001_v8, %v1961_v52 }
 0x15a   : > { %v2040_v33 = vpop.f32.mrb[4].mxu0 }
 0x15b   : > { %v2081_v34 = vpop.f32.mrb[4].mxu1  ;;  %v2041_v35 = vadd.f32 %v2040_v33, %v2000_v11  ;;  %v2042_v24 = vpop.f32.mrb[5].mxu0  ;;  %v4720_v11 = vld [vmem:[%s6014_s6 + $0x160] ss:$8 sps:$4 sm:$0xff]  }
 0x15c   : > { %v2083_v28 = vpop.f32.mrb[5].mxu1  ;;  %v2043_v36 = vadd.f32 %v2042_v24, %v2002_v15  ;;  %v2044_v38 = vpop.f32.mrb[6].mxu0  ;;  %v4725_v15 = vld [vmem:[%s6014_s6 + $0x174] ss:$8 sps:$4 sm:$0xff]  }
 0x15d   : > { %v2085_v39 = vpop.f32.mrb[6].mxu1  ;;  %v2082_v63 = vadd.f32 %v2081_v34, %v2041_v35  ;;  %v2045_v1 = vpop.f32.mrb[7].mxu0 }
 0x15e   : > { %v2086_v40 = vpop.f32.mrb[7].mxu1  ;;  %v2084_v41 = vadd.f32 %v2083_v28, %v2043_v36  ;;  %v2269_v36 = vrot.slane %v2255_v21, %v5642_v30  ;;  %v4734_v1 = vld [vmem:[%s6016_s8 + $0x40] sm:$0xff]  }
 0x15f   : > { %v2274_v42 = vadd.f32 %v2262_v32, %v2082_v63  ;;  %3002 = vmatpush1.bf16.msra.mxu1 %v4734_v1  ;;  %v4735_v40 = vld [vmem:[%s6016_s8 + $0x48] sm:$0xff]  }
 0x160   : > { %v2275_v43 = vadd.f32 %v2270_v37, %v2084_v41  ;;  %3003 = vmatprep.subr.bf16.mxu1 %v4767_v16  ;;  %v4736_v41 = vld [vmem:[%s6016_s8 + $0x50] sm:$0xff]  }
 0x161   : > { %v2277_v44 = vmax.f32 %v2274_v42, 0.0  ;;  %v4737_v42 = vld [vmem:[%s6016_s8 + $0x58] sm:$0xff]  }
 0x162   : > { %v2278_v46 = vmax.f32 %v2275_v43, 0.0  ;;  %v2331_v43 = vld [vmem:[%s6015_s7] sm:$0x3] }
 0x163   : > { %v2280_v49 = vpack.c.bf16 %v2277_v44, %v2277_v44  ;;  %3004 = vmatpush1.bf16.msra.mxu1 %v4735_v40  ;;  %v2336_v44 = vrot.slane %v2331_v43, %v5600_v0 }
 0x164   : > { %v2281_v47 = vpack.c.bf16 %v2278_v46, %v2278_v46  ;;  %3005 = vmatprep.subr.bf16.mxu1 %v4767_v16  ;;  %v2340_v46 = vrot.slane %v2331_v43, %v5608_v3 }
 0x166   : > { %2615 = vmatprep.mubr.bf16.mxu0 %v2281_v47 }
 0x167   : > { %2616 = vmatmul.mubr.bf16.vlgmr.msra.gmra.mrb[16].mxu0 %v2280_v49  ;;  %3006 = vmatpush1.bf16.msra.mxu1 %v4736_v41 }
 0x168   : > { %2625 = vmatpush1.bf16.msra.mxu0 %v4702_v48  ;;  %2656 = vmatprep.mubr.bf16.mxu0 %v4767_v16 }
 0x169   : > { %2626 = vmatprep.subr.bf16.mxu0 %v4707_v50  ;;  %3007 = vmatprep.subr.bf16.mxu1 %v4767_v16  ;;  %v4199_v50 = vld [vmem:[%s542_s20] sm:$0xff]  }
 0x16b   : > { %3008 = vmatpush1.bf16.msra.mxu1 %v4737_v42 }
 0x16c   : > { %2627 = vmatpush1.bf16.msra.mxu0 %v4705_v53 }
 0x16d   : > { %2628 = vmatprep.subr.bf16.mxu0 %v4710_v54 }
 0x170   : > { %2629 = vmatpush1.bf16.msra.mxu0 %v4708_v56  ;;  %v4242_v56 = vld [vmem:[%s542_s20 + $0x8] sm:$0xff]  }
 0x171   : > { %2630 = vmatprep.subr.bf16.mxu0 %v4713_v57  ;;  %v4205_v62 = vunpack.c.h.bf16 %v4242_v56 }
 0x174   : > { %2631 = vmatpush1.bf16.msra.mxu0 %v4711_v58  ;;  %v4200_v58 = vunpack.c.l.bf16 %v4199_v50 }
 0x175   : > { %2632 = vmatprep.subr.bf16.mxu0 %v4716_v59  ;;  %v4201_v59 = vunpack.c.h.bf16 %v4199_v50 }
 0x178   : > { %2633 = vmatpush1.bf16.msra.mxu0 %v4714_v60 }
 0x179   : > { %2634 = vmatprep.subr.bf16.mxu0 %v4719_v61  ;;  %v4204_v61 = vunpack.c.l.bf16 %v4242_v56 }
 0x17a   : > { %v4265_v6 = vpop.f32.mrb[8].mxu0 }
 0x17b   : > { %v4287_v10 = vpop.f32.mrb[8].mxu1  ;;  %v4266_v7 = vpop.f32.mrb[9].mxu0 }
 0x17c   : > { %v4288_v8 = vpop.f32.mrb[9].mxu1  ;;  %v4267_v52 = vadd.f32 %v4266_v7, %v4265_v6  ;;  %v4268_v9 = vpop.f32.mrb[10].mxu0  ;;  %2635 = vmatpush1.bf16.msra.mxu0 %v4717_v4  ;;  %v2778_v6 = vrot.slane %v4200_v58, %v5642_v30 }
 0x17d   : > { %v4289_v55 = vadd.f32 %v4288_v8, %v4287_v10  ;;  %v4290_v45 = vpop.f32.mrb[10].mxu1  ;;  %v4269_v12 = vpop.f32.mrb[11].mxu0  ;;  %2636 = vmatprep.subr.bf16.mxu0 %v4722_v5  ;;  %v2786_v10 = vrot.slane %v4201_v59, %v5642_v30  ;;  %v2802_v9 = vrot.slane %v4205_v62, %v5642_v30  ;;  %v4739_v62 = vld [vmem:[%s6018_s10 + $0x8] sm:$0xff]  }
 0x17e   : > { %v4291_v13 = vpop.f32.mrb[11].mxu1  ;;  %v2123_v17 = vadd.f32 %v4267_v52, %v836_v14 }
 0x17f   : > { %v2787_v21 = vcombine.high %v2786_v10, %v2786_v10 }
 0x180   : > { %v2163_v2 = vadd.f32 %v4289_v55, %v2123_v17  ;;  %2637 = vmatpush1.bf16.msra.mxu0 %v4720_v11  ;;  %v2794_v55 = vrot.slane %v4204_v61, %v5642_v30  ;;  %v4738_v61 = vld [vmem:[%s6018_s10] sm:$0xff]  }
 0x181   : > { %2638 = vmatprep.subr.bf16.mxu0 %v4725_v15  ;;  %4345 = vmatprep.subr.bf16.mxu1 %v4738_v61 }
 0x184   : > { %2639 = vmatpush1.bf16.msra.mxu0 %v4723_v18 }
 0x19a   : > { %v4309_v19 = vpop.f32.mrb[12].mxu0 }
 0x19b   : > { %v4331_v20 = vpop.f32.mrb[12].mxu1  ;;  %v4310_v22 = vpop.f32.mrb[13].mxu0 }
 0x19c   : > { %v4332_v26 = vpop.f32.mrb[13].mxu1  ;;  %v4311_v31 = vadd.f32 %v4310_v22, %v4309_v19  ;;  %v4312_v33 = vpop.f32.mrb[14].mxu0 }
 0x19d   : > { %v4333_v32 = vadd.f32 %v4332_v26, %v4331_v20  ;;  %v4334_v34 = vpop.f32.mrb[14].mxu1  ;;  %v4313_v35 = vpop.f32.mrb[15].mxu0  ;;  %v2795_v33 = vcombine.high %v2794_v55, %v2794_v55 }
 0x19e   : > { %v4335_v24 = vpop.f32.mrb[15].mxu1  ;;  %v2203_v28 = vadd.f32 %v4311_v31, %v2163_v2  ;;  %v2779_v2 = vcombine.high %v2778_v6, %v2778_v6  ;;  %v2803_v34 = vcombine.high %v2802_v9, %v2802_v9 }
 0x1a0   : > { %v2243_v37 = vadd.f32 %v4333_v32, %v2203_v28 }
 0x1a2   : > { %v2276_v38 = vadd.f32 %v2269_v36, %v2243_v37 }
 0x1a4   : > { %v2279_v39 = vmax.f32 %v2276_v38, 0.0 }
 0x1a6   : > { %v2282_v63 = vpack.c.bf16 %v2279_v39, %v2279_v39 }
 0x1a8   : > { %2657 = vmatmul.mubr.bf16.vlgmr.msra.gmra.mrb[16].mxu0 %v2282_v63 }
 0x27b   : > { %v2658_v47 = vpop.f32.mrb[16].mxu0 }
 0x27c   : > { %v4361_v48 = vadd.f32 %v2658_v47, %v2336_v44  ;;  %v2660_v49 = vpop.f32.mrb[17].mxu0 }
 0x27d   : > { %v4362_v53 = vadd.f32 %v2660_v49, %v2340_v46  ;;  %v2662_v16 = vpop.f32.mrb[18].mxu0 }
 0x27e   : > { %v2663_v54 = vpop.f32.mrb[19].mxu0 }
 0x27f   : > { %v2667_v57 = vcombine.low %v4361_v48, %v4362_v53 }
 0x281   : > { %v2674_v60 = vrot.slane %v2667_v57, %v5007_v51 }
 0x283   : > { %v2675_v4 = vcombine.high %v2674_v60, %v2674_v60  ;;  %v2682_v5 = vrot.slane %v2674_v60, %v5007_v51 }
 0x285   : > { %v2689_v14 = vrot.slane %v2675_v4, %v5007_v51  ;;  %v2690_v7 = vcombine.high %v2682_v5, %v2682_v5  ;;  %v2695_v8 = vrot.slane %v2682_v5, %v5600_v0  ;;  %v2699_v52 = vrot.slane %v2682_v5, %v5608_v3  ;;  %v4740_v4 = vld [vmem:[%s6018_s10 + $0x10] sm:$0xff]   ;;  %v4741_v5 = vld [vmem:[%s6018_s10 + $0x18] sm:$0xff]  }
 0x287   : > { %v2691_v45 = vcombine.high %v2689_v14, %v2689_v14  ;;  %v2703_v11 = vrot.slane %v2689_v14, %v5600_v0  ;;  %v2707_v12 = vrot.slane %v2689_v14, %v5608_v3  ;;  %v2711_v13 = vrot.slane %v2690_v7, %v5600_v0 }
 0x288   : > { %v2715_v15 = vrot.slane %v2690_v7, %v5608_v3  ;;  %v2724_v17 = vcombine.low %v2695_v8, %v2699_v52  ;;  %v4244_v52 = vld [vmem:[%s552_s18 + $0x10] sm:$0xff]  }
 0x289   : > { %v2719_v18 = vrot.slane %v2691_v45, %v5600_v0  ;;  %v2723_v19 = vrot.slane %v2691_v45, %v5608_v3  ;;  %v2732_v20 = vcombine.low %v2703_v11, %v2707_v12  ;;  %v4245_v45 = vld [vmem:[%s552_s18 + $0x18] sm:$0xff]   ;;  %v4216_v11 = vunpack.c.l.bf16 %v4244_v52 }
 0x28a   : > { %v2731_v22 = vrot.slane %v2724_v17, %v5642_v30  ;;  %v2740_v26 = vcombine.low %v2711_v13, %v2715_v15 }
 0x28b   : > { %v2739_v31 = vrot.slane %v2732_v20, %v5642_v30  ;;  %v2748_v32 = vcombine.low %v2719_v18, %v2723_v19  ;;  %v4220_v18 = vunpack.c.l.bf16 %v4245_v45 }
 0x28c   : > { %v2747_v35 = vrot.slane %v2740_v26, %v5642_v30  ;;  %v2812_v24 = vadd.f32 %v2778_v6, %v2731_v22  ;;  %v2814_v28 = vadd.f32 %v2786_v10, %v2731_v22  ;;  %v4207_v6 = vld [vmem:[%s552_s18] sm:$0xff]   ;;  %v4243_v10 = vld [vmem:[%s552_s18 + $0x8] sm:$0xff]   ;;  %v4221_v22 = vunpack.c.h.bf16 %v4245_v45 }
 0x28d   : > { %v2755_v36 = vrot.slane %v2748_v32, %v5642_v30  ;;  %v2813_v37 = vadd.f32 %v2779_v2, %v2739_v31  ;;  %v2815_v38 = vadd.f32 %v2787_v21, %v2739_v31  ;;  %v4208_v14 = vunpack.c.l.bf16 %v4207_v6 }
 0x28e   : > { %v2816_v39 = vadd.f32 %v2794_v55, %v2747_v35  ;;  %v2818_v3 = vadd.f32 %v2802_v9, %v2747_v35  ;;  %v2820_v63 = vmax.f32 %v2812_v24, 0.0  ;;  %v2822_v23 = vmax.f32 %v2814_v28, 0.0 }
 0x28f   : > { %v2817_v25 = vadd.f32 %v2795_v33, %v2755_v36  ;;  %v2819_v27 = vadd.f32 %v2803_v34, %v2755_v36  ;;  %v2821_v29 = vmax.f32 %v2813_v37, 0.0  ;;  %v2823_v1 = vmax.f32 %v2815_v38, 0.0  ;;  %v4170_v34 = vld [vmem:[%s6017_s9] ss:$0 sm:$0xff] }
 0x290   : > { %v2824_v40 = vmax.f32 %v2816_v39, 0.0  ;;  %v2826_v41 = vmax.f32 %v2818_v3, 0.0  ;;  %v4209_v7 = vunpack.c.h.bf16 %v4207_v6  ;;  %v4212_v8 = vunpack.c.l.bf16 %v4243_v10 }
 0x291   : > { %v2825_v42 = vmax.f32 %v2817_v25, 0.0  ;;  %v2827_v43 = vmax.f32 %v2819_v27, 0.0  ;;  %v2836_v44 = vcombine.low %v2820_v63, %v2821_v29  ;;  %v2837_v46 = vcombine.low %v2822_v23, %v2823_v1 }
 0x292   : > { %v4213_v55 = vunpack.c.h.bf16 %v4243_v10  ;;  %v3230_v9 = vcombine.high %v4208_v14, %v4208_v14  ;;  %v3247_v12 = vcombine.high %v4209_v7, %v4209_v7  ;;  %v3264_v13 = vcombine.high %v4212_v8, %v4212_v8 }
 0x293   : > { %v2844_v47 = vrot.slane %v2836_v44, %v5642_v30  ;;  %v2851_v48 = vrot.slane %v2837_v46, %v5642_v30  ;;  %v2854_v49 = vcombine.low %v2824_v40, %v2825_v42  ;;  %v2855_v50 = vcombine.low %v2826_v41, %v2827_v43 }
 0x294   : > { %v5786_v15 = vrot.slane %v4208_v14, %v5642_v30  ;;  %v3281_v17 = vcombine.high %v4213_v55, %v4213_v55  ;;  %v4217_v2 = vunpack.c.h.bf16 %v4244_v52  ;;  %v5789_v19 = vrot.slane %v3230_v9, %v5642_v30 }
 0x295   : > { %v2853_v53 = vcombine.high %v2844_v47, %v2851_v48  ;;  %v2862_v16 = vrot.slane %v2854_v49, %v5642_v30  ;;  %v2869_v54 = vrot.slane %v2855_v50, %v5642_v30  ;;  %v2852_v56 = vcombine.low %v2844_v47, %v2851_v48 }
 0x296   : > { %v5792_v20 = vrot.slane %v4209_v7, %v5642_v30  ;;  %v5795_v21 = vrot.slane %v4212_v8, %v5642_v30  ;;  %v3298_v26 = vcombine.high %v4216_v11, %v4216_v11  ;;  %v5798_v31 = vrot.slane %v3247_v12, %v5642_v30 }
 0x297   : > { %v2871_v57 = vcombine.high %v2862_v16, %v2869_v54  ;;  %v2870_v58 = vcombine.low %v2862_v16, %v2869_v54  ;;  %v5801_v32 = vrot.slane %v3264_v13, %v5642_v30  ;;  %v5804_v33 = vrot.slane %v4213_v55, %v5642_v30 }
 0x298   : > { %v3245_v35 = vcombine.high %v5786_v15, %v5786_v15  ;;  %v5812_v24 = vrot.slane %v3281_v17, %v5642_v30  ;;  %v3315_v28 = vcombine.high %v4217_v2, %v4217_v2  ;;  %v3332_v36 = vcombine.high %v4220_v18, %v4220_v18 }
 0x299   : > { %v2877_v59 = vpack.c.bf16 %v2871_v57, %v2853_v53  ;;  %v2876_v60 = vpack.c.bf16 %v2870_v58, %v2852_v56  ;;  %v3246_v37 = vcombine.high %v5789_v19, %v5789_v19  ;;  %v3262_v38 = vcombine.high %v5792_v20, %v5792_v20 }
 0x29a   : > { %v3279_v39 = vcombine.high %v5795_v21, %v5795_v21  ;;  %v5821_v3 = vrot.slane %v4216_v11, %v5642_v30  ;;  %v5824_v23 = vrot.slane %v3298_v26, %v5642_v30  ;;  %v5827_v25 = vrot.slane %v4217_v2, %v5642_v30 }
 0x29b   : > { %4183 = vmatprep.mubr.msk.bf16.mxu1 %vm2981_vm0, %v2877_v59  ;;  %v5830_v27 = vrot.slane %v4220_v18, %v5642_v30  ;;  %v3349_v29 = vcombine.high %v4221_v22, %v4221_v22  ;;  %v3263_v40 = vcombine.high %v5798_v31, %v5798_v31  ;;  %v3280_v41 = vcombine.high %v5801_v32, %v5801_v32 }
 0x29c   : > { %3018 = vmatmul.mubr.bf16.vlgmr.msra.gmra.mrb[16].mxu1 %v2876_v60  ;;  %v3296_v42 = vcombine.high %v5804_v33, %v5804_v33  ;;  %v3297_v44 = vcombine.high %v5812_v24, %v5812_v24  ;;  %v5841_v47 = vrot.slane %v3315_v28, %v5642_v30  ;;  %v5844_v48 = vrot.slane %v3332_v36, %v5642_v30 }
 0x29d   : > { %4346 = vmatpush3.bf16.msra.mxu1 %v4738_v61  ;;  %v5847_v49 = vrot.slane %v4221_v22, %v5642_v30  ;;  %v3313_v54 = vcombine.high %v5821_v3, %v5821_v3  ;;  %v3314_v57 = vcombine.high %v5824_v23, %v5824_v23  ;;  %v3330_v58 = vcombine.high %v5827_v25, %v5827_v25 }
 0x29e   : > { %4347 = vmatprep.subr.bf16.mxu1 %v4739_v62  ;;  %v3347_v59 = vcombine.high %v5830_v27, %v5830_v27  ;;  %v5859_v60 = vrot.slane %v3349_v29, %v5642_v30  ;;  %v3331_v10 = vcombine.high %v5841_v47, %v5841_v47  ;;  %v3348_v14 = vcombine.high %v5844_v48, %v5844_v48 }
 0x29f   : > { %v3364_v7 = vcombine.high %v5847_v49, %v5847_v49 }
 0x2a0   : > { %v3365_v13 = vcombine.high %v5859_v60, %v5859_v60 }
 0x2a1   : > { %4348 = vmatpush3.bf16.msra.mxu1 %v4739_v62 }
 0x2a2   : > { %4349 = vmatprep.subr.bf16.mxu1 %v4740_v4 }
 0x2a5   : > { %4350 = vmatpush3.bf16.msra.mxu1 %v4740_v4 }
 0x2a6   : > { %4351 = vmatprep.subr.bf16.mxu1 %v4741_v5 }
 0x2a9   : > { %4352 = vmatpush3.bf16.msra.mxu1 %v4741_v5 }
 0x36f   : > { %v3019_v63 = vpop.f32.mrb[16].mxu1 }
 0x370   : > { %v3020_v1 = vadd.f32 %v4170_v34, %v3019_v63  ;;  %v3021_v43 = vpop.f32.mrb[17].mxu1 }
 0x371   : > { %v3022_v46 = vpop.f32.mrb[18].mxu1 }
 0x372   : > { %v3028_v50 = vcombine.high %v3020_v1, %v3020_v1  ;;  %v3035_v53 = vrot.slane %v3020_v1, %v5007_v51  ;;  %v3023_v16 = vadd.f32 %v4170_v34, %v3022_v46  ;;  %v3024_v56 = vpop.f32.mrb[19].mxu1 }
 0x374   : > { %v3042_v61 = vrot.slane %v3028_v50, %v5007_v51  ;;  %v3043_v62 = vcombine.high %v3035_v53, %v3035_v53  ;;  %v3051_v4 = vrot.slane %v3035_v53, %v5007_v51  ;;  %v3077_v5 = vcombine.high %v3023_v16, %v3023_v16 }
 0x375   : > { %v5864_v6 = vrot.slane %v3023_v16, %v5007_v51 }
 0x376   : > { %v3044_v8 = vcombine.high %v3042_v61, %v3042_v61  ;;  %v3058_v52 = vrot.slane %v3042_v61, %v5007_v51  ;;  %v3065_v55 = vrot.slane %v3043_v62, %v5007_v51  ;;  %v3073_v9 = vcombine.high %v3051_v4, %v3051_v4 }
 0x377   : > { %v3129_v45 = vrot.slane %v3051_v4, %v5600_v0  ;;  %v3091_v11 = vrot.slane %v3077_v5, %v5007_v51  ;;  %v3092_v12 = vcombine.high %v5864_v6, %v5864_v6  ;;  %v3100_v36 = vrot.slane %v5864_v6, %v5007_v51 }
 0x378   : > { %v3072_v17 = vrot.slane %v3044_v8, %v5007_v51  ;;  %v3074_v2 = vcombine.high %v3058_v52, %v3058_v52  ;;  %v3075_v18 = vcombine.high %v3065_v55, %v3065_v55  ;;  %v3133_v22 = vrot.slane %v3065_v55, %v5600_v0 }
 0x379   : > { %v3137_v26 = vrot.slane %v3073_v9, %v5600_v0  ;;  %v3145_v34 = vrot.slane %v3058_v52, %v5600_v0  ;;  %v3398_v28 = vadd.f32 %v5786_v15, %v3129_v45  ;;  %v3402_v53 = vadd.f32 %v5792_v20, %v3129_v45 }
 0x37a   : > { %v3076_v63 = vcombine.high %v3072_v17, %v3072_v17  ;;  %v3141_v29 = vrot.slane %v3075_v18, %v5600_v0  ;;  %v3149_v1 = vrot.slane %v3072_v17, %v5600_v0  ;;  %v3153_v43 = vrot.slane %v3074_v2, %v5600_v0 }
 0x37b   : > { %v3399_v46 = vadd.f32 %v3245_v35, %v3133_v22  ;;  %v3400_v50 = vadd.f32 %v5789_v19, %v3137_v26  ;;  %v3403_v16 = vadd.f32 %v3262_v38, %v3133_v22  ;;  %v3404_v15 = vadd.f32 %v5798_v31, %v3137_v26 }
 0x37c   : > { %v3157_v56 = vrot.slane %v3076_v63, %v5600_v0  ;;  %v3401_v61 = vadd.f32 %v3246_v37, %v3141_v29  ;;  %v3405_v62 = vadd.f32 %v3263_v40, %v3141_v29  ;;  %v3406_v4 = vadd.f32 %v5795_v21, %v3145_v34 }
 0x37d   : > { %v3407_v5 = vadd.f32 %v3279_v39, %v3149_v1  ;;  %v3408_v6 = vadd.f32 %v5801_v32, %v3153_v43  ;;  %v3410_v35 = vadd.f32 %v5804_v33, %v3145_v34  ;;  %v3411_v8 = vadd.f32 %v3296_v42, %v3149_v1 }
 0x37e   : > { %v3409_v19 = vadd.f32 %v3280_v41, %v3157_v56  ;;  %v3412_v20 = vadd.f32 %v5812_v24, %v3153_v43  ;;  %v3413_v38 = vadd.f32 %v3297_v44, %v3157_v56  ;;  %v3430_v52 = vmax.f32 %v3398_v28, 0.0 }
 0x37f   : > { %v3431_v37 = vmax.f32 %v3399_v46, 0.0  ;;  %v3432_v55 = vmax.f32 %v3400_v50, 0.0  ;;  %v3433_v31 = vmax.f32 %v3401_v61, 0.0  ;;  %v3434_v40 = vmax.f32 %v3402_v53, 0.0 }
 0x380   : > { %v3435_v9 = vmax.f32 %v3403_v16, 0.0  ;;  %v3436_v45 = vmax.f32 %v3404_v15, 0.0  ;;  %v3437_v17 = vmax.f32 %v3405_v62, 0.0  ;;  %v3438_v2 = vmax.f32 %v3406_v4, 0.0 }
 0x381   : > { %v3439_v21 = vmax.f32 %v3407_v5, 0.0  ;;  %v3440_v39 = vmax.f32 %v3408_v6, 0.0  ;;  %v3441_v18 = vmax.f32 %v3409_v19, 0.0  ;;  %v3442_v32 = vmax.f32 %v3410_v35, 0.0 }
 0x382   : > { %v3443_v22 = vmax.f32 %v3411_v8, 0.0  ;;  %v3444_v33 = vmax.f32 %v3412_v20, 0.0  ;;  %v3445_v41 = vmax.f32 %v3413_v38, 0.0  ;;  %v5901_v42 = vcombine.low %v3430_v52, %v3431_v37 }
 0x383   : > { %v5903_v24 = vcombine.low %v3432_v55, %v3433_v31  ;;  %v5905_v44 = vcombine.low %v3434_v40, %v3435_v9  ;;  %v5907_v26 = vcombine.low %v3438_v2, %v3439_v21  ;;  %v5909_v34 = vcombine.low %v3436_v45, %v3437_v17 }
 0x384   : > { %v5911_v28 = vcombine.low %v3440_v39, %v3441_v18  ;;  %v5913_v63 = vcombine.low %v3442_v32, %v3443_v22  ;;  %v3093_v29 = vcombine.high %v3091_v11, %v3091_v11  ;;  %v5915_v1 = vcombine.low %v3444_v33, %v3445_v41 }
 0x385   : > { %v3107_v43 = vrot.slane %v3091_v11, %v5007_v51  ;;  %v3114_v46 = vrot.slane %v3092_v12, %v5007_v51  ;;  %v3122_v50 = vcombine.high %v3100_v36, %v3100_v36  ;;  %v3536_v53 = vrot.slane %v5907_v26, %v5642_v30 }
 0x386   : > { %v3553_v16 = vrot.slane %v5913_v63, %v5642_v30  ;;  %v3121_v56 = vrot.slane %v3093_v29, %v5007_v51  ;;  %v3161_v61 = vrot.slane %v3100_v36, %v5600_v0  ;;  %v3502_v35 = vrot.slane %v5901_v42, %v5642_v30 }
 0x387   : > { %v3123_v15 = vcombine.high %v3107_v43, %v3107_v43  ;;  %v3124_v62 = vcombine.high %v3114_v46, %v3114_v46  ;;  %v3165_v4 = vrot.slane %v3114_v46, %v5600_v0  ;;  %v3169_v5 = vrot.slane %v3122_v50, %v5600_v0 }
 0x388   : > { %v3125_v11 = vcombine.high %v3121_v56, %v3121_v56  ;;  %v3177_v12 = vrot.slane %v3107_v43, %v5600_v0  ;;  %v3181_v6 = vrot.slane %v3121_v56, %v5600_v0  ;;  %v3414_v36 = vadd.f32 %v5821_v3, %v3161_v61 }
 0x389   : > { %v3173_v19 = vrot.slane %v3124_v62, %v5600_v0  ;;  %v3185_v51 = vrot.slane %v3123_v15, %v5600_v0  ;;  %v3415_v8 = vadd.f32 %v3313_v54, %v3165_v4  ;;  %v3416_v38 = vadd.f32 %v5824_v23, %v3169_v5 }
 0x38a   : > { %v3189_v20 = vrot.slane %v3125_v11, %v5600_v0  ;;  %v3418_v52 = vadd.f32 %v5827_v25, %v3161_v61  ;;  %v3419_v37 = vadd.f32 %v3330_v58, %v3165_v4  ;;  %v3420_v31 = vadd.f32 %v5841_v47, %v3169_v5 }
 0x38b   : > { %v3417_v55 = vadd.f32 %v3314_v57, %v3173_v19  ;;  %v3421_v3 = vadd.f32 %v3331_v10, %v3173_v19  ;;  %v3423_v0 = vadd.f32 %v3347_v59, %v3181_v6  ;;  %v3422_v54 = vadd.f32 %v5830_v27, %v3177_v12 }
 0x38c   : > { %v3424_v40 = vadd.f32 %v5844_v48, %v3185_v51  ;;  %v3425_v25 = vadd.f32 %v3348_v14, %v3189_v20  ;;  %v3426_v23 = vadd.f32 %v5847_v49, %v3177_v12  ;;  %v3427_v57 = vadd.f32 %v3364_v7, %v3181_v6 }
 0x38d   : > { %v3428_v47 = vadd.f32 %v5859_v60, %v3185_v51  ;;  %v3429_v58 = vadd.f32 %v3365_v13, %v3189_v20  ;;  %v3447_v59 = vmax.f32 %v3415_v8, 0.0  ;;  %v3446_v27 = vmax.f32 %v3414_v36, 0.0 }
 0x38e   : > { %v3448_v10 = vmax.f32 %v3416_v38, 0.0  ;;  %v3449_v9 = vmax.f32 %v3417_v55, 0.0  ;;  %v3451_v45 = vmax.f32 %v3419_v37, 0.0  ;;  %v3450_v17 = vmax.f32 %v3418_v52, 0.0  ;;  %v4184_v52 = vld [vmem:[%s6019_s11] ss:$0 sm:$0xff] }
 0x38f   : > { %v3452_v48 = vmax.f32 %v3420_v31, 0.0  ;;  %v3453_v14 = vmax.f32 %v3421_v3, 0.0  ;;  %v3455_v2 = vmax.f32 %v3423_v0, 0.0  ;;  %v3454_v21 = vmax.f32 %v3422_v54, 0.0 }
 0x390   : > { %v3456_v39 = vmax.f32 %v3424_v40, 0.0  ;;  %v3457_v18 = vmax.f32 %v3425_v25, 0.0  ;;  %v3458_v49 = vmax.f32 %v3426_v23, 0.0  ;;  %v3459_v7 = vmax.f32 %v3427_v57, 0.0 }
 0x391   : > { %v3460_v32 = vmax.f32 %v3428_v47, 0.0  ;;  %v3562_v22 = vcombine.low %v3446_v27, %v3447_v59  ;;  %v3563_v33 = vcombine.low %v3448_v10, %v3449_v9  ;;  %v3461_v41 = vmax.f32 %v3429_v58, 0.0 }
 0x392   : > { %v3579_v60 = vcombine.low %v3450_v17, %v3451_v45  ;;  %v3580_v13 = vcombine.low %v3452_v48, %v3453_v14  ;;  %v3596_v42 = vcombine.low %v3454_v21, %v3455_v2  ;;  %v3509_v26 = vrot.slane %v5903_v24, %v5642_v30 }
 0x393   : > { %v3519_v29 = vrot.slane %v5905_v44, %v5642_v30  ;;  %v3526_v43 = vrot.slane %v5909_v34, %v5642_v30  ;;  %v3543_v46 = vrot.slane %v5911_v28, %v5642_v30  ;;  %v3560_v50 = vrot.slane %v5915_v1, %v5642_v30 }
 0x394   : > { %v3570_v56 = vrot.slane %v3562_v22, %v5642_v30  ;;  %v3577_v61 = vrot.slane %v3563_v33, %v5642_v30  ;;  %v3587_v15 = vrot.slane %v3579_v60, %v5642_v30  ;;  %v3510_v62 = vcombine.low %v3502_v35, %v3509_v26 }
 0x395   : > { %v3527_v24 = vcombine.low %v3519_v29, %v3526_v43  ;;  %v3544_v4 = vcombine.low %v3536_v53, %v3543_v46  ;;  %v3594_v44 = vrot.slane %v3580_v13, %v5642_v30  ;;  %v3613_v5 = vcombine.low %v3458_v49, %v3459_v7 }
 0x396   : > { %v3561_v34 = vcombine.low %v3553_v16, %v3560_v50  ;;  %v3578_v28 = vcombine.low %v3570_v56, %v3577_v61  ;;  %v3597_v11 = vcombine.low %v3456_v39, %v3457_v18  ;;  %v3614_v6 = vcombine.low %v3460_v32, %v3461_v41 }
 0x397   : > { %v3638_v12 = vpack.c.bf16 %v3527_v24, %v3510_v62  ;;  %v3595_v1 = vcombine.low %v3587_v15, %v3594_v44  ;;  %v3604_v36 = vrot.slane %v3596_v42, %v5642_v30  ;;  %v3621_v63 = vrot.slane %v3613_v5, %v5642_v30 }
 0x398   : > { %v3639_v19 = vpack.c.bf16 %v3561_v34, %v3544_v4  ;;  %v3611_v51 = vrot.slane %v3597_v11, %v5642_v30  ;;  %v3628_v53 = vrot.slane %v3614_v6, %v5642_v30 }
 0x399   : > { %4353 = vmatprep.mubr.msk.bf16.mxu1 %vm2981_vm0, %v3638_v12  ;;  %v3640_v35 = vpack.c.bf16 %v3595_v1, %v3578_v28 }
 0x39a   : > { %4354 = vmatmul.mubr.msk.bf16.vlgmr.msra.gmra.mrb[20].mxu1 %vm2981_vm0, %v3639_v19  ;;  %v3612_v16 = vcombine.low %v3604_v36, %v3611_v51  ;;  %v3629_v8 = vcombine.low %v3621_v63, %v3628_v53 }
 0x39b   : > { %4357 = vmatprep.mubr.msk.bf16.mxu1 %vm2981_vm0, %v3640_v35 }
 0x39c   : > { %v3641_v20 = vpack.c.bf16 %v3629_v8, %v3612_v16 }
 0x3a2   : > { %4358 = vmatmul.mubr.msk.bf16.gmra.mrb[24].mxu1 %vm2981_vm0, %v3641_v20 }
 0x46d   : > { %v4355_v38 = vpop.f32.mrb[20].mxu1 }
 0x46e   : > { %v3727_v37 = vpop.f32.mrb[21].mxu1  ;;  %v3736_v31 = vadd.f32 %v4355_v38, %v4184_v52 }
 0x46f   : > { %v4356_v55 = vpop.f32.mrb[22].mxu1  ;;  %v3728_v54 = vadd.f32 %v4184_v52, %v3727_v37 }
 0x470   : > { %v3739_v3 = vadd.f32 %v4356_v55, %v4184_v52  ;;  %v3730_v0 = vpop.f32.mrb[23].mxu1 }
 0x471   : > { %v3731_v30 = vadd.f32 %v4184_v52, %v3730_v0 }
 0x472   : > { %v4230_v40 = vpack.c.bf16 %v3739_v3, %v3736_v31 }
 0x473   : > { %v4225_v25 = vpack.c.bf16 %v3731_v30, %v3728_v54 }
 0x474   : > { %4246 = vst [vmem:[%s562_s28 + $0x8] sm:$0xff] %v4230_v40  }
 0x475   : > { %4226 = vst [vmem:[%s562_s28] sm:$0xff] %v4225_v25   ;;  %v4359_v23 = vpop.f32.mrb[24].mxu1 }
 0x476   : > { %v3743_v57 = vpop.f32.mrb[25].mxu1  ;;  %v3752_v58 = vadd.f32 %v4359_v23, %v4184_v52 }
 0x477   : > { %v4360_v47 = vpop.f32.mrb[26].mxu1  ;;  %v3744_v10 = vadd.f32 %v4184_v52, %v3743_v57 }
 0x478   : > { %v3755_v59 = vadd.f32 %v4360_v47, %v4184_v52  ;;  %v3746_v27 = vpop.f32.mrb[27].mxu1 }
 0x479   : > { %v3747_v9 = vadd.f32 %v4184_v52, %v3746_v27 }
 0x47a   : > { %v4240_v45 = vpack.c.bf16 %v3755_v59, %v3752_v58 }
 0x47b   : > { %v4235_v17 = vpack.c.bf16 %v3747_v9, %v3744_v10 }
 0x47c   : > { %4248 = vst [vmem:[%s562_s28 + $0x18] sm:$0xff] %v4240_v45  }
 0x47d   : > { %4247 = vst [vmem:[%s562_s28 + $0x10] sm:$0xff] %v4235_v17  }
 0x47e PF: > { %s22_s23 = sadd.s32 1, %s4764_s23   ;;  %s6021_s21 = smov %s4760_s22 }
 0x47f   : > { %p19_p5 = scmp.ge.s32.totalorder %s22_s23, 4   ;;  %s6022_s22 = smov %s6024_s24 }
 0x481   :  { %21 = sbr.rel (!%p19_p5) target bundleno = 2 (0x2), region = 107 }

</bundles_post_ra>
